<compile_context>
chip_gen: v7x
topology: tpu7x:2x2x1
jax: 0.10.0
libtpu: 0.0.40
codegen_flags: <defaults>
</compile_context>

<pallas_src>
import functools

import jax
import jax.numpy as jnp
from jax import lax
from jax.experimental import pallas as pl
from jax.experimental.pallas import tpu as pltpu


_SQRT1_2 = 0.7071067811865476


def _erf_approx(x):
    # Abramowitz & Stegun 7.1.26, |abs err| < 1.5e-7: keeps torch.nn.GELU()'s
    # exact-erf semantics using only VPU/EUP-friendly primitives.
    a1, a2, a3, a4, a5 = (0.254829592, -0.284496736, 1.421413741,
                          -1.453152027, 1.061405429)
    p = 0.3275911
    z = jnp.abs(x)
    t = 1.0 / (1.0 + p * z)
    poly = ((((a5 * t + a4) * t + a3) * t + a2) * t + a1) * t
    y = 1.0 - poly * jnp.exp(-z * z)
    return jnp.where(x >= 0.0, y, -y)


def _gelu_exact(x):
    return 0.5 * x * (1.0 + _erf_approx(x * _SQRT1_2))


def _repconv_gelu_kernel(x_ref, w_ref, b_ref, o_ref, *, tr, w_img, rows_per_chunk):
    """One (image, row-block) step of the fused rep-conv + GELU.

    x_ref: (C, F)      flattened padded row-block incl. 1-row halo; the row
                       stride is w_img + 2 and F >= (tr + 2) * (w_img + 2) + 2.
    w_ref: (9, C, C)   fused 3x3 taps, tap t = dy*3 + dx      (resident).
    b_ref: (C, 1)      fused bias, f32                        (resident).
    o_ref: (C, tr, W)  output rows of the final NCHW tensor, final dtype.
    """
    wp2 = w_img + 2
    b = b_ref[...]                                     # (C, 1) f32
    r0 = 0
    while r0 < tr:                                     # static chunk loop
        rc = min(rows_per_chunk, tr - r0)
        cl = rc * wp2
        base = r0 * wp2
        acc = None
        for t in range(9):                             # 9 accumulating MXU taps
            dy, dx = t // 3, t % 3
            off = base + dy * wp2 + dx                 # static lane offset
            xs = x_ref[:, off:off + cl]                # (C, cl)
            d = jnp.dot(w_ref[t], xs, preferred_element_type=jnp.float32)
            acc = d if acc is None else acc + d
        y = _gelu_exact(acc + b).astype(o_ref.dtype)   # (C, cl)
        for i in range(rc):                            # drop 2 pad cols per row
            o_ref[:, r0 + i, :] = y[:, i * wp2:i * wp2 + w_img]
        r0 += rc


def _fuse_branch_params(w3, b3, w1, b1):
    """Exact fusion of conv3x3 + conv1x1 + identity (== get_equivalent_kernel_bias).
    Assumes in_channels == out_channels and groups == 1 (true for this block)."""
    C = w3.shape[0]
    w1_3x3 = jnp.pad(w1, ((0, 0), (0, 0), (1, 1), (1, 1)))
    ident = jnp.zeros((C, C, 3, 3), w3.dtype)
    ident = ident.at[jnp.arange(C), jnp.arange(C), 1, 1].set(1.0)
    return w3 + w1_3x3 + ident, b3 + b1


def _pick_row_tile(H, W, N, target_px=2048, max_tr=64):
    """Rows per block: multiple of 8, ~target_px pixels per step, >=4 grid steps."""
    tr = target_px // max(W, 1)
    tr = max(8, min(max_tr, (tr // 8) * 8))
    while tr > 8 and N * (-(-H // tr)) < 4:
        tr -= 8
    return tr


@functools.partial(jax.jit, static_argnames=("compute_dtype",))
def res_mbconv_forward(x, w3, b3, w1, b1, *, compute_dtype=jnp.bfloat16):
    """x: (N,C,H,W); w3: (C,C,3,3); b3: (C,); w1: (C,C,1,1); b1: (C,).
    Returns GELU(conv3x3(x) + conv1x1(x) + x) as (N,C,H,W) in x.dtype."""
    N, C, H, W = x.shape
    TR = _pick_row_tile(H, W, N)
    Hp = -(-H // TR) * TR
    R = Hp // TR
    WP2 = W + 2
    F0 = (TR + 2) * WP2
    F = -(-(F0 + 2) // 128) * 128          # lane-dense, covers tap overrun

    # ---- exact branch fusion (tiny, wrapper-side) --------------------------
    rk, rb = _fuse_branch_params(w3, b3, w1, b1)
    w_taps = jnp.transpose(rk, (2, 3, 0, 1)).reshape(9, C, C).astype(compute_dtype)
    b_col = rb.reshape(C, 1).astype(jnp.float32)

    # ---- bf16 padded input, cut into row blocks with a 1-row halo ----------
    xc = x.astype(compute_dtype)
    x_pad = jnp.pad(xc, ((0, 0), (0, 0), (1, Hp - H + 1), (1, 1)))   # (N,C,Hp+2,W+2)
    blocks = jnp.stack([x_pad[:, :, r * TR:r * TR + TR + 2, :] for r in range(R)],
                       axis=1)                                       # (N,R,C,TR+2,W+2)
    blocks = blocks.reshape(N, R, C, F0)
    blocks = jnp.pad(blocks, ((0, 0), (0, 0), (0, 0), (0, F - F0)))  # (N,R,C,F)

    # ---- VMEM budget (explicit; v7x has only 64 MiB physical) --------------
    in_itm = jnp.dtype(compute_dtype).itemsize
    out_itm = jnp.dtype(x.dtype).itemsize
    vmem_need = (2 * C * F * in_itm + 2 * C * TR * W * out_itm
                 + 9 * C * C * in_itm + C * 4)
    vmem_limit = int(min(64 * 1024 * 1024, max(32 * 1024 * 1024, 4 * vmem_need)))

    rows_per_chunk = max(1, min(TR, (16384 // max(C, 1)) // WP2))

    kern = functools.partial(_repconv_gelu_kernel, tr=TR, w_img=W,
                             rows_per_chunk=rows_per_chunk)

    out = pl.pallas_call(
        kern,
        out_shape=jax.ShapeDtypeStruct((N, C, Hp, W), x.dtype),
        grid=(N, R),
        in_specs=[
            pl.BlockSpec((None, None, C, F), lambda n, r: (n, r, 0, 0)),
            pl.BlockSpec((9, C, C), lambda n, r: (0, 0, 0)),
            pl.BlockSpec((C, 1), lambda n, r: (0, 0)),
        ],
        out_specs=pl.BlockSpec((None, C, TR, W), lambda n, r: (n, 0, r, 0)),
        compiler_params=pltpu.CompilerParams(
            dimension_semantics=("parallel", "parallel"),
            vmem_limit_bytes=vmem_limit),
    )(blocks, w_taps, b_col)

    if Hp != H:
        out = out[:, :, :H, :]
    return out


def res_mbconv_reference(x, w3, b3, w1, b1):
    """Plain-JAX mirror of the PyTorch forward (deploy=False, use_bn=False)."""
    dn3 = lax.conv_dimension_numbers(x.shape, w3.shape, ("NCHW", "OIHW", "NCHW"))
    y3 = lax.conv_general_dilated(x, w3, (1, 1), ((1, 1), (1, 1)),
                                  dimension_numbers=dn3) + b3.reshape(1, -1, 1, 1)
    dn1 = lax.conv_dimension_numbers(x.shape, w1.shape, ("NCHW", "OIHW", "NCHW"))
    y1 = lax.conv_general_dilated(x, w1, (1, 1), ((0, 0), (0, 0)),
                                  dimension_numbers=dn1) + b1.reshape(1, -1, 1, 1)
    return jax.nn.gelu(y3 + y1 + x, approximate=False)


if __name__ == "__main__":
    key = jax.random.PRNGKey(0)
    k_x, k_w3, k_b3, k_w1, k_b1 = jax.random.split(key, 5)

    N, C, H, W = 2, 32, 16, 16

    x = jax.random.normal(k_x, (N, C, H, W), dtype=jnp.float32)
    w3 = jax.random.normal(k_w3, (C, C, 3, 3), dtype=jnp.float32) * 0.1
    b3 = jax.random.normal(k_b3, (C,), dtype=jnp.float32) * 0.1
    w1 = jax.random.normal(k_w1, (C, C, 1, 1), dtype=jnp.float32) * 0.1
    b1 = jax.random.normal(k_b1, (C,), dtype=jnp.float32) * 0.1

    ref = jax.block_until_ready(res_mbconv_reference(x, w3, b3, w1, b1))

    # f32-streaming path: tight check
    out_f32 = jax.block_until_ready(
        res_mbconv_forward(x, w3, b3, w1, b1, compute_dtype=jnp.float32))
    assert out_f32.shape == (N, C, H, W)
    err32 = float(jnp.max(jnp.abs(out_f32 - ref)))
    assert err32 < 2e-3, f"f32 path max abs err {err32}"

    # default bf16-streaming path (f32 accumulation): looser check
    out_bf16 = jax.block_until_ready(res_mbconv_forward(x, w3, b3, w1, b1))
    assert out_bf16.shape == (N, C, H, W)
    errbf = float(jnp.max(jnp.abs(out_bf16 - ref)))
    assert errbf < 1.5e-1, f"bf16 path max abs err {errbf}"

    print("KERNEL_OK")
</pallas_src>

<mosaic_0001>
module attributes {stable_mosaic.version = 11 : i64} {
  func.func @_repconv_gelu_kernel(%arg0: i32, %arg1: i32, %arg2: memref<1x1x32x256xf32, #tpu.memory_space<vmem>>, %arg3: memref<9x32x32xf32, #tpu.memory_space<vmem>>, %arg4: memref<32x1xf32, #tpu.memory_space<vmem>>, %arg5: memref<1x32x8x16xf32, #tpu.memory_space<vmem>>) attributes {dimension_semantics = [#tpu.dimension_semantics<parallel>, #tpu.dimension_semantics<parallel>], iteration_bounds = array<i64: 2, 2>, scalar_prefetch = 0 : i64, scratch_operands = 0 : i64, tpu.core_type = #tpu.core_type<tc>, window_params = [{transform_indices = @transform_0, window_bounds = array<i64: 1, 1, 32, 256>}, {pipeline_mode = #tpu.pipeline_mode<synchronous>, transform_indices = @transform_1, window_bounds = array<i64: 9, 32, 32>}, {pipeline_mode = #tpu.pipeline_mode<synchronous>, transform_indices = @transform_2, window_bounds = array<i64: 32, 1>}, {transform_indices = @transform_3, window_bounds = array<i64: 1, 32, 8, 16>}]} {
    %c0 = arith.constant 0 : index
    %c0_0 = arith.constant 0 : index
    %0 = vector.load %arg4[%c0, %c0_0] : memref<32x1xf32, #tpu.memory_space<vmem>>, vector<32x1xf32>
    %c0_1 = arith.constant 0 : index
    %c0_2 = arith.constant 0 : index
    %c0_3 = arith.constant 0 : index
    %c0_4 = arith.constant 0 : index
    %1 = vector.load %arg2[%c0_1, %c0_2, %c0_3, %c0_4] : memref<1x1x32x256xf32, #tpu.memory_space<vmem>>, vector<1x1x32x144xf32>
    %2 = vector.shape_cast %1 : vector<1x1x32x144xf32> to vector<32x144xf32>
    %c0_5 = arith.constant 0 : index
    %c0_6 = arith.constant 0 : index
    %c0_7 = arith.constant 0 : index
    %3 = vector.load %arg3[%c0_5, %c0_6, %c0_7] : memref<9x32x32xf32, #tpu.memory_space<vmem>>, vector<1x32x32xf32>
    %4 = vector.shape_cast %3 : vector<1x32x32xf32> to vector<32x32xf32>
    %cst = arith.constant dense<0.000000e+00> : vector<32x144xf32>
    %5 = tpu.matmul %4, %2, %cst {dimension_numbers = #tpu.dot_dimension_numbers<[1], [0], [0], [1], [0, 0, 1, 1], [], []>} : vector<32x32xf32>, vector<32x144xf32>, vector<32x144xf32> -> vector<32x144xf32>
    %c0_8 = arith.constant 0 : index
    %c0_9 = arith.constant 0 : index
    %c0_10 = arith.constant 0 : index
    %c1 = arith.constant 1 : index
    %6 = vector.load %arg2[%c0_8, %c0_9, %c0_10, %c1] : memref<1x1x32x256xf32, #tpu.memory_space<vmem>>, vector<1x1x32x144xf32>
    %7 = vector.shape_cast %6 : vector<1x1x32x144xf32> to vector<32x144xf32>
    %c1_11 = arith.constant 1 : index
    %c0_12 = arith.constant 0 : index
    %c0_13 = arith.constant 0 : index
    %8 = vector.load %arg3[%c1_11, %c0_12, %c0_13] : memref<9x32x32xf32, #tpu.memory_space<vmem>>, vector<1x32x32xf32>
    %9 = vector.shape_cast %8 : vector<1x32x32xf32> to vector<32x32xf32>
    %cst_14 = arith.constant dense<0.000000e+00> : vector<32x144xf32>
    %10 = tpu.matmul %9, %7, %cst_14 {dimension_numbers = #tpu.dot_dimension_numbers<[1], [0], [0], [1], [0, 0, 1, 1], [], []>} : vector<32x32xf32>, vector<32x144xf32>, vector<32x144xf32> -> vector<32x144xf32>
    %11 = arith.addf %5, %10 : vector<32x144xf32>
    %c0_15 = arith.constant 0 : index
    %c0_16 = arith.constant 0 : index
    %c0_17 = arith.constant 0 : index
    %c2 = arith.constant 2 : index
    %12 = vector.load %arg2[%c0_15, %c0_16, %c0_17, %c2] : memref<1x1x32x256xf32, #tpu.memory_space<vmem>>, vector<1x1x32x144xf32>
    %13 = vector.shape_cast %12 : vector<1x1x32x144xf32> to vector<32x144xf32>
    %c2_18 = arith.constant 2 : index
    %c0_19 = arith.constant 0 : index
    %c0_20 = arith.constant 0 : index
    %14 = vector.load %arg3[%c2_18, %c0_19, %c0_20] : memref<9x32x32xf32, #tpu.memory_space<vmem>>, vector<1x32x32xf32>
    %15 = vector.shape_cast %14 : vector<1x32x32xf32> to vector<32x32xf32>
    %cst_21 = arith.constant dense<0.000000e+00> : vector<32x144xf32>
    %16 = tpu.matmul %15, %13, %cst_21 {dimension_numbers = #tpu.dot_dimension_numbers<[1], [0], [0], [1], [0, 0, 1, 1], [], []>} : vector<32x32xf32>, vector<32x144xf32>, vector<32x144xf32> -> vector<32x144xf32>
    %17 = arith.addf %11, %16 : vector<32x144xf32>
    %c0_22 = arith.constant 0 : index
    %c0_23 = arith.constant 0 : index
    %c0_24 = arith.constant 0 : index
    %c18 = arith.constant 18 : index
    %18 = vector.load %arg2[%c0_22, %c0_23, %c0_24, %c18] : memref<1x1x32x256xf32, #tpu.memory_space<vmem>>, vector<1x1x32x144xf32>
    %19 = vector.shape_cast %18 : vector<1x1x32x144xf32> to vector<32x144xf32>
    %c3 = arith.constant 3 : index
    %c0_25 = arith.constant 0 : index
    %c0_26 = arith.constant 0 : index
    %20 = vector.load %arg3[%c3, %c0_25, %c0_26] : memref<9x32x32xf32, #tpu.memory_space<vmem>>, vector<1x32x32xf32>
    %21 = vector.shape_cast %20 : vector<1x32x32xf32> to vector<32x32xf32>
    %cst_27 = arith.constant dense<0.000000e+00> : vector<32x144xf32>
    %22 = tpu.matmul %21, %19, %cst_27 {dimension_numbers = #tpu.dot_dimension_numbers<[1], [0], [0], [1], [0, 0, 1, 1], [], []>} : vector<32x32xf32>, vector<32x144xf32>, vector<32x144xf32> -> vector<32x144xf32>
    %23 = arith.addf %17, %22 : vector<32x144xf32>
    %c0_28 = arith.constant 0 : index
    %c0_29 = arith.constant 0 : index
    %c0_30 = arith.constant 0 : index
    %c19 = arith.constant 19 : index
    %24 = vector.load %arg2[%c0_28, %c0_29, %c0_30, %c19] : memref<1x1x32x256xf32, #tpu.memory_space<vmem>>, vector<1x1x32x144xf32>
    %25 = vector.shape_cast %24 : vector<1x1x32x144xf32> to vector<32x144xf32>
    %c4 = arith.constant 4 : index
    %c0_31 = arith.constant 0 : index
    %c0_32 = arith.constant 0 : index
    %26 = vector.load %arg3[%c4, %c0_31, %c0_32] : memref<9x32x32xf32, #tpu.memory_space<vmem>>, vector<1x32x32xf32>
    %27 = vector.shape_cast %26 : vector<1x32x32xf32> to vector<32x32xf32>
    %cst_33 = arith.constant dense<0.000000e+00> : vector<32x144xf32>
    %28 = tpu.matmul %27, %25, %cst_33 {dimension_numbers = #tpu.dot_dimension_numbers<[1], [0], [0], [1], [0, 0, 1, 1], [], []>} : vector<32x32xf32>, vector<32x144xf32>, vector<32x144xf32> -> vector<32x144xf32>
    %29 = arith.addf %23, %28 : vector<32x144xf32>
    %c0_34 = arith.constant 0 : index
    %c0_35 = arith.constant 0 : index
    %c0_36 = arith.constant 0 : index
    %c20 = arith.constant 20 : index
    %30 = vector.load %arg2[%c0_34, %c0_35, %c0_36, %c20] : memref<1x1x32x256xf32, #tpu.memory_space<vmem>>, vector<1x1x32x144xf32>
    %31 = vector.shape_cast %30 : vector<1x1x32x144xf32> to vector<32x144xf32>
    %c5 = arith.constant 5 : index
    %c0_37 = arith.constant 0 : index
    %c0_38 = arith.constant 0 : index
    %32 = vector.load %arg3[%c5, %c0_37, %c0_38] : memref<9x32x32xf32, #tpu.memory_space<vmem>>, vector<1x32x32xf32>
    %33 = vector.shape_cast %32 : vector<1x32x32xf32> to vector<32x32xf32>
    %cst_39 = arith.constant dense<0.000000e+00> : vector<32x144xf32>
    %34 = tpu.matmul %33, %31, %cst_39 {dimension_numbers = #tpu.dot_dimension_numbers<[1], [0], [0], [1], [0, 0, 1, 1], [], []>} : vector<32x32xf32>, vector<32x144xf32>, vector<32x144xf32> -> vector<32x144xf32>
    %35 = arith.addf %29, %34 : vector<32x144xf32>
    %c0_40 = arith.constant 0 : index
    %c0_41 = arith.constant 0 : index
    %c0_42 = arith.constant 0 : index
    %c36 = arith.constant 36 : index
    %36 = vector.load %arg2[%c0_40, %c0_41, %c0_42, %c36] : memref<1x1x32x256xf32, #tpu.memory_space<vmem>>, vector<1x1x32x144xf32>
    %37 = vector.shape_cast %36 : vector<1x1x32x144xf32> to vector<32x144xf32>
    %c6 = arith.constant 6 : index
    %c0_43 = arith.constant 0 : index
    %c0_44 = arith.constant 0 : index
    %38 = vector.load %arg3[%c6, %c0_43, %c0_44] : memref<9x32x32xf32, #tpu.memory_space<vmem>>, vector<1x32x32xf32>
    %39 = vector.shape_cast %38 : vector<1x32x32xf32> to vector<32x32xf32>
    %cst_45 = arith.constant dense<0.000000e+00> : vector<32x144xf32>
    %40 = tpu.matmul %39, %37, %cst_45 {dimension_numbers = #tpu.dot_dimension_numbers<[1], [0], [0], [1], [0, 0, 1, 1], [], []>} : vector<32x32xf32>, vector<32x144xf32>, vector<32x144xf32> -> vector<32x144xf32>
    %41 = arith.addf %35, %40 : vector<32x144xf32>
    %c0_46 = arith.constant 0 : index
    %c0_47 = arith.constant 0 : index
    %c0_48 = arith.constant 0 : index
    %c37 = arith.constant 37 : index
    %42 = vector.load %arg2[%c0_46, %c0_47, %c0_48, %c37] : memref<1x1x32x256xf32, #tpu.memory_space<vmem>>, vector<1x1x32x144xf32>
    %43 = vector.shape_cast %42 : vector<1x1x32x144xf32> to vector<32x144xf32>
    %c7 = arith.constant 7 : index
    %c0_49 = arith.constant 0 : index
    %c0_50 = arith.constant 0 : index
    %44 = vector.load %arg3[%c7, %c0_49, %c0_50] : memref<9x32x32xf32, #tpu.memory_space<vmem>>, vector<1x32x32xf32>
    %45 = vector.shape_cast %44 : vector<1x32x32xf32> to vector<32x32xf32>
    %cst_51 = arith.constant dense<0.000000e+00> : vector<32x144xf32>
    %46 = tpu.matmul %45, %43, %cst_51 {dimension_numbers = #tpu.dot_dimension_numbers<[1], [0], [0], [1], [0, 0, 1, 1], [], []>} : vector<32x32xf32>, vector<32x144xf32>, vector<32x144xf32> -> vector<32x144xf32>
    %47 = arith.addf %41, %46 : vector<32x144xf32>
    %c0_52 = arith.constant 0 : index
    %c0_53 = arith.constant 0 : index
    %c0_54 = arith.constant 0 : index
    %c38 = arith.constant 38 : index
    %48 = vector.load %arg2[%c0_52, %c0_53, %c0_54, %c38] : memref<1x1x32x256xf32, #tpu.memory_space<vmem>>, vector<1x1x32x144xf32>
    %49 = vector.shape_cast %48 : vector<1x1x32x144xf32> to vector<32x144xf32>
    %c8 = arith.constant 8 : index
    %c0_55 = arith.constant 0 : index
    %c0_56 = arith.constant 0 : index
    %50 = vector.load %arg3[%c8, %c0_55, %c0_56] : memref<9x32x32xf32, #tpu.memory_space<vmem>>, vector<1x32x32xf32>
    %51 = vector.shape_cast %50 : vector<1x32x32xf32> to vector<32x32xf32>
    %cst_57 = arith.constant dense<0.000000e+00> : vector<32x144xf32>
    %52 = tpu.matmul %51, %49, %cst_57 {dimension_numbers = #tpu.dot_dimension_numbers<[1], [0], [0], [1], [0, 0, 1, 1], [], []>} : vector<32x32xf32>, vector<32x144xf32>, vector<32x144xf32> -> vector<32x144xf32>
    %53 = arith.addf %47, %52 : vector<32x144xf32>
    %54 = vector.broadcast %0 : vector<32x1xf32> to vector<32x144xf32>
    %55 = arith.addf %53, %54 : vector<32x144xf32>
    %cst_58 = arith.constant 5.000000e-01 : f32
    %56 = vector.broadcast %cst_58 : f32 to vector<32x144xf32>
    %57 = arith.mulf %56, %55 : vector<32x144xf32>
    %cst_59 = arith.constant 0.707106769 : f32
    %58 = vector.broadcast %cst_59 : f32 to vector<32x144xf32>
    %59 = arith.mulf %55, %58 : vector<32x144xf32>
    %60 = math.absf %59 : vector<32x144xf32>
    %cst_60 = arith.constant 0.327591091 : f32
    %61 = vector.broadcast %cst_60 : f32 to vector<32x144xf32>
    %62 = arith.mulf %61, %60 : vector<32x144xf32>
    %cst_61 = arith.constant 1.000000e+00 : f32
    %63 = vector.broadcast %cst_61 : f32 to vector<32x144xf32>
    %64 = arith.addf %63, %62 : vector<32x144xf32>
    %cst_62 = arith.constant 1.000000e+00 : f32
    %65 = vector.broadcast %cst_62 : f32 to vector<32x144xf32>
    %66 = arith.divf %65, %64 : vector<32x144xf32>
    %cst_63 = arith.constant 1.06140542 : f32
    %67 = vector.broadcast %cst_63 : f32 to vector<32x144xf32>
    %68 = arith.mulf %67, %66 : vector<32x144xf32>
    %cst_64 = arith.constant -1.45315206 : f32
    %69 = vector.broadcast %cst_64 : f32 to vector<32x144xf32>
    %70 = arith.addf %68, %69 : vector<32x144xf32>
    %71 = arith.mulf %70, %66 : vector<32x144xf32>
    %cst_65 = arith.constant 1.42141378 : f32
    %72 = vector.broadcast %cst_65 : f32 to vector<32x144xf32>
    %73 = arith.addf %71, %72 : vector<32x144xf32>
    %74 = arith.mulf %73, %66 : vector<32x144xf32>
    %cst_66 = arith.constant -0.284496725 : f32
    %75 = vector.broadcast %cst_66 : f32 to vector<32x144xf32>
    %76 = arith.addf %74, %75 : vector<32x144xf32>
    %77 = arith.mulf %76, %66 : vector<32x144xf32>
    %cst_67 = arith.constant 0.254829586 : f32
    %78 = vector.broadcast %cst_67 : f32 to vector<32x144xf32>
    %79 = arith.addf %77, %78 : vector<32x144xf32>
    %80 = arith.mulf %79, %66 : vector<32x144xf32>
    %cst_68 = arith.constant 0.000000e+00 : f32
    %81 = vector.broadcast %cst_68 : f32 to vector<32x144xf32>
    %82 = arith.subf %81, %60 : vector<32x144xf32>
    %83 = arith.mulf %82, %60 : vector<32x144xf32>
    %84 = math.exp %83 : vector<32x144xf32>
    %85 = arith.mulf %80, %84 : vector<32x144xf32>
    %cst_69 = arith.constant 1.000000e+00 : f32
    %86 = vector.broadcast %cst_69 : f32 to vector<32x144xf32>
    %87 = arith.subf %86, %85 : vector<32x144xf32>
    %cst_70 = arith.constant 0.000000e+00 : f32
    %88 = vector.broadcast %cst_70 : f32 to vector<32x144xf32>
    %89 = arith.cmpf oge, %59, %88 : vector<32x144xf32>
    %cst_71 = arith.constant 0.000000e+00 : f32
    %90 = vector.broadcast %cst_71 : f32 to vector<32x144xf32>
    %91 = arith.subf %90, %87 : vector<32x144xf32>
    %92 = arith.select %89, %87, %91 : vector<32x144xi1>, vector<32x144xf32>
    %cst_72 = arith.constant 1.000000e+00 : f32
    %93 = vector.broadcast %cst_72 : f32 to vector<32x144xf32>
    %94 = arith.addf %93, %92 : vector<32x144xf32>
    %95 = arith.mulf %57, %94 : vector<32x144xf32>
    %96 = vector.extract_strided_slice %95 {offsets = [0, 0], sizes = [32, 16], strides = [1, 1]} : vector<32x144xf32> to vector<32x16xf32>
    %c0_73 = arith.constant 0 : index
    %c0_74 = arith.constant 0 : index
    %c0_75 = arith.constant 0 : index
    %c0_76 = arith.constant 0 : index
    %97 = vector.load %arg5[%c0_73, %c0_74, %c0_75, %c0_76] : memref<1x32x8x16xf32, #tpu.memory_space<vmem>>, vector<1x32x1x16xf32>
    %98 = vector.shape_cast %97 : vector<1x32x1x16xf32> to vector<32x16xf32>
    %99 = vector.shape_cast %96 : vector<32x16xf32> to vector<1x32x1x16xf32>
    tpu.vector_store %arg5[%c0_73, %c0_74, %c0_75, %c0_76], %99 {strides = array<i32>} : memref<1x32x8x16xf32, #tpu.memory_space<vmem>>, vector<1x32x1x16xf32>,
    %100 = vector.extract_strided_slice %95 {offsets = [0, 18], sizes = [32, 16], strides = [1, 1]} : vector<32x144xf32> to vector<32x16xf32>
    %c0_77 = arith.constant 0 : index
    %c0_78 = arith.constant 0 : index
    %c1_79 = arith.constant 1 : index
    %c0_80 = arith.constant 0 : index
    %101 = vector.load %arg5[%c0_77, %c0_78, %c1_79, %c0_80] : memref<1x32x8x16xf32, #tpu.memory_space<vmem>>, vector<1x32x1x16xf32>
    %102 = vector.shape_cast %101 : vector<1x32x1x16xf32> to vector<32x16xf32>
    %103 = vector.shape_cast %100 : vector<32x16xf32> to vector<1x32x1x16xf32>
    tpu.vector_store %arg5[%c0_77, %c0_78, %c1_79, %c0_80], %103 {strides = array<i32>} : memref<1x32x8x16xf32, #tpu.memory_space<vmem>>, vector<1x32x1x16xf32>,
    %104 = vector.extract_strided_slice %95 {offsets = [0, 36], sizes = [32, 16], strides = [1, 1]} : vector<32x144xf32> to vector<32x16xf32>
    %c0_81 = arith.constant 0 : index
    %c0_82 = arith.constant 0 : index
    %c2_83 = arith.constant 2 : index
    %c0_84 = arith.constant 0 : index
    %105 = vector.load %arg5[%c0_81, %c0_82, %c2_83, %c0_84] : memref<1x32x8x16xf32, #tpu.memory_space<vmem>>, vector<1x32x1x16xf32>
    %106 = vector.shape_cast %105 : vector<1x32x1x16xf32> to vector<32x16xf32>
    %107 = vector.shape_cast %104 : vector<32x16xf32> to vector<1x32x1x16xf32>
    tpu.vector_store %arg5[%c0_81, %c0_82, %c2_83, %c0_84], %107 {strides = array<i32>} : memref<1x32x8x16xf32, #tpu.memory_space<vmem>>, vector<1x32x1x16xf32>,
    %108 = vector.extract_strided_slice %95 {offsets = [0, 54], sizes = [32, 16], strides = [1, 1]} : vector<32x144xf32> to vector<32x16xf32>
    %c0_85 = arith.constant 0 : index
    %c0_86 = arith.constant 0 : index
    %c3_87 = arith.constant 3 : index
    %c0_88 = arith.constant 0 : index
    %109 = vector.load %arg5[%c0_85, %c0_86, %c3_87, %c0_88] : memref<1x32x8x16xf32, #tpu.memory_space<vmem>>, vector<1x32x1x16xf32>
    %110 = vector.shape_cast %109 : vector<1x32x1x16xf32> to vector<32x16xf32>
    %111 = vector.shape_cast %108 : vector<32x16xf32> to vector<1x32x1x16xf32>
    tpu.vector_store %arg5[%c0_85, %c0_86, %c3_87, %c0_88], %111 {strides = array<i32>} : memref<1x32x8x16xf32, #tpu.memory_space<vmem>>, vector<1x32x1x16xf32>,
    %112 = vector.extract_strided_slice %95 {offsets = [0, 72], sizes = [32, 16], strides = [1, 1]} : vector<32x144xf32> to vector<32x16xf32>
    %c0_89 = arith.constant 0 : index
    %c0_90 = arith.constant 0 : index
    %c4_91 = arith.constant 4 : index
    %c0_92 = arith.constant 0 : index
    %113 = vector.load %arg5[%c0_89, %c0_90, %c4_91, %c0_92] : memref<1x32x8x16xf32, #tpu.memory_space<vmem>>, vector<1x32x1x16xf32>
    %114 = vector.shape_cast %113 : vector<1x32x1x16xf32> to vector<32x16xf32>
    %115 = vector.shape_cast %112 : vector<32x16xf32> to vector<1x32x1x16xf32>
    tpu.vector_store %arg5[%c0_89, %c0_90, %c4_91, %c0_92], %115 {strides = array<i32>} : memref<1x32x8x16xf32, #tpu.memory_space<vmem>>, vector<1x32x1x16xf32>,
    %116 = vector.extract_strided_slice %95 {offsets = [0, 90], sizes = [32, 16], strides = [1, 1]} : vector<32x144xf32> to vector<32x16xf32>
    %c0_93 = arith.constant 0 : index
    %c0_94 = arith.constant 0 : index
    %c5_95 = arith.constant 5 : index
    %c0_96 = arith.constant 0 : index
    %117 = vector.load %arg5[%c0_93, %c0_94, %c5_95, %c0_96] : memref<1x32x8x16xf32, #tpu.memory_space<vmem>>, vector<1x32x1x16xf32>
    %118 = vector.shape_cast %117 : vector<1x32x1x16xf32> to vector<32x16xf32>
    %119 = vector.shape_cast %116 : vector<32x16xf32> to vector<1x32x1x16xf32>
    tpu.vector_store %arg5[%c0_93, %c0_94, %c5_95, %c0_96], %119 {strides = array<i32>} : memref<1x32x8x16xf32, #tpu.memory_space<vmem>>, vector<1x32x1x16xf32>,
    %120 = vector.extract_strided_slice %95 {offsets = [0, 108], sizes = [32, 16], strides = [1, 1]} : vector<32x144xf32> to vector<32x16xf32>
    %c0_97 = arith.constant 0 : index
    %c0_98 = arith.constant 0 : index
    %c6_99 = arith.constant 6 : index
    %c0_100 = arith.constant 0 : index
    %121 = vector.load %arg5[%c0_97, %c0_98, %c6_99, %c0_100] : memref<1x32x8x16xf32, #tpu.memory_space<vmem>>, vector<1x32x1x16xf32>
    %122 = vector.shape_cast %121 : vector<1x32x1x16xf32> to vector<32x16xf32>
    %123 = vector.shape_cast %120 : vector<32x16xf32> to vector<1x32x1x16xf32>
    tpu.vector_store %arg5[%c0_97, %c0_98, %c6_99, %c0_100], %123 {strides = array<i32>} : memref<1x32x8x16xf32, #tpu.memory_space<vmem>>, vector<1x32x1x16xf32>,
    %124 = vector.extract_strided_slice %95 {offsets = [0, 126], sizes = [32, 16], strides = [1, 1]} : vector<32x144xf32> to vector<32x16xf32>
    %c0_101 = arith.constant 0 : index
    %c0_102 = arith.constant 0 : index
    %c7_103 = arith.constant 7 : index
    %c0_104 = arith.constant 0 : index
    %125 = vector.load %arg5[%c0_101, %c0_102, %c7_103, %c0_104] : memref<1x32x8x16xf32, #tpu.memory_space<vmem>>, vector<1x32x1x16xf32>
    %126 = vector.shape_cast %125 : vector<1x32x1x16xf32> to vector<32x16xf32>
    %127 = vector.shape_cast %124 : vector<32x16xf32> to vector<1x32x1x16xf32>
    tpu.vector_store %arg5[%c0_101, %c0_102, %c7_103, %c0_104], %127 {strides = array<i32>} : memref<1x32x8x16xf32, #tpu.memory_space<vmem>>, vector<1x32x1x16xf32>,
    return
  }
  func.func @transform_0(%arg0: i32, %arg1: i32) -> (i32, i32, i32, i32) {
    %c0_i32 = arith.constant 0 : i32
    %c0_i32_0 = arith.constant 0 : i32
    %c0_i32_1 = arith.constant 0 : i32
    return %arg0, %arg1, %c0_i32, %c0_i32_0 : i32, i32, i32, i32
  }
  func.func @transform_1(%arg0: i32, %arg1: i32) -> (i32, i32, i32) {
    %c0_i32 = arith.constant 0 : i32
    %c0_i32_0 = arith.constant 0 : i32
    %c0_i32_1 = arith.constant 0 : i32
    %c0_i32_2 = arith.constant 0 : i32
    return %c0_i32, %c0_i32_0, %c0_i32_1 : i32, i32, i32
  }
  func.func @transform_2(%arg0: i32, %arg1: i32) -> (i32, i32) {
    %c0_i32 = arith.constant 0 : i32
    %c0_i32_0 = arith.constant 0 : i32
    %c0_i32_1 = arith.constant 0 : i32
    return %c0_i32, %c0_i32_0 : i32, i32
  }
  func.func @transform_3(%arg0: i32, %arg1: i32) -> (i32, i32, i32, i32) {
    %c0_i32 = arith.constant 0 : i32
    %c0_i32_0 = arith.constant 0 : i32
    %c0_i32_1 = arith.constant 0 : i32
    return %arg0, %c0_i32, %arg1, %c0_i32_0 : i32, i32, i32, i32
  }
}

</mosaic_0001>

<bundles_post_ra>
// kernel: res_mbconv_forward.1
= control target key start
LH: loop header
LB: loop body
LE: loop exit
PB: predicated region body
PF: predicated region fallthrough
CT: control target
= control target key end

     0   :  { %s4365_s12 = smov 0   ;;  %s4367_s13 = smov 0   ;;  %s6715_s0 = inlined_call_operand.vmem [shape: f32[2,2,32,256], index: 0, kind: input, shape index: {}]   ;;  %s6716_s1 = inlined_call_operand.vmem [shape: f32[9,32,32], index: 1, kind: input, shape index: {}]   ;;  %s6717_s2 = inlined_call_operand.vmem [shape: f32[32,1], index: 2, kind: input, shape index: {}]   ;;  %s6718_s3 = inlined_call_operand.vmem [shape: f32[2,32,16,16], index: 3, kind: output, shape index: {}]  }
   0x1   :  { %s4369_s14 = smov 0   ;;  %s4371_s15 = smov 0  }
   0x2   :  { %s4373_s16 = smov 0   ;;  %s4375_s17 = smov 0  }
   0x3   :  { %s4377_s18 = smov 0  }
   0x4 LB: > { %s22_s19 = sadd.s32 1, %s4319_s16  ;;  %s25_s20 = sadd.s32 1, %s4323_s17  ;;  %s4327_s18 = sphi %s4377_s18, %s13_s18   ;;  %s4323_s17 = sphi %s4375_s17, %s6803_s17   ;;  %s4319_s16 = sphi %s4373_s16, %s6802_s16   ;;  %s4315_s15 = sphi %s4371_s15, %s6801_s15   ;;  %s4311_s14 = sphi %s4369_s14, %s6800_s14   ;;  %s4307_s13 = sphi %s4367_s13, %s6799_s13   ;;  %s4303_s12 = sphi %s4365_s12, %s6798_s12  }
   0x5   : > { %p23_p0 = scmp.ge.s32.totalorder %s22_s19, 2  ;;  %s3785_s21 = sadd.s32 4294967295, %s4327_s18  }
   0x6   : > { %p114_p1 = scmp.ne.s32.totalorder %s4307_s13, %s4303_s12  ;;  %p115_p2 = scmp.eq.s32.totalorder %s3785_s21, 3 }
   0x7   : > { %s6805_s19 = smov (%p23_p0, %s22_s19), 0  ;;  %s6807_s20 = smov (!%p23_p0, %s25_s20), %s4323_s17 }
   0x8   : > { %s100_s22 = ssub.s32 %s4319_s16, %s6805_s19  ;;  %p27_p3 = scmp.ge.s32.totalorder %s6807_s20, 2 }
   0x9   : > { %p3789_p4 = scmp.ge.s32.totalorder %s4327_s18, 1  ;;  %p4411_p5 = por %p115_p2, %p114_p1 }
   0xa   : > { %p157_p6 = scmp.lt.s32.totalorder %s4327_s18, 5  ;;  %s6809_s20 = smov (%p27_p3, %s6807_s20), 0 }
   0xb   : > { %s99_s24 = ssub.s32 %s4323_s17, %s6809_s20  ;;  %s104_s26 = sadd.s32 1, %s4307_s13 }
   0xc   : > { %p158_p7 = pnand %p3789_p4, %p157_p6  ;;  %s101_s25 = sor.u32 %s100_s22, %s99_s24 }
   0xd   : > { %p102_p8 = scmp.eq.s32.totalorder %s101_s25, 0 }
   0xe   : > { %161 = sbr.rel (%p158_p7) target bundleno = 1151 (0x47f), region = 32 }
   0xf   : > { %s4422_s27 = scalar_select %p102_p8, %s4307_s13, %s104_s26  }
  0x15   : > { %p184_p9 = scmp.lt.s32.totalorder %s4315_s15, 1  ;;  %p186_p10 = scmp.lt.s32.totalorder %s4311_s14, 1  ;;  %v4330_v13 = vmov 0.0   ;;  %v193_v17 = vld [vmem:[%s6717_s2] sm:$0xff]  ;;  %v194_v18 = vld [vmem:[%s6717_s2 + $0x8] sm:$0xff]  ;;  %v4338_v19 = vmov 0  }
  0x16   : > { %s4329_s10 = smov 127   ;;  %328 = vmatprep.mubr.f32.mxu1 %v4330_v13  ;;  %850 = vmatprep.mubr.f32.mxu0 %v4330_v13  ;;  %s4331_s11 = smov 126   ;;  %v196_v20 = vld [vmem:[%s6717_s2 + $0x18] sm:$0xff]  ;;  %v195_v21 = vld [vmem:[%s6717_s2 + $0x10] sm:$0xff]  ;;  %vm238_vm0 = vcmask 1039360   ;;  %v3794_v46 = vld [vmem:[%s6716_s1 + $0x20] sm:$0xff] }
  0x17   : > { %s185_s28 = scalar_select %p184_p9, %s4315_s15, 1  ;;  %4239 = vset.pattern.permute.xlu0 %v4338_v19  ;;  %4240 = vset.pattern.permute.xlu1 %v4338_v19  ;;  %vm251_vm1 = vcmask 261120   ;;  %v3795_v51 = vld [vmem:[%s6716_s1 + $0x28] sm:$0xff]  ;;  %vm475_vm2 = vcmask 1031168   ;;  %v3796_v57 = vld [vmem:[%s6716_s1 + $0x30] sm:$0xff]  ;;  %vm761_vm3 = vcmask 891904  }
  0x18   : > { %s187_s29 = scalar_select %p186_p10, %s4311_s14, 1  ;;  %vm904_vm4 = vcmask 883712   ;;  %vm618_vm5 = vcmask 900096   ;;  %vm1047_vm6 = vcmask 752640   ;;  %vm1190_vm7 = vcmask 744448  }
  0x19   : > { %s3792_s30 = sshll.u32 %s185_s28, 4  ;;  %s4332_s21 = smov 110   ;;  %vm1333_vm8 = vcmask 736256   ;;  %vm1931_vm13 = vcmask 122880  }
  0x1a   : > { %s3791_s4 = sshll.u32 %s187_s29, 3  ;;  %s4333_s22 = smov 109  }
  0x1b   : > { %s190_s5 = sadd.s32 %s3792_s30, %s3791_s4  ;;  %s4334_s24 = smov 108  }
  0x1c   : > { %s3793_s6 = sshll.u32 %s190_s5, 3  ;;  %s4335_s25 = smov 92  }
  0x1d   : > { %s192_s9 = scalar_lea.vmem %s6715_s0, %s3793_s6  ;;  %s4336_s26 = smov 91  }
  0x1e   : > { %v4431_v0 = vld [vmem:[%s192_s9 + $0x20] sm:$0xff]  ;;  %v4433_v1 = vld [vmem:[%s192_s9 + $0x28] sm:$0xff]  ;;  %v4441_v5 = vld [vmem:[%s192_s9 + $0x30] sm:$0xff]  ;;  %s4337_s28 = smov 90   ;;  %s4342_s29 = smov 38  }
  0x1f   : > { %v4435_v2 = vld [vmem:[%s192_s9] sm:$0xff]  ;;  %v4089_v3 = vpack.i.bf16 %v4433_v1, %v4431_v0  ;;  %v4439_v4 = vld [vmem:[%s192_s9 + $0x8] sm:$0xff]  ;;  %v4443_v6 = vld [vmem:[%s192_s9 + $0x38] sm:$0xff]  ;;  %v3881_v16 = vpack.c.bf16 %v4441_v5, %v4431_v0  ;;  %s4343_s30 = smov 20   ;;  %s4344_s4 = smov 2  }
  0x20   : > { %v4079_v7 = vpack.i.bf16 %v4439_v4, %v4435_v2  ;;  %v4447_v8 = vld [vmem:[%s192_s9 + $0x10] sm:$0xff]  ;;  %v4449_v9 = vld [vmem:[%s192_s9 + $0x18] sm:$0xff]  ;;  %v4094_v10 = vpack.i.bf16 %v4443_v6, %v4441_v5  ;;  %v3879_v15 = vpack.c.bf16 %v4443_v6, %v4433_v1 }
  0x21   : > { %4090 = vrot.lane.b32.xlu1 %v4089_v3, %s4329_s10  ;;  %v4084_v11 = vpack.i.bf16 %v4449_v9, %v4447_v8  ;;  %v3875_v12 = vpack.c.bf16 %v4449_v9, %v4439_v4  ;;  %v3877_v14 = vpack.c.bf16 %v4447_v8, %v4435_v2  ;;  %v3797_v4 = vld [vmem:[%s6716_s1 + $0x38] sm:$0xff] }
  0x22   : > { %4080 = vrot.lane.b32.xlu0 %v4079_v7, %s4329_s10 }
  0x25   : > { %4095 = vrot.lane.b32.xlu1 %v4094_v10, %s4329_s10 }
  0x26   : > { %4085 = vrot.lane.b32.xlu0 %v4084_v11, %s4329_s10 }
  0x29   : > { %4105 = vrot.lane.b32.xlu1 %v4084_v11, %s4331_s11 }
  0x2a   : > { %4100 = vrot.lane.b32.xlu0 %v4079_v7, %s4331_s11 }
  0x2d   : > { %4115 = vrot.lane.b32.xlu1 %v4094_v10, %s4331_s11 }
  0x2e   : > { %4110 = vrot.lane.b32.xlu0 %v4089_v3, %s4331_s11 }
  0x31   : > { %4125 = vrot.lane.b32.xlu1 %v4084_v11, %s4332_s21 }
  0x32   : > { %4120 = vrot.lane.b32.xlu0 %v4079_v7, %s4332_s21 }
  0x35   : > { %4135 = vrot.lane.b32.xlu1 %v4094_v10, %s4332_s21 }
  0x36   : > { %4130 = vrot.lane.b32.xlu0 %v4089_v3, %s4332_s21 }
  0x39   : > { %4145 = vrot.lane.b32.xlu1 %v4084_v11, %s4333_s22 }
  0x3a   : > { %4140 = vrot.lane.b32.xlu0 %v4079_v7, %s4333_s22 }
  0x3d   : > { %4155 = vrot.lane.b32.xlu1 %v4094_v10, %s4333_s22 }
  0x3e   : > { %4150 = vrot.lane.b32.xlu0 %v4089_v3, %s4333_s22  ;;  %s181_s22 = sand.u32 1, %s4303_s12  }
  0x3f   : > { %s4861_s12 = sshll.u32 %s181_s22, 8 }
  0x41   : > { %4165 = vrot.lane.b32.xlu1 %v4084_v11, %s4334_s24 }
  0x42   : > { %4160 = vrot.lane.b32.xlu0 %v4079_v7, %s4334_s24 }
  0x45   : > { %4175 = vrot.lane.b32.xlu1 %v4094_v10, %s4334_s24 }
  0x46   : > { %4170 = vrot.lane.b32.xlu0 %v4089_v3, %s4334_s24  ;;  %s4896_s24 = scalar_lea.vmem [#allocation2], %s4861_s12 }
  0x49   : > { %4185 = vrot.lane.b32.xlu1 %v4084_v11, %s4335_s25 }
  0x4a   : > { %4180 = vrot.lane.b32.xlu0 %v4079_v7, %s4335_s25 }
  0x4d   : > { %4195 = vrot.lane.b32.xlu1 %v4094_v10, %s4335_s25 }
  0x4e   : > { %4190 = vrot.lane.b32.xlu0 %v4089_v3, %s4335_s25 }
  0x51   : > { %4205 = vrot.lane.b32.xlu1 %v4084_v11, %s4336_s26 }
  0x52   : > { %4200 = vrot.lane.b32.xlu0 %v4079_v7, %s4336_s26 }
  0x55   : > { %4215 = vrot.lane.b32.xlu1 %v4094_v10, %s4336_s26 }
  0x56   : > { %4210 = vrot.lane.b32.xlu0 %v4089_v3, %s4336_s26  ;;  %s4340_s26 = smov 74  }
  0x59   : > { %4225 = vrot.lane.b32.xlu1 %v4084_v11, %s4337_s28 }
  0x5a   : > { %4220 = vrot.lane.b32.xlu0 %v4079_v7, %s4337_s28 }
  0x5d   : > { %4235 = vrot.lane.b32.xlu1 %v4094_v10, %s4337_s28 }
  0x5e   : > { %4230 = vrot.lane.b32.xlu0 %v4089_v3, %s4337_s28  ;;  %s4341_s28 = smov 56  }
  0x61   : > { %1462 = vperm.xlu1 %4240, %v194_v18   ;;  %v205_v18 = vld [vmem:[%s6716_s1] sm:$0xff] }
  0x62   : > { %1457 = vperm.xlu0 %4239, %v193_v17  }
  0x65   : > { %1467 = vperm.xlu1 %4240, %v195_v21  }
  0x66   : > { %1472 = vperm.xlu0 %4239, %v196_v20  }
  0x93   : > { %v4091_v22 = vpop.permute.xlu1 %4090 }
  0x94   : > { %v4081_v23 = vpop.permute.xlu0 %4080  ;;  %v4093_v32 = vunpack.i.h.bf16 %v4091_v22  ;;  %v4092_v33 = vunpack.i.l.bf16 %v4091_v22 }
  0x95   : > { %v4082_v24 = vunpack.i.l.bf16 %v4081_v23  ;;  %v4083_v26 = vunpack.i.h.bf16 %v4081_v23 }
  0x96   : > { %v241_v43 = vsel %vm238_vm0, %v4092_v33, %v4093_v32 }
  0x97   : > { %v4096_v25 = vpop.permute.xlu1 %4095  ;;  %v239_v36 = vsel %vm238_vm0, %v4082_v24, %v4083_v26 }
  0x98   : > { %v4086_v27 = vpop.permute.xlu0 %4085  ;;  %v4098_v28 = vunpack.i.h.bf16 %v4096_v25  ;;  %v4097_v29 = vunpack.i.l.bf16 %v4096_v25 }
  0x99   : > { %v4087_v30 = vunpack.i.l.bf16 %v4086_v27  ;;  %v4088_v31 = vunpack.i.h.bf16 %v4086_v27 }
  0x9a   : > { %v3871_v40 = vpack.c.bf16 %v4098_v28, %v4093_v32  ;;  %v242_v41 = vsel %vm238_vm0, %v4097_v29, %v4098_v28 }
  0x9b   : > { %v4106_v34 = vpop.permute.xlu1 %4105  ;;  %v3867_v35 = vpack.c.bf16 %v4088_v31, %v4083_v26  ;;  %v240_v37 = vsel %vm238_vm0, %v4087_v30, %v4088_v31  ;;  %v3873_v45 = vpack.c.bf16 %v242_v41, %v241_v43 }
  0x9c   : > { %v4101_v38 = vpop.permute.xlu0 %4100  ;;  %v3869_v39 = vpack.c.bf16 %v240_v37, %v239_v36  ;;  %v4108_v49 = vunpack.i.h.bf16 %v4106_v34  ;;  %v4107_v54 = vunpack.i.l.bf16 %v4106_v34  ;;  %v206_v36 = vld [vmem:[%s6716_s1 + $0x8] sm:$0xff]  ;;  %v3822_v37 = vld [vmem:[%s6716_s1 + $0x80] sm:$0xff] }
  0x9d   : > { %3868 = vmatprep.subr.bf16.mxu1 %v3867_v35  ;;  %v4103_v50 = vunpack.i.h.bf16 %v4101_v38  ;;  %v4102_v56 = vunpack.i.l.bf16 %v4101_v38 }
  0x9e   : > { %3870 = vmatpush1.bf16.msra.mxu1 %v3869_v39  ;;  %v477_v62 = vsel %vm475_vm2, %v4107_v54, %v4108_v49 }
  0x9f   : > { %3872 = vmatprep.subr.bf16.mxu1 %v3871_v40  ;;  %v4488_v42 = vpop.permute.xlu1 %4115  ;;  %v3883_v55 = vpack.c.bf16 %v4108_v49, %v4103_v50  ;;  %v476_v0 = vsel %vm475_vm2, %v4102_v56, %v4103_v50  ;;  %v3823_v56 = vld [vmem:[%s6716_s1 + $0x88] sm:$0xff] }
  0xa0   : > { %v4491_v44 = vpop.permute.xlu0 %4110  ;;  %v4118_v2 = vunpack.i.h.bf16 %v4488_v42  ;;  %v4117_v3 = vunpack.i.l.bf16 %v4488_v42  ;;  %v3885_v19 = vpack.c.bf16 %v477_v62, %v476_v0 }
  0xa1   : > { %v4113_v6 = vunpack.i.h.bf16 %v4491_v44  ;;  %v4112_v7 = vunpack.i.l.bf16 %v4491_v44 }
  0xa2   : > { %3874 = vmatpush1.bf16.msra.mxu1 %v3873_v45  ;;  %v479_v21 = vsel %vm475_vm2, %v4117_v3, %v4118_v2  ;;  %v208_v3 = vld [vmem:[%s6716_s1 + $0x18] sm:$0xff] }
  0xa3   : > { %v4496_v47 = vpop.permute.xlu1 %4125  ;;  %3876 = vmatprep.subr.bf16.mxu1 %v3875_v12  ;;  %v478_v22 = vsel %vm475_vm2, %v4112_v7, %v4113_v6  ;;  %v3887_v29 = vpack.c.bf16 %v4118_v2, %v4113_v6  ;;  %v3830_v7 = vld [vmem:[%s6716_s1 + $0xa0] sm:$0xff]  ;;  %vm3448_vm2 = vcmask 15360  }
  0xa4   : > { %v4501_v48 = vpop.permute.xlu0 %4120  ;;  %v4128_v31 = vunpack.i.h.bf16 %v4496_v47  ;;  %v3889_v44 = vpack.c.bf16 %v479_v21, %v478_v22 }
  0xa5   : > { %3798 = vmatmul.mubr.msk.f32.vlgmr.msra.gmra.mrb[0].mxu1 %vm251_vm1, %v3794_v46  ;;  %v4123_v32 = vunpack.i.h.bf16 %v4501_v48 }
  0xa6   : > { %3878 = vmatpush1.bf16.msra.mxu1 %v3877_v14  ;;  %334 = vmatprep.mubr.f32.mxu1 %v4330_v13 }
  0xa7   : > { %v4511_v52 = vpop.permute.xlu1 %4135  ;;  %3880 = vmatprep.subr.bf16.mxu1 %v3879_v15  ;;  %v3891_v50 = vpack.c.bf16 %v4128_v31, %v4123_v32 }
  0xa8   : > { %v4516_v53 = vpop.permute.xlu0 %4130 }
  0xa9   : > { %3799 = vmatmul.mubr.msk.f32.gmra.mrb[2].mxu1 %vm251_vm1, %v3795_v51  ;;  %v4127_v51 = vunpack.i.l.bf16 %v4496_v47 }
  0xaa   : > { %3882 = vmatpush1.bf16.msra.mxu1 %v3881_v16  ;;  %340 = vmatprep.mubr.f32.mxu1 %v4330_v13 }
  0xab   : > { %3884 = vmatprep.subr.bf16.mxu1 %v3883_v55  ;;  %v4146_v58 = vpop.permute.xlu1 %4145  ;;  %v207_v55 = vld [vmem:[%s6716_s1 + $0x10] sm:$0xff] }
  0xac   : > { %v4147_v59 = vunpack.i.l.bf16 %v4146_v58  ;;  %v4141_v60 = vpop.permute.xlu0 %4140  ;;  %v4148_v61 = vunpack.i.h.bf16 %v4146_v58 }
  0xad   : > { %v4142_v63 = vunpack.i.l.bf16 %v4141_v60  ;;  %3800 = vmatmul.mubr.msk.f32.gmra.mrb[4].mxu1 %vm251_vm1, %v3796_v57  ;;  %v4143_v1 = vunpack.i.h.bf16 %v4141_v60  ;;  %v4122_v57 = vunpack.i.l.bf16 %v4501_v48  ;;  %v620_v48 = vsel %vm618_vm5, %v4127_v51, %v4128_v31 }
  0xae   : > { %346 = vmatprep.mubr.f32.mxu1 %v4330_v13  ;;  %v763_v5 = vsel %vm761_vm3, %v4147_v59, %v4148_v61 }
  0xaf   : > { %v4156_v8 = vpop.permute.xlu1 %4155  ;;  %v4538_v9 = vpack.c.bf16 %v4148_v61, %v4143_v1  ;;  %v762_v10 = vsel %vm761_vm3, %v4142_v63, %v4143_v1 }
  0xb0   : > { %v4158_v11 = vunpack.i.h.bf16 %v4156_v8  ;;  %v4157_v12 = vunpack.i.l.bf16 %v4156_v8  ;;  %v4151_v14 = vpop.permute.xlu0 %4150  ;;  %v4541_v15 = vpack.c.bf16 %v763_v5, %v762_v10  ;;  %v4138_v5 = vunpack.i.h.bf16 %v4511_v52 }
  0xb1   : > { %v4153_v16 = vunpack.i.h.bf16 %v4151_v14  ;;  %v4152_v17 = vunpack.i.l.bf16 %v4151_v14  ;;  %3801 = vmatmul.mubr.msk.f32.gmra.mrb[6].mxu1 %vm251_vm1, %v3797_v4  ;;  %3900 = vmatprep.subr.bf16.mxu0 %v4538_v9  ;;  %v619_v4 = vsel %vm618_vm5, %v4122_v57, %v4123_v32 }
  0xb2   : > { %3902 = vmatpush1.bf16.msra.mxu0 %v4541_v15  ;;  %429 = vmatprep.mubr.f32.mxu1 %v4330_v13  ;;  %v765_v20 = vsel %vm761_vm3, %v4157_v12, %v4158_v11 }
  0xb3   : > { %v4166_v23 = vpop.permute.xlu1 %4165  ;;  %v4553_v24 = vpack.c.bf16 %v4158_v11, %v4153_v16  ;;  %v764_v25 = vsel %vm761_vm3, %v4152_v17, %v4153_v16  ;;  %v4137_v11 = vunpack.i.l.bf16 %v4511_v52  ;;  %v3806_v52 = vld [vmem:[%s6716_s1 + $0x40] sm:$0xff] }
  0xb4   : > { %v4168_v26 = vunpack.i.h.bf16 %v4166_v23  ;;  %v4167_v27 = vunpack.i.l.bf16 %v4166_v23  ;;  %v4161_v28 = vpop.permute.xlu0 %4160  ;;  %v4556_v30 = vpack.c.bf16 %v765_v20, %v764_v25 }
  0xb5   : > { %v4163_v33 = vunpack.i.h.bf16 %v4161_v28  ;;  %v4162_v34 = vunpack.i.l.bf16 %v4161_v28  ;;  %3802 = vmatmul.mubr.msk.f32.vlgmr.msra.gmra.mrb[0].mxu1 %vm251_vm1, %v205_v18  ;;  %3904 = vmatprep.subr.bf16.mxu0 %v4553_v24  ;;  %v4133_v18 = vunpack.i.h.bf16 %v4516_v53  ;;  %v622_v32 = vsel %vm618_vm5, %v4137_v11, %v4138_v5  ;;  %v3841_v11 = vld [vmem:[%s6716_s1 + $0xd8] sm:$0xff] }
  0xb6   : > { %v906_v35 = vsel %vm904_vm4, %v4167_v27, %v4168_v26  ;;  %3886 = vmatpush1.bf16.msra.mxu1 %v3885_v19  ;;  %3906 = vmatpush1.bf16.msra.mxu0 %v4556_v30  ;;  %v4132_v19 = vunpack.i.l.bf16 %v4516_v53  ;;  %v3831_v53 = vld [vmem:[%s6716_s1 + $0xa8] sm:$0xff]  ;;  %v3893_v27 = vpack.c.bf16 %v620_v48, %v619_v4  ;;  %v3840_v4 = vld [vmem:[%s6716_s1 + $0xd0] sm:$0xff] }
  0xb7   : > { %v905_v38 = vsel %vm904_vm4, %v4162_v34, %v4163_v33  ;;  %3888 = vmatprep.subr.bf16.mxu1 %v3887_v29  ;;  %v4176_v39 = vpop.permute.xlu1 %4175  ;;  %435 = vmatprep.mubr.f32.mxu1 %v4330_v13  ;;  %v3907_v40 = vpack.c.bf16 %v4168_v26, %v4163_v33  ;;  %v3895_v34 = vpack.c.bf16 %v4138_v5, %v4133_v18 }
  0xb8   : > { %v4178_v41 = vunpack.i.h.bf16 %v4176_v39  ;;  %v4177_v42 = vunpack.i.l.bf16 %v4176_v39  ;;  %v4171_v43 = vpop.permute.xlu0 %4170  ;;  %v3909_v45 = vpack.c.bf16 %v906_v35, %v905_v38  ;;  %v621_v33 = vsel %vm618_vm5, %v4132_v19, %v4133_v18  ;;  %v3846_v18 = vld [vmem:[%s6716_s1 + $0xe0] sm:$0xff] }
  0xb9   : > { %v4173_v46 = vunpack.i.h.bf16 %v4171_v43  ;;  %v4172_v49 = vunpack.i.l.bf16 %v4171_v43  ;;  %3803 = vmatmul.mubr.msk.f32.gmra.mrb[2].mxu1 %vm251_vm1, %v206_v36  ;;  %3826 = vmatmul.mubr.msk.f32.vlgmr.msra.gmra.mrb[0].mxu0 %vm251_vm1, %v3822_v37  ;;  %v3807_v36 = vld [vmem:[%s6716_s1 + $0x48] sm:$0xff]  ;;  %v3832_v37 = vld [vmem:[%s6716_s1 + $0xb0] sm:$0xff]  ;;  %v3897_v39 = vpack.c.bf16 %v622_v32, %v621_v33  ;;  %v3857_v32 = vld [vmem:[%s6716_s1 + $0x118] sm:$0xff] }
  0xba   : > { %v908_v54 = vsel %vm904_vm4, %v4177_v42, %v4178_v41  ;;  %3890 = vmatpush1.bf16.msra.mxu1 %v3889_v44  ;;  %3908 = vmatprep.subr.bf16.mxu0 %v3907_v40  ;;  %v3808_v44 = vld [vmem:[%s6716_s1 + $0x50] sm:$0xff] }
  0xbb   : > { %v907_v58 = vsel %vm904_vm4, %v4172_v49, %v4173_v46  ;;  %3892 = vmatprep.subr.bf16.mxu1 %v3891_v50  ;;  %3910 = vmatpush1.bf16.msra.mxu0 %v3909_v45  ;;  %v4186_v47 = vpop.permute.xlu1 %4185  ;;  %v3911_v59 = vpack.c.bf16 %v4178_v41, %v4173_v46  ;;  %v3833_v45 = vld [vmem:[%s6716_s1 + $0xb8] sm:$0xff] }
  0xbc   : > { %v4188_v60 = vunpack.i.h.bf16 %v4186_v47  ;;  %v4187_v61 = vunpack.i.l.bf16 %v4186_v47  ;;  %v4181_v62 = vpop.permute.xlu0 %4180  ;;  %441 = vmatprep.mubr.f32.mxu1 %v4330_v13  ;;  %856 = vmatprep.mubr.f32.mxu0 %v4330_v13  ;;  %v3913_v63 = vpack.c.bf16 %v908_v54, %v907_v58  ;;  %v3838_v58 = vld [vmem:[%s6716_s1 + $0xc0] sm:$0xff] }
  0xbd   : > { %v4183_v1 = vunpack.i.h.bf16 %v4181_v62  ;;  %v4182_v0 = vunpack.i.l.bf16 %v4181_v62  ;;  %3804 = vmatmul.mubr.msk.f32.gmra.mrb[4].mxu1 %vm251_vm1, %v207_v55  ;;  %3827 = vmatmul.mubr.msk.f32.gmra.mrb[2].mxu0 %vm251_vm1, %v3823_v56 }
  0xbe   : > { %v1049_v2 = vsel %vm1047_vm6, %v4187_v61, %v4188_v60  ;;  %3912 = vmatprep.subr.bf16.mxu0 %v3911_v59  ;;  %447 = vmatprep.mubr.f32.mxu1 %v4330_v13 }
  0xbf   : > { %v1048_v6 = vsel %vm1047_vm6, %v4182_v0, %v4183_v1  ;;  %3914 = vmatpush1.bf16.msra.mxu0 %v3913_v63  ;;  %993 = vmatprep.mubr.f32.mxu0 %v4330_v13  ;;  %v3915_v8 = vpack.c.bf16 %v4188_v60, %v4183_v1  ;;  %v4196_v10 = vpop.permute.xlu1 %4195  ;;  %v3814_v1 = vld [vmem:[%s6716_s1 + $0x60] sm:$0xff]  ;;  %v3839_v0 = vld [vmem:[%s6716_s1 + $0xc8] sm:$0xff] }
  0xc0   : > { %v3917_v12 = vpack.c.bf16 %v1049_v2, %v1048_v6  ;;  %v4198_v14 = vunpack.i.h.bf16 %v4196_v10  ;;  %v4197_v16 = vunpack.i.l.bf16 %v4196_v10  ;;  %v4191_v17 = vpop.permute.xlu0 %4190 }
  0xc1   : > { %3805 = vmatmul.mubr.msk.f32.gmra.mrb[6].mxu1 %vm251_vm1, %v208_v3  ;;  %3916 = vmatprep.subr.bf16.mxu0 %v3915_v8  ;;  %v4193_v20 = vunpack.i.h.bf16 %v4191_v17  ;;  %v4192_v21 = vunpack.i.l.bf16 %v4191_v17  ;;  %v3815_v3 = vld [vmem:[%s6716_s1 + $0x68] sm:$0xff]  ;;  %v3817_v17 = vld [vmem:[%s6716_s1 + $0x78] sm:$0xff] }
  0xc2   : > { %3834 = vmatmul.mubr.msk.f32.vlgmr.msra.gmra.mrb[0].mxu0 %vm251_vm1, %v3830_v7  ;;  %v1051_v22 = vsel %vm1047_vm6, %v4197_v16, %v4198_v14  ;;  %564 = vmatprep.mubr.f32.mxu1 %v4330_v13 }
  0xc3   : > { %3918 = vmatpush1.bf16.msra.mxu0 %v3917_v12  ;;  %v1050_v23 = vsel %vm1047_vm6, %v4192_v21, %v4193_v20  ;;  %999 = vmatprep.mubr.f32.mxu0 %v4330_v13  ;;  %v3919_v25 = vpack.c.bf16 %v4198_v14, %v4193_v20  ;;  %v4206_v26 = vpop.permute.xlu1 %4205 }
  0xc4   : > { %v3921_v28 = vpack.c.bf16 %v1051_v22, %v1050_v23  ;;  %v4208_v29 = vunpack.i.h.bf16 %v4206_v26  ;;  %v4201_v31 = vpop.permute.xlu0 %4200  ;;  %v4207_v40 = vunpack.i.l.bf16 %v4206_v26  ;;  %v3847_v23 = vld [vmem:[%s6716_s1 + $0xe8] sm:$0xff]  ;;  %v3848_v26 = vld [vmem:[%s6716_s1 + $0xf0] sm:$0xff] }
  0xc5   : > { %3810 = vmatmul.mubr.msk.f32.vlgmr.msra.gmra.mrb[0].mxu1 %vm251_vm1, %v3806_v52  ;;  %3920 = vmatprep.subr.bf16.mxu0 %v3919_v25  ;;  %v4203_v35 = vunpack.i.h.bf16 %v4201_v31  ;;  %v4202_v41 = vunpack.i.l.bf16 %v4201_v31  ;;  %v3824_v52 = vld [vmem:[%s6716_s1 + $0x90] sm:$0xff]  ;;  %v3825_v25 = vld [vmem:[%s6716_s1 + $0x98] sm:$0xff] }
  0xc6   : > { %3894 = vmatpush1.bf16.msra.mxu1 %v3893_v27  ;;  %3835 = vmatmul.mubr.msk.f32.gmra.mrb[2].mxu0 %vm251_vm1, %v3831_v53  ;;  %v1192_v46 = vsel %vm1190_vm7, %v4207_v40, %v4208_v29  ;;  %v3849_v27 = vld [vmem:[%s6716_s1 + $0xf8] sm:$0xff]  ;;  %v3856_v31 = vld [vmem:[%s6716_s1 + $0x110] sm:$0xff] }
  0xc7   : > { %3896 = vmatprep.subr.bf16.mxu1 %v3895_v34  ;;  %570 = vmatprep.mubr.f32.mxu1 %v4330_v13  ;;  %v3923_v38 = vpack.c.bf16 %v4208_v29, %v4203_v35  ;;  %v4216_v42 = vpop.permute.xlu1 %4215  ;;  %v1191_v49 = vsel %vm1190_vm7, %v4202_v41, %v4203_v35  ;;  %v3855_v29 = vld [vmem:[%s6716_s1 + $0x108] sm:$0xff] }
  0xc8   : > { %1005 = vmatprep.mubr.f32.mxu0 %v4330_v13  ;;  %3922 = vmatpush1.bf16.msra.mxu0 %v3921_v28  ;;  %v4211_v43 = vpop.permute.xlu0 %4210  ;;  %v4218_v50 = vunpack.i.h.bf16 %v4216_v42  ;;  %v4217_v54 = vunpack.i.l.bf16 %v4216_v42  ;;  %v3925_v47 = vpack.c.bf16 %v1192_v46, %v1191_v49  ;;  %v3854_v28 = vld [vmem:[%s6716_s1 + $0x100] sm:$0xff] }
  0xc9   : > { %3811 = vmatmul.mubr.msk.f32.gmra.mrb[2].mxu1 %vm251_vm1, %v3807_v36  ;;  %3924 = vmatprep.subr.bf16.mxu0 %v3923_v38  ;;  %v4213_v51 = vunpack.i.h.bf16 %v4211_v43  ;;  %v4212_v55 = vunpack.i.l.bf16 %v4211_v43 }
  0xca   : > { %3898 = vmatpush1.bf16.msra.mxu1 %v3897_v39  ;;  %3836 = vmatmul.mubr.msk.f32.gmra.mrb[4].mxu0 %vm251_vm1, %v3832_v37  ;;  %v1194_v60 = vsel %vm1190_vm7, %v4217_v54, %v4218_v50 }
  0xcb   : > { %3939 = vmatprep.subr.bf16.mxu1 %v4538_v9  ;;  %576 = vmatprep.mubr.f32.mxu1 %v4330_v13  ;;  %v3809_v9 = vld [vmem:[%s6716_s1 + $0x58] sm:$0xff]  ;;  %v4226_v56 = vpop.permute.xlu1 %4225  ;;  %v3927_v59 = vpack.c.bf16 %v4218_v50, %v4213_v51  ;;  %v1193_v61 = vsel %vm1190_vm7, %v4212_v55, %v4213_v51 }
  0xcc   : > { %1011 = vmatprep.mubr.f32.mxu0 %v4330_v13  ;;  %v4221_v57 = vpop.permute.xlu0 %4220  ;;  %v4228_v62 = vunpack.i.h.bf16 %v4226_v56  ;;  %v3929_v48 = vpack.c.bf16 %v1194_v60, %v1193_v61  ;;  %v4227_v5 = vunpack.i.l.bf16 %v4226_v56 }
  0xcd   : > { %3812 = vmatmul.mubr.msk.f32.gmra.mrb[4].mxu1 %vm251_vm1, %v3808_v44  ;;  %v4223_v63 = vunpack.i.h.bf16 %v4221_v57  ;;  %v4222_v6 = vunpack.i.l.bf16 %v4221_v57 }
  0xce   : > { %3837 = vmatmul.mubr.msk.f32.gmra.mrb[6].mxu0 %vm251_vm1, %v3833_v45  ;;  %582 = vmatprep.mubr.f32.mxu1 %v4330_v13  ;;  %v1335_v8 = vsel %vm1333_vm8, %v4227_v5, %v4228_v62 }
  0xcf   : > { %1136 = vmatprep.mubr.f32.mxu0 %v4330_v13  ;;  %v3931_v2 = vpack.c.bf16 %v4228_v62, %v4223_v63  ;;  %v1334_v10 = vsel %vm1333_vm8, %v4222_v6, %v4223_v63  ;;  %v1707_v62 = vlaneseq }
  0xd0   : > { %v4231_v7 = vpop.permute.xlu0 %4230  ;;  %v3933_v19 = vpack.c.bf16 %v1335_v8, %v1334_v10 }
  0xd1   : > { %3813 = vmatmul.mubr.msk.f32.gmra.mrb[6].mxu1 %vm251_vm1, %v3809_v9  ;;  %v4233_v14 = vunpack.i.h.bf16 %v4231_v7  ;;  %v4232_v16 = vunpack.i.l.bf16 %v4231_v7  ;;  %v4759_v7 = vshrl.u32 %v1707_v62, 7 }
  0xd2   : > { %3842 = vmatmul.mubr.msk.f32.vlgmr.msra.gmra.mrb[0].mxu0 %vm251_vm1, %v3838_v58  ;;  %707 = vmatprep.mubr.f32.mxu1 %v4330_v13 }
  0xd3   : > { %3926 = vmatpush1.bf16.msra.mxu0 %v3925_v47  ;;  %1142 = vmatprep.mubr.f32.mxu0 %v4330_v13  ;;  %v1336_v21 = vsel %vm1333_vm8, %v4232_v16, %v4233_v14 }
  0xd4   : > { %3928 = vmatprep.subr.bf16.mxu0 %v3927_v59 }
  0xd5   : > { %3818 = vmatmul.mubr.msk.f32.vlgmr.msra.gmra.mrb[0].mxu1 %vm251_vm1, %v3814_v1 }
  0xd6   : > { %3941 = vmatpush1.bf16.msra.mxu1 %v4541_v15  ;;  %3843 = vmatmul.mubr.msk.f32.gmra.mrb[2].mxu0 %vm251_vm1, %v3839_v0  ;;  %v4236_v15 = vpop.permute.xlu1 %4235 }
  0xd7   : > { %3940 = vmatprep.subr.bf16.mxu1 %v4553_v24  ;;  %713 = vmatprep.mubr.f32.mxu1 %v4330_v13  ;;  %v3816_v24 = vld [vmem:[%s6716_s1 + $0x70] sm:$0xff]  ;;  %v4238_v12 = vunpack.i.h.bf16 %v4236_v15 }
  0xd8   : > { %1148 = vmatprep.mubr.f32.mxu0 %v4330_v13  ;;  %3930 = vmatpush1.bf16.msra.mxu0 %v3929_v48 }
  0xd9   : > { %3819 = vmatmul.mubr.msk.f32.gmra.mrb[2].mxu1 %vm251_vm1, %v3815_v3  ;;  %3932 = vmatprep.subr.bf16.mxu0 %v3931_v2  ;;  %v3935_v22 = vpack.c.bf16 %v4238_v12, %v4233_v14 }
  0xda   : > { %3942 = vmatpush1.bf16.msra.mxu1 %v4556_v30  ;;  %3844 = vmatmul.mubr.msk.f32.gmra.mrb[4].mxu0 %vm251_vm1, %v3840_v4  ;;  %v4237_v30 = vunpack.i.l.bf16 %v4236_v15 }
  0xdb   : > { %719 = vmatprep.mubr.f32.mxu1 %v4330_v13  ;;  %1154 = vmatprep.mubr.f32.mxu0 %v4330_v13 }
  0xdc   : > { %v1337_v20 = vsel %vm1333_vm8, %v4237_v30, %v4238_v12 }
  0xdd   : > { %3820 = vmatmul.mubr.msk.f32.gmra.mrb[4].mxu1 %vm251_vm1, %v3816_v24  ;;  %v3937_v53 = vpack.c.bf16 %v1337_v20, %v1336_v21 }
  0xde   : > { %3845 = vmatmul.mubr.msk.f32.gmra.mrb[6].mxu0 %vm251_vm1, %v3841_v11  ;;  %725 = vmatprep.mubr.f32.mxu1 %v4330_v13  ;;  %v4339_v11 = vmov 1966171168  }
  0xdf   : > { %1279 = vmatprep.mubr.f32.mxu0 %v4330_v13  ;;  %v4761_v12 = vunpack.c.l.s4 %v4339_v11 }
  0xe0   : > { %v1463_v50 = vpop.permute.xlu1 %1462 }
  0xe1   : > { %3821 = vmatmul.mubr.msk.f32.gmra.mrb[6].mxu1 %vm251_vm1, %v3817_v17  ;;  %v1458_v44 = vpop.permute.xlu0 %1457 }
  0xe2   : > { %3850 = vmatmul.mubr.msk.f32.vlgmr.msra.gmra.mrb[0].mxu0 %vm251_vm1, %v3846_v18  ;;  %862 = vmatprep.mubr.f32.mxu1 %v4330_v13 }
  0xe3   : > { %3934 = vmatpush1.bf16.msra.mxu0 %v3933_v19  ;;  %1285 = vmatprep.mubr.f32.mxu0 %v4330_v13  ;;  %v4764_v19 = vsub.s32 0, %v4759_v7 }
  0xe4   : > { %3936 = vmatprep.subr.bf16.mxu0 %v3935_v22  ;;  %v1468_v14 = vpop.permute.xlu1 %1467 }
  0xe5   : > { %3828 = vmatmul.mubr.msk.f32.vlgmr.msra.gmra.mrb[4].mxu1 %vm251_vm1, %v3824_v52 }
  0xe6   : > { %3851 = vmatmul.mubr.msk.f32.gmra.mrb[2].mxu0 %vm251_vm1, %v3847_v23  ;;  %868 = vmatprep.mubr.f32.mxu1 %v4330_v13 }
  0xe7   : > { %1291 = vmatprep.mubr.f32.mxu0 %v4330_v13  ;;  %3938 = vmatpush1.bf16.msra.mxu0 %v3937_v53 }
  0xe9   : > { %3829 = vmatmul.mubr.msk.f32.gmra.mrb[6].mxu1 %vm251_vm1, %v3825_v25 }
  0xea   : > { %3852 = vmatmul.mubr.msk.f32.gmra.mrb[4].mxu0 %vm251_vm1, %v3848_v26  ;;  %v1473_v26 = vpop.permute.xlu0 %1472 }
  0xeb   : > { %1297 = vmatprep.mubr.f32.mxu0 %v4330_v13 }
  0xee   : > { %3853 = vmatmul.mubr.msk.f32.gmra.mrb[6].mxu0 %vm251_vm1, %v3849_v27 }
  0xef   : > { %1422 = vmatprep.mubr.f32.mxu0 %v4330_v13 }
  0xf2   : > { %3858 = vmatmul.mubr.msk.f32.vlgmr.msra.gmra.mrb[0].mxu0 %vm251_vm1, %v3854_v28 }
  0xf3   : > { %1428 = vmatprep.mubr.f32.mxu0 %v4330_v13 }
  0xf6   : > { %3859 = vmatmul.mubr.msk.f32.gmra.mrb[2].mxu0 %vm251_vm1, %v3855_v29  ;;  %v4767_v29 = vsub.s32 1, %v4759_v7 }
  0xf7   : > { %1434 = vmatprep.mubr.f32.mxu0 %v4330_v13 }
  0xfa   : > { %3860 = vmatmul.mubr.msk.f32.gmra.mrb[4].mxu0 %vm251_vm1, %v3856_v31 }
  0xfb   : > { %1440 = vmatprep.mubr.f32.mxu0 %v4330_v13 }
  0xfe   : > { %3861 = vmatmul.mubr.msk.f32.gmra.mrb[6].mxu0 %vm251_vm1, %v3857_v32 }
 0x1a8   : > { %v709_v33 = vpop.f32.mrb[0].mxu1 }
 0x1a9   : > { %v711_v34 = vpop.f32.mrb[1].mxu1 }
 0x1ac   : > { %v715_v35 = vpop.f32.mrb[2].mxu1 }
 0x1ad   : > { %v717_v36 = vpop.f32.mrb[3].mxu1 }
 0x1b8   : > { %v864_v37 = vpop.f32.mrb[4].mxu1 }
 0x1b9   : > { %v866_v38 = vpop.f32.mrb[5].mxu1 }
 0x1bc   : > { %v870_v39 = vpop.f32.mrb[6].mxu1 }
 0x1bd   : > { %v872_v40 = vpop.f32.mrb[7].mxu1 }
 0x1c5   : > { %v1424_v41 = vpop.f32.mrb[0].mxu0 }
 0x1c6   : > { %v3943_v42 = vadd.f32 %v1424_v41, %v709_v33  ;;  %v1426_v43 = vpop.f32.mrb[1].mxu0 }
 0x1c7   : > { %v3944_v45 = vadd.f32 %v1426_v43, %v711_v34 }
 0x1c8   : > { %v1475_v13 = vadd.f32 %v3943_v42, %v1458_v44 }
 0x1c9   : > { %v1476_v46 = vadd.f32 %v3944_v45, %v1458_v44  ;;  %v1430_v49 = vpop.f32.mrb[2].mxu0 }
 0x1ca   : > { %v4747_v51 = vmul.f32 0.70710677, %v1475_v13  ;;  %v3945_v54 = vadd.f32 %v1430_v49, %v715_v35  ;;  %v1432_v55 = vpop.f32.mrb[3].mxu0  ;;  %v4769_v31 = vmul.f32 0.5, %v1475_v13 }
 0x1cb   : > { %v4749_v9 = vmul.f32 0.70710677, %v1476_v46  ;;  %v3946_v56 = vadd.f32 %v1432_v55, %v717_v36  ;;  %v4773_v36 = vmul.f32 0.5, %v1476_v46  ;;  %v1706_v46 = vunpack.c.0.s8 %v4761_v12 }
 0x1cc   : > { %v1499_v57 = vand.u32 2147483647, %v4747_v51  ;;  %v1477_v58 = vadd.f32 %v3945_v54, %v1463_v50  ;;  %vm1659_vm9 = vcmp.ge.f32.partialorder %v4747_v51, 0.0 }
 0x1cd   : > { %v1500_v47 = vand.u32 2147483647, %v4749_v9  ;;  %v1478_v59 = vadd.f32 %v3946_v56, %v1463_v50  ;;  %v1436_v60 = vpop.f32.mrb[4].mxu0  ;;  %vm1660_vm10 = vcmp.ge.f32.partialorder %v4749_v9, 0.0 }
 0x1ce   : > { %v1507_v61 = vmul.f32 0.3275911, %v1499_v57  ;;  %v4753_v63 = vmul.f32 0.70710677, %v1477_v58  ;;  %v1438_v3 = vpop.f32.mrb[5].mxu0  ;;  %v1611_v4 = vsub.f32 0.0, %v1499_v57  ;;  %v3947_v18 = vadd.f32 %v1436_v60, %v864_v37 }
 0x1cf   : > { %v1508_v1 = vmul.f32 0.3275911, %v1500_v47  ;;  %v4755_v0 = vmul.f32 0.70710677, %v1478_v59  ;;  %v1612_v24 = vsub.f32 0.0, %v1500_v47  ;;  %v3948_v52 = vadd.f32 %v1438_v3, %v866_v38 }
 0x1d0   : > { %v1515_v48 = vadd.f32 1.0, %v1507_v61  ;;  %v1501_v2 = vand.u32 2147483647, %v4753_v63  ;;  %v1619_v20 = vmul.f32 %v1611_v4, %v1499_v57  ;;  %v1479_v53 = vadd.f32 %v3947_v18, %v1468_v14 }
 0x1d1   : > { %v1516_v5 = vadd.f32 1.0, %v1508_v1  ;;  %v1502_v6 = vand.u32 2147483647, %v4755_v0  ;;  %v1442_v15 = vpop.f32.mrb[6].mxu0  ;;  %v1620_v23 = vmul.f32 %v1612_v24, %v1500_v47  ;;  %v1480_v27 = vadd.f32 %v3948_v52, %v1468_v14 }
 0x1d2   : > { %4241 = vrcp.f32 %v1515_v48  ;;  %v1509_v8 = vmul.f32 0.3275911, %v1501_v2  ;;  %v1444_v10 = vpop.f32.mrb[7].mxu0  ;;  %v1613_v17 = vsub.f32 0.0, %v1501_v2  ;;  %v3949_v25 = vadd.f32 %v1442_v15, %v870_v39 }
 0x1d3   : > { %4243 = vrcp.f32 %v1516_v5  ;;  %v1510_v30 = vmul.f32 0.3275911, %v1502_v6  ;;  %v1614_v22 = vsub.f32 0.0, %v1502_v6  ;;  %v3950_v28 = vadd.f32 %v1444_v10, %v872_v40 }
 0x1d4   : > { %v1517_v16 = vadd.f32 1.0, %v1509_v8  ;;  %v1621_v32 = vmul.f32 %v1613_v17, %v1501_v2  ;;  %v4771_v33 = vmul.f32 0.70710677, %v1479_v53  ;;  %v1481_v34 = vadd.f32 %v3949_v25, %v1473_v26 }
 0x1d5   : > { %v1518_v21 = vadd.f32 1.0, %v1510_v30  ;;  %v1627_v35 = vmul.f32 1.442695, %v1619_v20  ;;  %v1622_v37 = vmul.f32 %v1614_v22, %v1502_v6  ;;  %v4775_v38 = vmul.f32 0.70710677, %v1480_v27 }
 0x1d6   : > { %4245 = vrcp.f32 %v1517_v16  ;;  %v1629_v39 = vmul.f32 1.442695, %v1620_v23  ;;  %v1503_v41 = vand.u32 2147483647, %v4771_v33  ;;  %v4778_v42 = vmul.f32 0.70710677, %v1481_v34 }
 0x1d7   : > { %4247 = vrcp.f32 %v1518_v21  ;;  %v4780_v40 = vmul.f32 0.5, %v1477_v58  ;;  %v4782_v43 = vmul.f32 0.5, %v1478_v59  ;;  %v1504_v44 = vand.u32 2147483647, %v4775_v38 }
 0x1d8   : > { %v1482_v45 = vadd.f32 %v3950_v28, %v1473_v26  ;;  %v1631_v49 = vmul.f32 1.442695, %v1621_v32  ;;  %v1511_v50 = vmul.f32 0.3275911, %v1503_v41  ;;  %v1505_v54 = vand.u32 2147483647, %v4778_v42 }
 0x1d9   : > { %4249 = vpow2.f32 %v1627_v35  ;;  %v1633_v57 = vmul.f32 1.442695, %v1622_v37  ;;  %v1512_v58 = vmul.f32 0.3275911, %v1504_v44  ;;  %v4793_v62 = vmul.f32 0.5, %v1479_v53 }
 0x1da   : > { %4251 = vpow2.f32 %v1629_v39  ;;  %v1519_v59 = vadd.f32 1.0, %v1511_v50  ;;  %v1513_v60 = vmul.f32 0.3275911, %v1505_v54  ;;  %v4795_v48 = vmul.f32 0.70710677, %v1482_v45 }
 0x1db   : > { %v1520_v1 = vadd.f32 1.0, %v1512_v58  ;;  %v1615_v4 = vsub.f32 0.0, %v1503_v41  ;;  %v1616_v8 = vsub.f32 0.0, %v1504_v44  ;;  %v4805_v30 = vmul.f32 0.5, %v1480_v27 }
 0x1dc   : > { %v4785_v13 = vpop.eup %4241  ;;  %4253 = vrcp.f32 %v1519_v59  ;;  %v1521_v5 = vadd.f32 1.0, %v1513_v60  ;;  %v1617_v14 = vsub.f32 0.0, %v1505_v54  ;;  %v1506_v18 = vand.u32 2147483647, %v4795_v48 }
 0x1dd   : > { %v4789_v55 = vpop.eup %4243  ;;  %v1539_v56 = vmul.f32 1.0614054, %v4785_v13  ;;  %4255 = vrcp.f32 %v1520_v1  ;;  %v1623_v22 = vmul.f32 %v1615_v4, %v1503_v41  ;;  %v1624_v53 = vmul.f32 %v1616_v8, %v1504_v44 }
 0x1de   : > { %v1540_v47 = vmul.f32 1.0614054, %v4789_v55  ;;  %4257 = vpow2.f32 %v1631_v49  ;;  %v1514_v25 = vmul.f32 0.3275911, %v1506_v18  ;;  %v4812_v28 = vmul.f32 0.5, %v1481_v34 }
 0x1df   : > { %v1547_v61 = vadd.f32 -1.4531521, %v1539_v56  ;;  %4259 = vrcp.f32 %v1521_v5  ;;  %v1625_v32 = vmul.f32 %v1617_v14, %v1505_v54  ;;  %v4814_v49 = vmul.f32 0.5, %v1482_v45 }
 0x1e0   : > { %v4797_v2 = vpop.eup %4245  ;;  %v1548_v3 = vadd.f32 -1.4531521, %v1540_v47  ;;  %v1522_v41 = vadd.f32 1.0, %v1514_v25  ;;  %4261 = vpow2.f32 %v1633_v57  ;;  %v1635_v47 = vmul.f32 1.442695, %v1623_v22 }
 0x1e1   : > { %v4799_v6 = vpop.eup %4247  ;;  %v1555_v15 = vmul.f32 %v4785_v13, %v1547_v61  ;;  %v1541_v24 = vmul.f32 1.0614054, %v4797_v2  ;;  %v1637_v60 = vmul.f32 1.442695, %v1624_v53  ;;  %v1639_v45 = vmul.f32 1.442695, %v1625_v32 }
 0x1e2   : > { %v1556_v10 = vmul.f32 %v4789_v55, %v1548_v3  ;;  %v1542_v11 = vmul.f32 1.0614054, %v4799_v6  ;;  %4263 = vrcp.f32 %v1522_v41  ;;  %v1618_v1 = vsub.f32 0.0, %v1506_v18 }
 0x1e3   : > { %v1563_v16 = vadd.f32 1.4214138, %v1555_v15  ;;  %v1549_v17 = vadd.f32 -1.4531521, %v1541_v24  ;;  %v4250_v35 = vpop.eup %4249  ;;  %v4827_v57 = vsub.s32 %v1706_v46, %v4759_v7  ;;  %4265 = vpow2.f32 %v1635_v47 }
 0x1e4   : > { %v1564_v20 = vadd.f32 1.4214138, %v1556_v10  ;;  %v1550_v21 = vadd.f32 -1.4531521, %v1542_v11  ;;  %v4252_v50 = vpop.eup %4251  ;;  %4267 = vpow2.f32 %v1637_v60  ;;  %vm1661_vm11 = vcmp.ge.f32.partialorder %v4753_v63, 0.0 }
 0x1e5   : > { %v1571_v52 = vmul.f32 %v4785_v13, %v1563_v16  ;;  %v1557_v23 = vmul.f32 %v4797_v2, %v1549_v17  ;;  %4269 = vpow2.f32 %v1639_v45  ;;  %vm1662_vm12 = vcmp.ge.f32.partialorder %v4755_v0, 0.0 }
 0x1e6   : > { %v1572_v26 = vmul.f32 %v4789_v55, %v1564_v20  ;;  %v1558_v27 = vmul.f32 %v4799_v6, %v1550_v21  ;;  %v4818_v34 = vpop.eup %4253  ;;  %v1626_v21 = vmul.f32 %v1618_v1, %v1506_v18  ;;  %vm1663_vm14 = vcmp.ge.f32.partialorder %v4771_v33, 0.0 }
 0x1e7   : > { %v1579_v37 = vadd.f32 -0.28449672, %v1571_v52  ;;  %v1565_v39 = vadd.f32 1.4214138, %v1557_v23  ;;  %v4822_v3 = vpop.eup %4255  ;;  %v1543_v15 = vmul.f32 1.0614054, %v4818_v34 }
 0x1e8   : > { %v1580_v56 = vadd.f32 -0.28449672, %v1572_v26  ;;  %v1566_v58 = vadd.f32 1.4214138, %v1558_v27  ;;  %v1544_v10 = vmul.f32 1.0614054, %v4822_v3  ;;  %v4258_v11 = vpop.eup %4257 }
 0x1e9   : > { %v1587_v44 = vmul.f32 %v4785_v13, %v1579_v37  ;;  %v1573_v59 = vmul.f32 %v4797_v2, %v1565_v39  ;;  %v1551_v12 = vadd.f32 -1.4531521, %v1543_v15  ;;  %v4835_v7 = vpop.eup %4259  ;;  %vm1664_vm15 = vcmp.ge.f32.partialorder %v4775_v38, 0.0 }
 0x1ea   : > { %v1588_v54 = vmul.f32 %v4789_v55, %v1580_v56  ;;  %v1574_v61 = vmul.f32 %v4799_v6, %v1566_v58  ;;  %v1552_v20 = vadd.f32 -1.4531521, %v1544_v10  ;;  %vm1665_vm0 = vcmp.ge.f32.partialorder %v4778_v42, 0.0 }
 0x1eb   : > { %v1595_v4 = vadd.f32 0.2548296, %v1587_v44  ;;  %v1581_v5 = vadd.f32 -0.28449672, %v1573_v59  ;;  %v1559_v23 = vmul.f32 %v4818_v34, %v1551_v12  ;;  %vm1666_vm1 = vcmp.ge.f32.partialorder %v4795_v48, 0.0 }
 0x1ec   : > { %v1596_v24 = vadd.f32 0.2548296, %v1588_v54  ;;  %v1582_v8 = vadd.f32 -0.28449672, %v1574_v61  ;;  %v1560_v26 = vmul.f32 %v4822_v3, %v1552_v20 }
 0x1ed   : > { %v1603_v14 = vmul.f32 %v4785_v13, %v1595_v4  ;;  %v1589_v16 = vmul.f32 %v4797_v2, %v1581_v5  ;;  %v1545_v13 = vmul.f32 1.0614054, %v4835_v7  ;;  %v1567_v32 = vadd.f32 1.4214138, %v1559_v23 }
 0x1ee   : > { %v1604_v46 = vmul.f32 %v4789_v55, %v1596_v24  ;;  %v1590_v17 = vmul.f32 %v4799_v6, %v1582_v8  ;;  %v1568_v41 = vadd.f32 1.4214138, %v1560_v26 }
 0x1ef   : > { %v1643_v22 = vmul.f32 %v4250_v35, %v1603_v14  ;;  %v1597_v52 = vadd.f32 0.2548296, %v1589_v16  ;;  %v1553_v18 = vadd.f32 -1.4531521, %v1545_v13  ;;  %v4262_v35 = vpop.eup %4261  ;;  %v1575_v44 = vmul.f32 %v4818_v34, %v1567_v32 }
 0x1f0   : > { %v1644_v53 = vmul.f32 %v4252_v50, %v1604_v46  ;;  %v1598_v25 = vadd.f32 0.2548296, %v1590_v17  ;;  %v4846_v50 = vmul.f32 1.442695, %v1626_v21  ;;  %v4848_v56 = vpop.eup %4263  ;;  %v1576_v54 = vmul.f32 %v4822_v3, %v1568_v41 }
 0x1f1   : > { %v1651_v27 = vsub.f32 1.0, %v1643_v22  ;;  %v1605_v55 = vmul.f32 %v4797_v2, %v1597_v52  ;;  %v1561_v2 = vmul.f32 %v4835_v7, %v1553_v18  ;;  %v1546_v61 = vmul.f32 1.0614054, %v4848_v56  ;;  %v4266_v5 = vpop.eup %4265 }
 0x1f2   : > { %v1652_v37 = vsub.f32 1.0, %v1644_v53  ;;  %v1606_v39 = vmul.f32 %v4799_v6, %v1598_v25  ;;  %v1583_v1 = vadd.f32 -0.28449672, %v1575_v44  ;;  %v1584_v10 = vadd.f32 -0.28449672, %v1576_v54 }
 0x1f3   : > { %v1667_v58 = vsub.f32 0.0, %v1651_v27  ;;  %v1645_v47 = vmul.f32 %v4258_v11, %v1605_v55  ;;  %v1569_v4 = vadd.f32 1.4214138, %v1561_v2  ;;  %v4268_v11 = vpop.eup %4267  ;;  %v1554_v21 = vadd.f32 -1.4531521, %v1546_v61 }
 0x1f4   : > { %v1668_v59 = vsub.f32 0.0, %v1652_v37  ;;  %v1646_v60 = vmul.f32 %v4262_v35, %v1606_v39  ;;  %v1591_v12 = vmul.f32 %v4818_v34, %v1583_v1  ;;  %v1592_v20 = vmul.f32 %v4822_v3, %v1584_v10  ;;  %v4270_v13 = vpop.eup %4269 }
 0x1f5   : > { %v1675_v6 = vsel %vm1659_vm9, %v1651_v27, %v1667_v58  ;;  %v1653_v45 = vsub.f32 1.0, %v1645_v47  ;;  %v1577_v46 = vmul.f32 %v4835_v7, %v1569_v4  ;;  %4271 = vpow2.f32 %v4846_v50 }
 0x1f6   : > { %v1683_v15 = vadd.f32 1.0, %v1675_v6  ;;  %v1676_v24 = vsel %vm1660_vm10, %v1652_v37, %v1668_v59  ;;  %v1654_v8 = vsub.f32 1.0, %v1646_v60  ;;  %v1599_v52 = vadd.f32 0.2548296, %v1591_v12 }
 0x1f7   : > { %v1684_v14 = vadd.f32 1.0, %v1676_v24  ;;  %v1669_v16 = vsub.f32 0.0, %v1653_v45  ;;  %v1585_v23 = vadd.f32 -0.28449672, %v1577_v46  ;;  %v1600_v55 = vadd.f32 0.2548296, %v1592_v20 }
 0x1f8   : > { %v4864_v51 = vmul.f32 %v1683_v15, %v4769_v31  ;;  %v1670_v17 = vsub.f32 0.0, %v1654_v8  ;;  %v1607_v39 = vmul.f32 %v4818_v34, %v1599_v52 }
 0x1f9   : > { %v4868_v9 = vmul.f32 %v1684_v14, %v4773_v36  ;;  %v1677_v22 = vsel %vm1661_vm11, %v1653_v45, %v1669_v16  ;;  %v1608_v41 = vmul.f32 %v4822_v3, %v1600_v55  ;;  %v1593_v58 = vmul.f32 %v4835_v7, %v1585_v23 }
 0x1fa   : > { %v1703_v53 = vcombine.high %v4864_v51, %v4864_v51  ;;  %v1710_v31 = vrot.slane %v4864_v51, %v4827_v57  ;;  %v1678_v25 = vsel %vm1662_vm12, %v1654_v8, %v1670_v17  ;;  %v1685_v26 = vadd.f32 1.0, %v1677_v22 }
 0x1fb   : > { %v2864_v36 = vcombine.low %v4864_v51, %v4868_v9  ;;  %v2865_v63 = vcombine.high %v4864_v51, %v4868_v9  ;;  %v1686_v27 = vadd.f32 1.0, %v1678_v25  ;;  %v1647_v59 = vmul.f32 %v4266_v5, %v1607_v39 }
 0x1fc   : > { %v1717_v32 = vrot.slane %v1703_v53, %v4827_v57  ;;  %v1718_v18 = vcombine.high %v1710_v31, %v1710_v31  ;;  %v1726_v35 = vrot.slane %v1710_v31, %v4827_v57  ;;  %v1693_v37 = vmul.f32 %v1685_v26, %v4780_v40 }
 0x1fd   : > { %v1694_v0 = vmul.f32 %v1686_v27, %v4782_v43  ;;  %v1648_v61 = vmul.f32 %v4268_v11, %v1608_v41  ;;  %v1601_v6 = vadd.f32 0.2548296, %v1593_v58  ;;  %v1655_v8 = vsub.f32 1.0, %v1647_v59 }
 0x1fe   : > { %v1719_v47 = vcombine.high %v1717_v32, %v1717_v32  ;;  %v4892_v44 = vrot.slane %v1717_v32, %v4827_v57  ;;  %v1740_v2 = vrot.slane %v1718_v18, %v4827_v57  ;;  %1932 = vst.msk [vmem:[%s4896_s24] sm:$0x1] %vm1931_vm13, %v1726_v35  ;;  %v1752_v40 = vcombine.high %v1693_v37, %v1693_v37 }
 0x1ff   : > { %v1759_v43 = vrot.slane %v1693_v37, %v4827_v57  ;;  %v2914_v34 = vcombine.low %v1693_v37, %v1694_v0  ;;  %v2915_v3 = vcombine.high %v1693_v37, %v1694_v0  ;;  %v1656_v10 = vsub.f32 1.0, %v1648_v61 }
 0x200   : > { %v4902_v60 = vrot.slane %v1719_v47, %v4827_v57  ;;  %1933 = vst.msk [vmem:[%s4896_s24 + $0x8] sm:$0x1] %vm1931_vm13, %v1740_v2  ;;  %1936 = vst.msk [vmem:[%s4896_s24 + $0x20] sm:$0x1] %vm1931_vm13, %v4892_v44  ;;  %v1766_v54 = vrot.slane %v1752_v40, %v4827_v57  ;;  %v1609_v14 = vmul.f32 %v4835_v7, %v1601_v6  ;;  %v1671_v12 = vsub.f32 0.0, %v1655_v8  ;;  %v4272_v40 = vpop.eup %4271 }
 0x201   : > { %v1767_v45 = vcombine.high %v1759_v43, %v1759_v43  ;;  %v4911_v1 = vrot.slane %v1759_v43, %v4827_v57  ;;  %v4914_v4 = vrot.slane %v2914_v34, %v4827_v57  ;;  %v4917_v5 = vrot.slane %v2915_v3, %v4827_v57 }
 0x202   : > { %1937 = vst.msk [vmem:[%s4896_s24 + $0x28] sm:$0x1] %vm1931_vm13, %v4902_v60  ;;  %v1768_v15 = vcombine.high %v1766_v54, %v1766_v54  ;;  %v4923_v24 = vrot.slane %v1766_v54, %v4827_v57  ;;  %v1672_v46 = vsub.f32 0.0, %v1656_v10  ;;  %v1562_v17 = vmul.f32 %v4848_v56, %v1554_v21 }
 0x203   : > { %v4926_v11 = vrot.slane %v1767_v45, %v4827_v57  ;;  %1940 = vst.msk [vmem:[%s4896_s24 + $0x40] sm:$0x1] %vm1931_vm13, %v4911_v1  ;;  %v1649_v20 = vmul.f32 %v4270_v13, %v1609_v14  ;;  %v4945_v7 = vrot.slane %v1726_v35, %v4764_v19  ;;  %v4948_v50 = vrot.slane %v1740_v2, %v4764_v19 }
 0x204   : > { %v4935_v16 = vrot.slane %v1768_v15, %v4827_v57  ;;  %1944 = vst.msk [vmem:[%s4896_s24 + $0x60] sm:$0x1] %vm1931_vm13, %v4923_v24  ;;  %v1748_v22 = vcombine.high %v1726_v35, %v1726_v35  ;;  %v1679_v52 = vsel %vm1663_vm14, %v1655_v8, %v1671_v12  ;;  %v1680_v21 = vsel %vm1664_vm15, %v1656_v10, %v1672_v46 }
 0x205   : > { %1941 = vst.msk [vmem:[%s4896_s24 + $0x48] sm:$0x1] %vm1931_vm13, %v4926_v11  ;;  %v1570_v23 = vadd.f32 1.4214138, %v1562_v17  ;;  %v4958_v53 = vrot.slane %v2864_v36, %v4827_v57  ;;  %v2930_v13 = vcombine.high %v4914_v4, %v4914_v4  ;;  %v1687_v31 = vadd.f32 1.0, %v1679_v52  ;;  %2092 = vrot.lane.b32.xlu1 %v4945_v7, %s4332_s21  ;;  %2094 = vrot.lane.b32.xlu0 %v4948_v50, %s4332_s21 }
 0x206   : > { %1945 = vst.msk [vmem:[%s4896_s24 + $0x68] sm:$0x1] %vm1931_vm13, %v4935_v16  ;;  %v1688_v25 = vadd.f32 1.0, %v1680_v21  ;;  %v1657_v26 = vsub.f32 1.0, %v1649_v20  ;;  %1934 = vst.msk [vmem:[%s4896_s24 + $0x10] sm:$0x1] %vm1931_vm13, %v1748_v22  ;;  %v2931_v33 = vcombine.high %v4917_v5, %v4917_v5  ;;  %v4979_v27 = vrot.slane %v2865_v63, %v4827_v57 }
 0x207   : > { %v1578_v38 = vmul.f32 %v4848_v56, %v1570_v23  ;;  %v4973_v36 = vrot.slane %v4958_v53, %v4827_v57  ;;  %v1695_v55 = vmul.f32 %v1687_v31, %v4793_v62  ;;  %v1750_v35 = vcombine.high %v1740_v2, %v1740_v2 }
 0x208   : > { %v1696_v32 = vmul.f32 %v1688_v25, %v4805_v30  ;;  %v1673_v18 = vsub.f32 0.0, %v1657_v26  ;;  %v4984_v0 = vrot.slane %v1748_v22, %v4764_v19  ;;  %v4988_v39 = vrot.slane %v4892_v44, %v4764_v19 }
 0x209   : > { %v1586_v37 = vadd.f32 -0.28449672, %v1578_v38  ;;  %v4992_v41 = vrot.slane %v4979_v27, %v4827_v57  ;;  %v1801_v51 = vcombine.high %v1695_v55, %v1695_v55  ;;  %v1808_v9 = vrot.slane %v1695_v55, %v4827_v57  ;;  %2220 = vrot.lane.b32.xlu1 %v4945_v7, %s4335_s25  ;;  %1935 = vst.msk [vmem:[%s4896_s24 + $0x18] sm:$0x1] %vm1931_vm13, %v1750_v35 }
 0x20a   : > { %v2964_v62 = vcombine.low %v1695_v55, %v1696_v32  ;;  %v2965_v63 = vcombine.high %v1695_v55, %v1696_v32  ;;  %v1681_v30 = vsel %vm1665_vm0, %v1657_v26, %v1673_v18  ;;  %2222 = vrot.lane.b32.xlu0 %v4948_v50, %s4335_s25  ;;  %v3071_v47 = vrot.slane %v4973_v36, %v4767_v29 }
 0x20b   : > { %v1594_v58 = vmul.f32 %v4848_v56, %v1586_v37  ;;  %v2881_v2 = vcombine.high %v4979_v27, %v4979_v27  ;;  %v1815_v43 = vrot.slane %v1801_v51, %v4827_v57  ;;  %v1816_v34 = vcombine.high %v1808_v9, %v1808_v9 }
 0x20c   : > { %v5010_v3 = vrot.slane %v1808_v9, %v4827_v57  ;;  %v5013_v42 = vrot.slane %v2964_v62, %v4827_v57  ;;  %v5016_v59 = vrot.slane %v2965_v63, %v4827_v57  ;;  %v1689_v54 = vadd.f32 1.0, %v1681_v30 }
 0x20d   : > { %v1602_v61 = vadd.f32 0.2548296, %v1594_v58  ;;  %v3103_v6 = vrot.slane %v4992_v41, %v4767_v29  ;;  %v1817_v45 = vcombine.high %v1815_v43, %v1815_v43  ;;  %v5021_v15 = vrot.slane %v1815_v43, %v4827_v57  ;;  %2348 = vrot.lane.b32.xlu1 %v4945_v7, %s4340_s26 }
 0x20e   : > { %v5024_v8 = vrot.slane %v1816_v34, %v4827_v57  ;;  %1948 = vst.msk [vmem:[%s4896_s24 + $0x80] sm:$0x1] %vm1931_vm13, %v5010_v3  ;;  %v5033_v10 = vrot.slane %v1750_v35, %v4764_v19  ;;  %v5036_v14 = vmul.f32 %v1689_v54, %v4812_v28  ;;  %2350 = vrot.lane.b32.xlu0 %v4948_v50, %s4340_s26 }
 0x20f   : > { %v1610_v12 = vmul.f32 %v4848_v56, %v1602_v61  ;;  %v5043_v46 = vrot.slane %v4902_v60, %v4764_v19  ;;  %v5048_v20 = vrot.slane %v1817_v45, %v4827_v57  ;;  %1952 = vst.msk [vmem:[%s4896_s24 + $0xa0] sm:$0x1] %vm1931_vm13, %v5021_v15  ;;  %v1749_v56 = vcombine.high %v4892_v44, %v4892_v44 }
 0x210   : > { %1949 = vst.msk [vmem:[%s4896_s24 + $0x88] sm:$0x1] %vm1931_vm13, %v5024_v8  ;;  %v2880_v22 = vcombine.high %v4958_v53, %v4958_v53  ;;  %v1850_v52 = vcombine.high %v5036_v14, %v5036_v14  ;;  %v1857_v21 = vrot.slane %v5036_v14, %v4827_v57  ;;  %v5068_v31 = vrot.slane %v4911_v1, %v4764_v19 }
 0x211   : > { %v1650_v23 = vmul.f32 %v4272_v40, %v1610_v12  ;;  %1953 = vst.msk [vmem:[%s4896_s24 + $0xa8] sm:$0x1] %vm1931_vm13, %v5048_v20  ;;  %2476 = vrot.lane.b32.xlu1 %v4945_v7, %s4341_s28  ;;  %v5076_v44 = vrot.slane %v1749_v56, %v4764_v19  ;;  %1938 = vst.msk [vmem:[%s4896_s24 + $0x30] sm:$0x1] %vm1931_vm13, %v1749_v56  ;;  %v5085_v25 = vcombine.high %v4973_v36, %v4973_v36 }
 0x212   : > { %v5081_v53 = vrot.slane %v2880_v22, %v4827_v57  ;;  %v1751_v26 = vcombine.high %v4902_v60, %v4902_v60  ;;  %v1864_v38 = vrot.slane %v1850_v52, %v4827_v57  ;;  %v1865_v27 = vcombine.high %v1857_v21, %v1857_v21  ;;  %2478 = vrot.lane.b32.xlu0 %v4948_v50, %s4341_s28 }
 0x213   : > { %v5091_v55 = vrot.slane %v1857_v21, %v4827_v57  ;;  %v1658_v32 = vsub.f32 1.0, %v1650_v23  ;;  %v2980_v18 = vcombine.high %v5013_v42, %v5013_v42  ;;  %v2981_v35 = vcombine.high %v5016_v59, %v5016_v59 }
 0x214   : > { %v5100_v37 = vrot.slane %v1751_v26, %v4764_v19  ;;  %1939 = vst.msk [vmem:[%s4896_s24 + $0x38] sm:$0x1] %vm1931_vm13, %v1751_v26  ;;  %v5106_v60 = vrot.slane %v4926_v11, %v4764_v19  ;;  %v1866_v51 = vcombine.high %v1864_v38, %v1864_v38  ;;  %v5109_v9 = vrot.slane %v1864_v38, %v4827_v57 }
 0x215   : > { %v1887_v62 = vrot.slane %v1865_v27, %v4827_v57  ;;  %1956 = vst.msk [vmem:[%s4896_s24 + $0xc0] sm:$0x1] %vm1931_vm13, %v5091_v55  ;;  %v1674_v63 = vsub.f32 0.0, %v1658_v32  ;;  %2604 = vrot.lane.b32.xlu1 %v4945_v7, %s4342_s29  ;;  %v5122_v40 = vrot.slane %v2881_v2, %v4827_v57  ;;  %v5126_v43 = vcombine.high %v5081_v53, %v5081_v53 }
 0x216   : > { %v5129_v34 = vrot.slane %v1866_v51, %v4827_v57  ;;  %1960 = vst.msk [vmem:[%s4896_s24 + $0xe0] sm:$0x1] %vm1931_vm13, %v5109_v9  ;;  %2606 = vrot.lane.b32.xlu0 %v4948_v50, %s4342_s29  ;;  %v1797_v2 = vcombine.high %v4911_v1, %v4911_v1  ;;  %v1799_v61 = vcombine.high %v4926_v11, %v4926_v11 }
 0x217   : > { %1957 = vst.msk [vmem:[%s4896_s24 + $0xc8] sm:$0x1] %vm1931_vm13, %v1887_v62  ;;  %v1682_v54 = vsel %vm1666_vm1, %v1658_v32, %v1674_v63  ;;  %v5150_v48 = vrot.slane %v4923_v24, %v4764_v19  ;;  %v5167_v11 = vrot.slane %v4935_v16, %v4764_v19  ;;  %v1800_v23 = vcombine.high %v4935_v16, %v4935_v16 }
 0x218   : > { %v1690_v45 = vadd.f32 1.0, %v1682_v54  ;;  %1961 = vst.msk [vmem:[%s4896_s24 + $0xe8] sm:$0x1] %vm1931_vm13, %v5129_v34  ;;  %v5156_v22 = vrot.slane %v1797_v2, %v4764_v19  ;;  %1942 = vst.msk [vmem:[%s4896_s24 + $0x50] sm:$0x1] %vm1931_vm13, %v1797_v2  ;;  %v5161_v1 = vrot.slane %v1799_v61, %v4764_v19  ;;  %v1798_v26 = vcombine.high %v4923_v24, %v4923_v24 }
 0x219   : > { %1943 = vst.msk [vmem:[%s4896_s24 + $0x58] sm:$0x1] %vm1931_vm13, %v1799_v61  ;;  %2732 = vrot.lane.b32.xlu1 %v4945_v7, %s4343_s30  ;;  %v5180_v38 = vrot.slane %v5024_v8, %v4764_v19  ;;  %v1848_v7 = vcombine.high %v5024_v8, %v5024_v8  ;;  %v1846_v16 = vcombine.high %v5010_v3, %v5010_v3  ;;  %1947 = vst.msk [vmem:[%s4896_s24 + $0x78] sm:$0x1] %vm1931_vm13, %v1800_v23 }
 0x21a   : > { %v1698_v21 = vmul.f32 %v1690_v45, %v4814_v49  ;;  %2734 = vrot.lane.b32.xlu0 %v4948_v50, %s4343_s30  ;;  %v5186_v49 = vrot.slane %v5010_v3, %v4764_v19  ;;  %v5194_v24 = vrot.slane %v5048_v20, %v4764_v19  ;;  %v5199_v50 = vrot.slane %v1800_v23, %v4764_v19 }
 0x21b   : > { %v5204_v51 = vrot.slane %v1798_v26, %v4764_v19  ;;  %1946 = vst.msk [vmem:[%s4896_s24 + $0x70] sm:$0x1] %vm1931_vm13, %v1798_v26  ;;  %v5209_v3 = vrot.slane %v1848_v7, %v4764_v19  ;;  %1951 = vst.msk [vmem:[%s4896_s24 + $0x98] sm:$0x1] %vm1931_vm13, %v1848_v7  ;;  %v5214_v8 = vrot.slane %v1846_v16, %v4764_v19 }
 0x21c   : > { %v3014_v27 = vcombine.low %v5036_v14, %v1698_v21  ;;  %v3015_v32 = vcombine.high %v5036_v14, %v1698_v21  ;;  %1950 = vst.msk [vmem:[%s4896_s24 + $0x90] sm:$0x1] %vm1931_vm13, %v1846_v16  ;;  %v5220_v14 = vrot.slane %v5021_v15, %v4764_v19  ;;  %v1849_v63 = vcombine.high %v5048_v20, %v5048_v20 }
 0x21d   : > { %2096 = vrot.lane.b32.xlu1 %v4984_v0, %s4332_s21  ;;  %v1847_v61 = vcombine.high %v5021_v15, %v5021_v15  ;;  %v5235_v45 = vrot.slane %v1887_v62, %v4764_v19  ;;  %v5248_v21 = vrot.slane %v5091_v55, %v4764_v19  ;;  %v1897_v15 = vcombine.high %v1887_v62, %v1887_v62 }
 0x21e   : > { %v5225_v54 = vrot.slane %v3014_v27, %v4827_v57  ;;  %v5228_v2 = vrot.slane %v3015_v32, %v4827_v57  ;;  %3322 = vrot.lane.b32.xlu0 %v3071_v47, %s4344_s4  ;;  %v5242_v20 = vrot.slane %v1849_v63, %v4764_v19  ;;  %1955 = vst.msk [vmem:[%s4896_s24 + $0xb8] sm:$0x1] %vm1931_vm13, %v1849_v63 }
 0x21f   : > { %v1895_v23 = vcombine.high %v5091_v55, %v5091_v55  ;;  %v5257_v47 = vrot.slane %v1847_v61, %v4764_v19  ;;  %1954 = vst.msk [vmem:[%s4896_s24 + $0xb0] sm:$0x1] %vm1931_vm13, %v1847_v61  ;;  %v5263_v16 = vrot.slane %v5129_v34, %v4764_v19  ;;  %v5266_v62 = vrot.slane %v1897_v15, %v4764_v19 }
 0x220   : > { %1959 = vst.msk [vmem:[%s4896_s24 + $0xd8] sm:$0x1] %vm1931_vm13, %v1897_v15  ;;  %v5277_v27 = vrot.slane %v5109_v9, %v4764_v19  ;;  %v1898_v32 = vcombine.high %v5129_v34, %v5129_v34  ;;  %v1896_v63 = vcombine.high %v5109_v9, %v5109_v9  ;;  %v5289_v15 = vcombine.high %v4992_v41, %v4992_v41 }
 0x221   : > { %v5271_v55 = vrot.slane %v1895_v23, %v4764_v19  ;;  %1958 = vst.msk [vmem:[%s4896_s24 + $0xd0] sm:$0x1] %vm1931_vm13, %v1895_v23  ;;  %2100 = vrot.lane.b32.xlu1 %v4988_v39, %s4332_s21  ;;  %v5293_v23 = vcombine.high %v5122_v40, %v5122_v40  ;;  %v5306_v9 = vrot.slane %v4914_v4, %v4827_v57 }
 0x222   : > { %3338 = vrot.lane.b32.xlu0 %v3103_v6, %s4344_s4  ;;  %v5300_v34 = vrot.slane %v1898_v32, %v4764_v19  ;;  %1963 = vst.msk [vmem:[%s4896_s24 + $0xf8] sm:$0x1] %vm1931_vm13, %v1898_v32  ;;  %v5312_v61 = vrot.slane %v2930_v13, %v4827_v57  ;;  %v5316_v52 = vrot.slane %v4917_v5, %v4827_v57  ;;  %1962 = vst.msk [vmem:[%s4896_s24 + $0xf0] sm:$0x1] %vm1931_vm13, %v1896_v63 }
 0x223   : > { %v5319_v6 = vrot.slane %v1896_v63, %v4764_v19  ;;  %v5343_v4 = vcombine.high %v5306_v9, %v5306_v9  ;;  %v5359_v56 = vrot.slane %v2931_v33, %v4827_v57  ;;  %v5367_v32 = vrot.slane %v5013_v42, %v4827_v57 }
 0x224   : > { %v5347_v13 = vcombine.high %v5312_v61, %v5312_v61  ;;  %v5363_v12 = vcombine.high %v5316_v52, %v5316_v52  ;;  %v5399_v17 = vrot.slane %v2980_v18, %v4827_v57  ;;  %v5409_v28 = vrot.slane %v5016_v59, %v4827_v57 }
 0x225   : > { %2224 = vrot.lane.b32.xlu1 %v4984_v0, %s4335_s25  ;;  %v5389_v30 = vcombine.high %v5359_v56, %v5359_v56  ;;  %v5405_v58 = vcombine.high %v5367_v32, %v5367_v32  ;;  %v5415_v33 = vrot.slane %v2981_v35, %v4827_v57  ;;  %v5419_v42 = vrot.slane %v5225_v54, %v4827_v57 }
 0x226   : > { %2098 = vrot.lane.b32.xlu0 %v5033_v10, %s4332_s21  ;;  %6731 = vst [vmem:[#allocation4_spill] sm:$0xff] %v5409_v28  ;;  %v5435_v26 = vcombine.high %v5399_v17, %v5399_v17  ;;  %v5449_v35 = vcombine.high %v5409_v28, %v5409_v28  ;;  %v6734_v5 = vcombine.high %v5225_v54, %v5225_v54 }
 0x227   : > { %6730 = vst [vmem:[#allocation3_spill] sm:$0xff] %v5405_v58  ;;  %6732 = vst [vmem:[#allocation5_spill] sm:$0xff] %v5415_v33  ;;  %v5459_v63 = vcombine.high %v5415_v33, %v5415_v33  ;;  %v5481_v7 = vcombine.high %v5419_v42, %v5419_v42  ;;  %v5485_v28 = vrot.slane %v5228_v2, %v4827_v57 }
 0x228   : > { %6733 = vst [vmem:[#allocation6_spill] sm:$0xff] %v5419_v42  ;;  %v5473_v18 = vrot.slane %v6734_v5, %v4827_v57  ;;  %v6736_v59 = vcombine.high %v5228_v2, %v5228_v2 }
 0x229   : > { %2228 = vrot.lane.b32.xlu1 %v4988_v39, %s4335_s25  ;;  %v5523_v54 = vcombine.high %v5485_v28, %v5485_v28 }
 0x22a   : > { %2102 = vrot.lane.b32.xlu0 %v5043_v46, %s4332_s21  ;;  %6735 = vst [vmem:[#allocation7_spill] sm:$0xff] %v5473_v18  ;;  %v5495_v58 = vcombine.high %v5473_v18, %v5473_v18  ;;  %v5501_v33 = vrot.slane %v6736_v59, %v4827_v57  ;;  %v6737_v57 = vrot.slane %v4973_v36, %v4764_v19 }
 0x22b   : > { %v3307_v59 = vrot.slane %v5523_v54, %v4764_v19  ;;  %v3311_v42 = vrot.slane %v5523_v54, %v4767_v29  ;;  %v3087_v36 = vrot.slane %v5085_v25, %v4767_v29 }
 0x22c   : > { %v3283_v2 = vrot.slane %v5495_v58, %v4764_v19  ;;  %v5527_v5 = vcombine.high %v5501_v33, %v5501_v33 }
 0x22d   : > { %2352 = vrot.lane.b32.xlu1 %v4984_v0, %s4340_s26 }
 0x22e   : > { %2226 = vrot.lane.b32.xlu0 %v5033_v10, %s4335_s25  ;;  %v3315_v18 = vrot.slane %v5527_v5, %v4764_v19 }
 0x231   : > { %2356 = vrot.lane.b32.xlu1 %v4988_v39, %s4340_s26 }
 0x232   : > { %2230 = vrot.lane.b32.xlu0 %v5043_v46, %s4335_s25 }
 0x235   : > { %2480 = vrot.lane.b32.xlu1 %v4984_v0, %s4341_s28 }
 0x236   : > { %2354 = vrot.lane.b32.xlu0 %v5033_v10, %s4340_s26 }
 0x239   : > { %2484 = vrot.lane.b32.xlu1 %v4988_v39, %s4341_s28 }
 0x23a   : > { %2358 = vrot.lane.b32.xlu0 %v5043_v46, %s4340_s26 }
 0x23d   : > { %2608 = vrot.lane.b32.xlu1 %v4984_v0, %s4342_s29 }
 0x23e   : > { %2482 = vrot.lane.b32.xlu0 %v5033_v10, %s4341_s28 }
 0x241   : > { %2612 = vrot.lane.b32.xlu1 %v4988_v39, %s4342_s29 }
 0x242   : > { %2486 = vrot.lane.b32.xlu0 %v5043_v46, %s4341_s28 }
 0x245   : > { %2736 = vrot.lane.b32.xlu1 %v4984_v0, %s4343_s30  ;;  %v6738_v0 = vrot.slane %v4992_v41, %v4764_v19 }
 0x246   : > { %2610 = vrot.lane.b32.xlu0 %v5033_v10, %s4342_s29 }
 0x249   : > { %2740 = vrot.lane.b32.xlu1 %v4988_v39, %s4343_s30  ;;  %v3079_v39 = vrot.slane %v5081_v53, %v4767_v29 }
 0x24a   : > { %2614 = vrot.lane.b32.xlu0 %v5043_v46, %s4342_s29 }
 0x24d   : > { %3320 = vrot.lane.b32.xlu1 %v6737_v57, %s4344_s4 }
 0x24e   : > { %2738 = vrot.lane.b32.xlu0 %v5033_v10, %s4343_s30 }
 0x251   : > { %3336 = vrot.lane.b32.xlu1 %v6738_v0, %s4344_s4 }
 0x252   : > { %2742 = vrot.lane.b32.xlu0 %v5043_v46, %s4343_s30 }
 0x255   : > { %2104 = vrot.lane.b32.xlu1 %v5076_v44, %s4332_s21 }
 0x256   : > { %3326 = vrot.lane.b32.xlu0 %v3079_v39, %s4344_s4 }
 0x259   : > { %2108 = vrot.lane.b32.xlu1 %v5068_v31, %s4332_s21 }
 0x25a   : > { %3330 = vrot.lane.b32.xlu0 %v3087_v36, %s4344_s4 }
 0x25d   : > { %2232 = vrot.lane.b32.xlu1 %v5076_v44, %s4335_s25 }
 0x25e   : > { %2106 = vrot.lane.b32.xlu0 %v5100_v37, %s4332_s21 }
 0x261   : > { %2236 = vrot.lane.b32.xlu1 %v5068_v31, %s4335_s25 }
 0x262   : > { %2110 = vrot.lane.b32.xlu0 %v5106_v60, %s4332_s21 }
 0x265   : > { %2360 = vrot.lane.b32.xlu1 %v5076_v44, %s4340_s26 }
 0x266   : > { %2234 = vrot.lane.b32.xlu0 %v5100_v37, %s4335_s25 }
 0x269   : > { %2364 = vrot.lane.b32.xlu1 %v5068_v31, %s4340_s26 }
 0x26a   : > { %2238 = vrot.lane.b32.xlu0 %v5106_v60, %s4335_s25 }
 0x26d   : > { %2488 = vrot.lane.b32.xlu1 %v5076_v44, %s4341_s28 }
 0x26e   : > { %2362 = vrot.lane.b32.xlu0 %v5100_v37, %s4340_s26 }
 0x271   : > { %2492 = vrot.lane.b32.xlu1 %v5068_v31, %s4341_s28 }
 0x272   : > { %2366 = vrot.lane.b32.xlu0 %v5106_v60, %s4340_s26 }
 0x275   : > { %2616 = vrot.lane.b32.xlu1 %v5076_v44, %s4342_s29 }
 0x276   : > { %2490 = vrot.lane.b32.xlu0 %v5100_v37, %s4341_s28 }
 0x277   : > { %v2093_v41 = vpop.permute.xlu1 %2092  ;;  %v2095_v10 = vpop.permute.xlu0 %2094 }
 0x278   : > { %2188 = vst.msk [vmem:[%s4896_s24 + $0x1] sm:$0x1] %vm1931_vm13, %v2093_v41  ;;  %2189 = vst.msk [vmem:[%s4896_s24 + $0x9] sm:$0x1] %vm1931_vm13, %v2095_v10  ;;  %v6739_v41 = vrot.slane %v5081_v53, %v4764_v19 }
 0x279   : > { %2620 = vrot.lane.b32.xlu1 %v5068_v31, %s4342_s29 }
 0x27a   : > { %2494 = vrot.lane.b32.xlu0 %v5106_v60, %s4341_s28 }
 0x27b   : > { %v2221_v46 = vpop.permute.xlu1 %2220 }
 0x27c   : > { %2316 = vst.msk [vmem:[%s4896_s24 + $0x2] sm:$0x1] %vm1931_vm13, %v2221_v46  ;;  %v2223_v57 = vpop.permute.xlu0 %2222  ;;  %v6740_v46 = vrot.slane %v5085_v25, %v4764_v19  ;;  %v6742_v25 = vrot.slane %v5126_v43, %v4767_v29 }
 0x27d   : > { %2317 = vst.msk [vmem:[%s4896_s24 + $0xa] sm:$0x1] %vm1931_vm13, %v2223_v57  ;;  %2744 = vrot.lane.b32.xlu1 %v5076_v44, %s4343_s30  ;;  %v6741_v57 = vrot.slane %v5122_v40, %v4764_v19 }
 0x27e   : > { %2618 = vrot.lane.b32.xlu0 %v5100_v37, %s4342_s29 }
 0x27f   : > { %v2349_v0 = vpop.permute.xlu1 %2348 }
 0x280   : > { %2444 = vst.msk [vmem:[%s4896_s24 + $0x3] sm:$0x1] %vm1931_vm13, %v2349_v0  ;;  %v2351_v39 = vpop.permute.xlu0 %2350 }
 0x281   : > { %2445 = vst.msk [vmem:[%s4896_s24 + $0xb] sm:$0x1] %vm1931_vm13, %v2351_v39  ;;  %2748 = vrot.lane.b32.xlu1 %v5068_v31, %s4343_s30 }
 0x282   : > { %2622 = vrot.lane.b32.xlu0 %v5106_v60, %s4342_s29 }
 0x283   : > { %v2477_v36 = vpop.permute.xlu1 %2476 }
 0x284   : > { %2572 = vst.msk [vmem:[%s4896_s24 + $0x4] sm:$0x1] %vm1931_vm13, %v2477_v36  ;;  %v2479_v44 = vpop.permute.xlu0 %2478 }
 0x285   : > { %2573 = vst.msk [vmem:[%s4896_s24 + $0xc] sm:$0x1] %vm1931_vm13, %v2479_v44  ;;  %3324 = vrot.lane.b32.xlu1 %v6739_v41, %s4344_s4 }
 0x286   : > { %2746 = vrot.lane.b32.xlu0 %v5100_v37, %s4343_s30 }
 0x287   : > { %v2605_v31 = vpop.permute.xlu1 %2604 }
 0x288   : > { %2700 = vst.msk [vmem:[%s4896_s24 + $0x5] sm:$0x1] %vm1931_vm13, %v2605_v31  ;;  %v2607_v10 = vpop.permute.xlu0 %2606 }
 0x289   : > { %2701 = vst.msk [vmem:[%s4896_s24 + $0xd] sm:$0x1] %vm1931_vm13, %v2607_v10  ;;  %3328 = vrot.lane.b32.xlu1 %v6740_v46, %s4344_s4 }
 0x28a   : > { %2750 = vrot.lane.b32.xlu0 %v5106_v60, %s4343_s30 }
 0x28b   : > { %v2733_v53 = vpop.permute.xlu1 %2732 }
 0x28c   : > { %2828 = vst.msk [vmem:[%s4896_s24 + $0x6] sm:$0x1] %vm1931_vm13, %v2733_v53  ;;  %v2735_v37 = vpop.permute.xlu0 %2734 }
 0x28d   : > { %2829 = vst.msk [vmem:[%s4896_s24 + $0xe] sm:$0x1] %vm1931_vm13, %v2735_v37  ;;  %3340 = vrot.lane.b32.xlu1 %v6741_v57, %s4344_s4 }
 0x28e   : > { %3334 = vrot.lane.b32.xlu0 %v6742_v25, %s4344_s4 }
 0x28f   : > { %v2097_v0 = vpop.permute.xlu1 %2096 }
 0x290   : > { %2190 = vst.msk [vmem:[%s4896_s24 + $0x11] sm:$0x1] %vm1931_vm13, %v2097_v0  ;;  %v5669_v60 = vpop.permute.xlu0 %3322 }
 0x291   : > { %2112 = vrot.lane.b32.xlu1 %v5156_v22, %s4332_s21 }
 0x292   : > { %2114 = vrot.lane.b32.xlu0 %v5161_v1, %s4332_s21 }
 0x293   : > { %v2101_v39 = vpop.permute.xlu1 %2100 }
 0x294   : > { %2192 = vst.msk [vmem:[%s4896_s24 + $0x21] sm:$0x1] %vm1931_vm13, %v2101_v39  ;;  %v5677_v36 = vpop.permute.xlu0 %3338 }
 0x295   : > { %2116 = vrot.lane.b32.xlu1 %v5150_v48, %s4332_s21 }
 0x296   : > { %2118 = vrot.lane.b32.xlu0 %v5167_v11, %s4332_s21 }
 0x297   : > { %v2225_v44 = vpop.permute.xlu1 %2224 }
 0x298   : > { %2318 = vst.msk [vmem:[%s4896_s24 + $0x12] sm:$0x1] %vm1931_vm13, %v2225_v44  ;;  %v2099_v41 = vpop.permute.xlu0 %2098 }
 0x299   : > { %2191 = vst.msk [vmem:[%s4896_s24 + $0x19] sm:$0x1] %vm1931_vm13, %v2099_v41  ;;  %2240 = vrot.lane.b32.xlu1 %v5156_v22, %s4335_s25 }
 0x29a   : > { %2242 = vrot.lane.b32.xlu0 %v5161_v1, %s4335_s25 }
 0x29b   : > { %v2229_v31 = vpop.permute.xlu1 %2228 }
 0x29c   : > { %2320 = vst.msk [vmem:[%s4896_s24 + $0x22] sm:$0x1] %vm1931_vm13, %v2229_v31  ;;  %v2103_v10 = vpop.permute.xlu0 %2102 }
 0x29d   : > { %2193 = vst.msk [vmem:[%s4896_s24 + $0x29] sm:$0x1] %vm1931_vm13, %v2103_v10  ;;  %2244 = vrot.lane.b32.xlu1 %v5150_v48, %s4335_s25 }
 0x29e   : > { %2246 = vrot.lane.b32.xlu0 %v5167_v11, %s4335_s25 }
 0x29f   : > { %v2353_v46 = vpop.permute.xlu1 %2352 }
 0x2a0   : > { %2446 = vst.msk [vmem:[%s4896_s24 + $0x13] sm:$0x1] %vm1931_vm13, %v2353_v46  ;;  %v2227_v53 = vpop.permute.xlu0 %2226 }
 0x2a1   : > { %2319 = vst.msk [vmem:[%s4896_s24 + $0x1a] sm:$0x1] %vm1931_vm13, %v2227_v53  ;;  %2368 = vrot.lane.b32.xlu1 %v5156_v22, %s4340_s26 }
 0x2a2   : > { %2370 = vrot.lane.b32.xlu0 %v5161_v1, %s4340_s26 }
 0x2a3   : > { %v2357_v37 = vpop.permute.xlu1 %2356 }
 0x2a4   : > { %2448 = vst.msk [vmem:[%s4896_s24 + $0x23] sm:$0x1] %vm1931_vm13, %v2357_v37  ;;  %v2231_v57 = vpop.permute.xlu0 %2230 }
 0x2a5   : > { %2321 = vst.msk [vmem:[%s4896_s24 + $0x2a] sm:$0x1] %vm1931_vm13, %v2231_v57  ;;  %2372 = vrot.lane.b32.xlu1 %v5150_v48, %s4340_s26 }
 0x2a6   : > { %2374 = vrot.lane.b32.xlu0 %v5167_v11, %s4340_s26 }
 0x2a7   : > { %v2481_v25 = vpop.permute.xlu1 %2480 }
 0x2a8   : > { %2574 = vst.msk [vmem:[%s4896_s24 + $0x14] sm:$0x1] %vm1931_vm13, %v2481_v25  ;;  %v2355_v0 = vpop.permute.xlu0 %2354 }
 0x2a9   : > { %2447 = vst.msk [vmem:[%s4896_s24 + $0x1b] sm:$0x1] %vm1931_vm13, %v2355_v0  ;;  %2496 = vrot.lane.b32.xlu1 %v5156_v22, %s4341_s28 }
 0x2aa   : > { %2498 = vrot.lane.b32.xlu0 %v5161_v1, %s4341_s28 }
 0x2ab   : > { %v2485_v39 = vpop.permute.xlu1 %2484 }
 0x2ac   : > { %2576 = vst.msk [vmem:[%s4896_s24 + $0x24] sm:$0x1] %vm1931_vm13, %v2485_v39  ;;  %v2359_v44 = vpop.permute.xlu0 %2358  ;;  %v6743_v39 = vrot.slane %v5126_v43, %v4764_v19 }
 0x2ad   : > { %2449 = vst.msk [vmem:[%s4896_s24 + $0x2b] sm:$0x1] %vm1931_vm13, %v2359_v44  ;;  %2500 = vrot.lane.b32.xlu1 %v5150_v48, %s4341_s28 }
 0x2ae   : > { %2502 = vrot.lane.b32.xlu0 %v5167_v11, %s4341_s28 }
 0x2af   : > { %v2609_v41 = vpop.permute.xlu1 %2608 }
 0x2b0   : > { %2702 = vst.msk [vmem:[%s4896_s24 + $0x15] sm:$0x1] %vm1931_vm13, %v2609_v41  ;;  %v2483_v31 = vpop.permute.xlu0 %2482 }
 0x2b1   : > { %2575 = vst.msk [vmem:[%s4896_s24 + $0x1c] sm:$0x1] %vm1931_vm13, %v2483_v31  ;;  %2624 = vrot.lane.b32.xlu1 %v5156_v22, %s4342_s29 }
 0x2b2   : > { %2626 = vrot.lane.b32.xlu0 %v5161_v1, %s4342_s29 }
 0x2b3   : > { %v2613_v10 = vpop.permute.xlu1 %2612 }
 0x2b4   : > { %2704 = vst.msk [vmem:[%s4896_s24 + $0x25] sm:$0x1] %vm1931_vm13, %v2613_v10  ;;  %v2487_v46 = vpop.permute.xlu0 %2486 }
 0x2b5   : > { %2577 = vst.msk [vmem:[%s4896_s24 + $0x2c] sm:$0x1] %vm1931_vm13, %v2487_v46  ;;  %2628 = vrot.lane.b32.xlu1 %v5150_v48, %s4342_s29 }
 0x2b6   : > { %2630 = vrot.lane.b32.xlu0 %v5167_v11, %s4342_s29 }
 0x2b7   : > { %v2737_v53 = vpop.permute.xlu1 %2736 }
 0x2b8   : > { %2830 = vst.msk [vmem:[%s4896_s24 + $0x16] sm:$0x1] %vm1931_vm13, %v2737_v53  ;;  %v2611_v37 = vpop.permute.xlu0 %2610 }
 0x2b9   : > { %2703 = vst.msk [vmem:[%s4896_s24 + $0x1d] sm:$0x1] %vm1931_vm13, %v2611_v37  ;;  %2752 = vrot.lane.b32.xlu1 %v5156_v22, %s4343_s30 }
 0x2ba   : > { %2754 = vrot.lane.b32.xlu0 %v5161_v1, %s4343_s30 }
 0x2bb   : > { %v2741_v57 = vpop.permute.xlu1 %2740 }
 0x2bc   : > { %2832 = vst.msk [vmem:[%s4896_s24 + $0x26] sm:$0x1] %vm1931_vm13, %v2741_v57  ;;  %v2615_v25 = vpop.permute.xlu0 %2614 }
 0x2bd   : > { %2705 = vst.msk [vmem:[%s4896_s24 + $0x2d] sm:$0x1] %vm1931_vm13, %v2615_v25  ;;  %2756 = vrot.lane.b32.xlu1 %v5150_v48, %s4343_s30 }
 0x2be   : > { %2758 = vrot.lane.b32.xlu0 %v5167_v11, %s4343_s30 }
 0x2bf   : > { %v3321_v22 = vpop.permute.xlu1 %3320 }
 0x2c0   : > { %v3449_v1 = vsel %vm3448_vm2, %v3321_v22, %v5669_v60  ;;  %v2739_v0 = vpop.permute.xlu0 %2738 }
 0x2c1   : > { %3513 = vst.msk [vmem:[%s4896_s24 + $0x7] sm:$0x1] %vm1931_vm13, %v3449_v1  ;;  %2831 = vst.msk [vmem:[%s4896_s24 + $0x1e] sm:$0x1] %vm1931_vm13, %v2739_v0  ;;  %3332 = vrot.lane.b32.xlu1 %v6743_v39, %s4344_s4 }
 0x2c2   : > { %2122 = vrot.lane.b32.xlu0 %v5199_v50, %s4332_s21 }
 0x2c3   : > { %v3337_v48 = vpop.permute.xlu1 %3336 }
 0x2c4   : > { %v3453_v11 = vsel %vm3448_vm2, %v3337_v48, %v5677_v36  ;;  %v2743_v44 = vpop.permute.xlu0 %2742 }
 0x2c5   : > { %3517 = vst.msk [vmem:[%s4896_s24 + $0x27] sm:$0x1] %vm1931_vm13, %v3453_v11  ;;  %2833 = vst.msk [vmem:[%s4896_s24 + $0x2e] sm:$0x1] %vm1931_vm13, %v2743_v44  ;;  %2120 = vrot.lane.b32.xlu1 %v5204_v51, %s4332_s21 }
 0x2c6   : > { %2126 = vrot.lane.b32.xlu0 %v5180_v38, %s4332_s21 }
 0x2c7   : > { %v2105_v43 = vpop.permute.xlu1 %2104 }
 0x2c8   : > { %2194 = vst.msk [vmem:[%s4896_s24 + $0x31] sm:$0x1] %vm1931_vm13, %v2105_v43  ;;  %v5787_v60 = vpop.permute.xlu0 %3326 }
 0x2c9   : > { %2124 = vrot.lane.b32.xlu1 %v5186_v49, %s4332_s21 }
 0x2ca   : > { %2250 = vrot.lane.b32.xlu0 %v5199_v50, %s4335_s25 }
 0x2cb   : > { %v2109_v36 = vpop.permute.xlu1 %2108 }
 0x2cc   : > { %2196 = vst.msk [vmem:[%s4896_s24 + $0x41] sm:$0x1] %vm1931_vm13, %v2109_v36  ;;  %v5795_v41 = vpop.permute.xlu0 %3330 }
 0x2cd   : > { %2248 = vrot.lane.b32.xlu1 %v5204_v51, %s4335_s25 }
 0x2ce   : > { %2254 = vrot.lane.b32.xlu0 %v5180_v38, %s4335_s25 }
 0x2cf   : > { %v2233_v31 = vpop.permute.xlu1 %2232 }
 0x2d0   : > { %2322 = vst.msk [vmem:[%s4896_s24 + $0x32] sm:$0x1] %vm1931_vm13, %v2233_v31  ;;  %v2107_v10 = vpop.permute.xlu0 %2106 }
 0x2d1   : > { %2195 = vst.msk [vmem:[%s4896_s24 + $0x39] sm:$0x1] %vm1931_vm13, %v2107_v10  ;;  %2252 = vrot.lane.b32.xlu1 %v5186_v49, %s4335_s25 }
 0x2d2   : > { %2378 = vrot.lane.b32.xlu0 %v5199_v50, %s4340_s26 }
 0x2d3   : > { %v2237_v46 = vpop.permute.xlu1 %2236 }
 0x2d4   : > { %2324 = vst.msk [vmem:[%s4896_s24 + $0x42] sm:$0x1] %vm1931_vm13, %v2237_v46  ;;  %v2111_v53 = vpop.permute.xlu0 %2110 }
 0x2d5   : > { %2197 = vst.msk [vmem:[%s4896_s24 + $0x49] sm:$0x1] %vm1931_vm13, %v2111_v53  ;;  %2376 = vrot.lane.b32.xlu1 %v5204_v51, %s4340_s26 }
 0x2d6   : > { %2382 = vrot.lane.b32.xlu0 %v5180_v38, %s4340_s26 }
 0x2d7   : > { %v2361_v37 = vpop.permute.xlu1 %2360 }
 0x2d8   : > { %2450 = vst.msk [vmem:[%s4896_s24 + $0x33] sm:$0x1] %vm1931_vm13, %v2361_v37  ;;  %v2235_v57 = vpop.permute.xlu0 %2234 }
 0x2d9   : > { %2323 = vst.msk [vmem:[%s4896_s24 + $0x3a] sm:$0x1] %vm1931_vm13, %v2235_v57  ;;  %2380 = vrot.lane.b32.xlu1 %v5186_v49, %s4340_s26 }
 0x2da   : > { %2506 = vrot.lane.b32.xlu0 %v5199_v50, %s4341_s28 }
 0x2db   : > { %v2365_v25 = vpop.permute.xlu1 %2364 }
 0x2dc   : > { %2452 = vst.msk [vmem:[%s4896_s24 + $0x43] sm:$0x1] %vm1931_vm13, %v2365_v25  ;;  %v2239_v22 = vpop.permute.xlu0 %2238 }
 0x2dd   : > { %2325 = vst.msk [vmem:[%s4896_s24 + $0x4a] sm:$0x1] %vm1931_vm13, %v2239_v22  ;;  %2504 = vrot.lane.b32.xlu1 %v5204_v51, %s4341_s28 }
 0x2de   : > { %2510 = vrot.lane.b32.xlu0 %v5180_v38, %s4341_s28 }
 0x2df   : > { %v2489_v1 = vpop.permute.xlu1 %2488 }
 0x2e0   : > { %2578 = vst.msk [vmem:[%s4896_s24 + $0x34] sm:$0x1] %vm1931_vm13, %v2489_v1  ;;  %v2363_v0 = vpop.permute.xlu0 %2362 }
 0x2e1   : > { %2451 = vst.msk [vmem:[%s4896_s24 + $0x3b] sm:$0x1] %vm1931_vm13, %v2363_v0  ;;  %2508 = vrot.lane.b32.xlu1 %v5186_v49, %s4341_s28 }
 0x2e2   : > { %2634 = vrot.lane.b32.xlu0 %v5199_v50, %s4342_s29 }
 0x2e3   : > { %v2493_v39 = vpop.permute.xlu1 %2492 }
 0x2e4   : > { %2580 = vst.msk [vmem:[%s4896_s24 + $0x44] sm:$0x1] %vm1931_vm13, %v2493_v39  ;;  %v2367_v48 = vpop.permute.xlu0 %2366 }
 0x2e5   : > { %2453 = vst.msk [vmem:[%s4896_s24 + $0x4b] sm:$0x1] %vm1931_vm13, %v2367_v48  ;;  %2632 = vrot.lane.b32.xlu1 %v5204_v51, %s4342_s29 }
 0x2e6   : > { %2638 = vrot.lane.b32.xlu0 %v5180_v38, %s4342_s29 }
 0x2e7   : > { %v2617_v11 = vpop.permute.xlu1 %2616 }
 0x2e8   : > { %2706 = vst.msk [vmem:[%s4896_s24 + $0x35] sm:$0x1] %vm1931_vm13, %v2617_v11  ;;  %v2491_v44 = vpop.permute.xlu0 %2490 }
 0x2e9   : > { %2579 = vst.msk [vmem:[%s4896_s24 + $0x3c] sm:$0x1] %vm1931_vm13, %v2491_v44  ;;  %2636 = vrot.lane.b32.xlu1 %v5186_v49, %s4342_s29 }
 0x2ea   : > { %2762 = vrot.lane.b32.xlu0 %v5199_v50, %s4343_s30 }
 0x2eb   : > { %v2621_v43 = vpop.permute.xlu1 %2620 }
 0x2ec   : > { %2708 = vst.msk [vmem:[%s4896_s24 + $0x45] sm:$0x1] %vm1931_vm13, %v2621_v43  ;;  %v2495_v36 = vpop.permute.xlu0 %2494 }
 0x2ed   : > { %2581 = vst.msk [vmem:[%s4896_s24 + $0x4c] sm:$0x1] %vm1931_vm13, %v2495_v36  ;;  %2760 = vrot.lane.b32.xlu1 %v5204_v51, %s4343_s30 }
 0x2ee   : > { %2766 = vrot.lane.b32.xlu0 %v5180_v38, %s4343_s30 }
 0x2ef   : > { %v2745_v31 = vpop.permute.xlu1 %2744 }
 0x2f0   : > { %2834 = vst.msk [vmem:[%s4896_s24 + $0x36] sm:$0x1] %vm1931_vm13, %v2745_v31  ;;  %v2619_v10 = vpop.permute.xlu0 %2618 }
 0x2f1   : > { %2707 = vst.msk [vmem:[%s4896_s24 + $0x3d] sm:$0x1] %vm1931_vm13, %v2619_v10  ;;  %2764 = vrot.lane.b32.xlu1 %v5186_v49, %s4343_s30 }
 0x2f2   : > { %2130 = vrot.lane.b32.xlu0 %v5209_v3, %s4332_s21 }
 0x2f3   : > { %v2749_v50 = vpop.permute.xlu1 %2748 }
 0x2f4   : > { %2836 = vst.msk [vmem:[%s4896_s24 + $0x46] sm:$0x1] %vm1931_vm13, %v2749_v50  ;;  %v2623_v38 = vpop.permute.xlu0 %2622 }
 0x2f5   : > { %2709 = vst.msk [vmem:[%s4896_s24 + $0x4d] sm:$0x1] %vm1931_vm13, %v2623_v38  ;;  %2128 = vrot.lane.b32.xlu1 %v5214_v8, %s4332_s21 }
 0x2f6   : > { %2134 = vrot.lane.b32.xlu0 %v5194_v24, %s4332_s21 }
 0x2f7   : > { %v3325_v51 = vpop.permute.xlu1 %3324 }
 0x2f8   : > { %v3450_v49 = vsel %vm3448_vm2, %v3325_v51, %v5787_v60  ;;  %v2747_v46 = vpop.permute.xlu0 %2746 }
 0x2f9   : > { %3514 = vst.msk [vmem:[%s4896_s24 + $0xf] sm:$0x1] %vm1931_vm13, %v3450_v49  ;;  %2835 = vst.msk [vmem:[%s4896_s24 + $0x3e] sm:$0x1] %vm1931_vm13, %v2747_v46  ;;  %2132 = vrot.lane.b32.xlu1 %v5220_v14, %s4332_s21 }
 0x2fa   : > { %2258 = vrot.lane.b32.xlu0 %v5209_v3, %s4335_s25 }
 0x2fb   : > { %v3329_v53 = vpop.permute.xlu1 %3328 }
 0x2fc   : > { %v3451_v37 = vsel %vm3448_vm2, %v3329_v53, %v5795_v41  ;;  %v2751_v57 = vpop.permute.xlu0 %2750 }
 0x2fd   : > { %3515 = vst.msk [vmem:[%s4896_s24 + $0x17] sm:$0x1] %vm1931_vm13, %v3451_v37  ;;  %2837 = vst.msk [vmem:[%s4896_s24 + $0x4e] sm:$0x1] %vm1931_vm13, %v2751_v57  ;;  %2256 = vrot.lane.b32.xlu1 %v5214_v8, %s4335_s25 }
 0x2fe   : > { %2262 = vrot.lane.b32.xlu0 %v5194_v24, %s4335_s25 }
 0x2ff   : > { %v5901_v60 = vpop.permute.xlu1 %3340 }
 0x300   : > { %v5903_v25 = vpop.permute.xlu0 %3334 }
 0x301   : > { %2260 = vrot.lane.b32.xlu1 %v5220_v14, %s4335_s25 }
 0x302   : > { %2386 = vrot.lane.b32.xlu0 %v5209_v3, %s4340_s26 }
 0x303   : > { %v2113_v41 = vpop.permute.xlu1 %2112 }
 0x304   : > { %2198 = vst.msk [vmem:[%s4896_s24 + $0x51] sm:$0x1] %vm1931_vm13, %v2113_v41  ;;  %v2115_v22 = vpop.permute.xlu0 %2114 }
 0x305   : > { %2199 = vst.msk [vmem:[%s4896_s24 + $0x59] sm:$0x1] %vm1931_vm13, %v2115_v22  ;;  %2384 = vrot.lane.b32.xlu1 %v5214_v8, %s4340_s26 }
 0x306   : > { %2390 = vrot.lane.b32.xlu0 %v5194_v24, %s4340_s26 }
 0x307   : > { %v2117_v1 = vpop.permute.xlu1 %2116 }
 0x308   : > { %2200 = vst.msk [vmem:[%s4896_s24 + $0x61] sm:$0x1] %vm1931_vm13, %v2117_v1  ;;  %v2119_v0 = vpop.permute.xlu0 %2118 }
 0x309   : > { %2201 = vst.msk [vmem:[%s4896_s24 + $0x69] sm:$0x1] %vm1931_vm13, %v2119_v0  ;;  %2388 = vrot.lane.b32.xlu1 %v5220_v14, %s4340_s26 }
 0x30a   : > { %2514 = vrot.lane.b32.xlu0 %v5209_v3, %s4341_s28 }
 0x30b   : > { %v2241_v39 = vpop.permute.xlu1 %2240 }
 0x30c   : > { %2326 = vst.msk [vmem:[%s4896_s24 + $0x52] sm:$0x1] %vm1931_vm13, %v2241_v39  ;;  %v2243_v48 = vpop.permute.xlu0 %2242 }
 0x30d   : > { %2327 = vst.msk [vmem:[%s4896_s24 + $0x5a] sm:$0x1] %vm1931_vm13, %v2243_v48  ;;  %2512 = vrot.lane.b32.xlu1 %v5214_v8, %s4341_s28 }
 0x30e   : > { %2518 = vrot.lane.b32.xlu0 %v5194_v24, %s4341_s28 }
 0x30f   : > { %v2245_v11 = vpop.permute.xlu1 %2244 }
 0x310   : > { %2328 = vst.msk [vmem:[%s4896_s24 + $0x62] sm:$0x1] %vm1931_vm13, %v2245_v11  ;;  %v2247_v44 = vpop.permute.xlu0 %2246 }
 0x311   : > { %2329 = vst.msk [vmem:[%s4896_s24 + $0x6a] sm:$0x1] %vm1931_vm13, %v2247_v44  ;;  %2516 = vrot.lane.b32.xlu1 %v5220_v14, %s4341_s28 }
 0x312   : > { %2642 = vrot.lane.b32.xlu0 %v5209_v3, %s4342_s29 }
 0x313   : > { %v2369_v43 = vpop.permute.xlu1 %2368 }
 0x314   : > { %2454 = vst.msk [vmem:[%s4896_s24 + $0x53] sm:$0x1] %vm1931_vm13, %v2369_v43  ;;  %v2371_v36 = vpop.permute.xlu0 %2370 }
 0x315   : > { %2455 = vst.msk [vmem:[%s4896_s24 + $0x5b] sm:$0x1] %vm1931_vm13, %v2371_v36  ;;  %2640 = vrot.lane.b32.xlu1 %v5214_v8, %s4342_s29 }
 0x316   : > { %2646 = vrot.lane.b32.xlu0 %v5194_v24, %s4342_s29 }
 0x317   : > { %v2373_v31 = vpop.permute.xlu1 %2372 }
 0x318   : > { %2456 = vst.msk [vmem:[%s4896_s24 + $0x63] sm:$0x1] %vm1931_vm13, %v2373_v31  ;;  %v2375_v10 = vpop.permute.xlu0 %2374 }
 0x319   : > { %2457 = vst.msk [vmem:[%s4896_s24 + $0x6b] sm:$0x1] %vm1931_vm13, %v2375_v10  ;;  %2644 = vrot.lane.b32.xlu1 %v5220_v14, %s4342_s29 }
 0x31a   : > { %2770 = vrot.lane.b32.xlu0 %v5209_v3, %s4343_s30 }
 0x31b   : > { %v2497_v50 = vpop.permute.xlu1 %2496 }
 0x31c   : > { %2582 = vst.msk [vmem:[%s4896_s24 + $0x54] sm:$0x1] %vm1931_vm13, %v2497_v50  ;;  %v2499_v38 = vpop.permute.xlu0 %2498 }
 0x31d   : > { %2583 = vst.msk [vmem:[%s4896_s24 + $0x5c] sm:$0x1] %vm1931_vm13, %v2499_v38  ;;  %2768 = vrot.lane.b32.xlu1 %v5214_v8, %s4343_s30 }
 0x31e   : > { %2774 = vrot.lane.b32.xlu0 %v5194_v24, %s4343_s30 }
 0x31f   : > { %v2501_v51 = vpop.permute.xlu1 %2500 }
 0x320   : > { %2584 = vst.msk [vmem:[%s4896_s24 + $0x64] sm:$0x1] %vm1931_vm13, %v2501_v51  ;;  %v2503_v49 = vpop.permute.xlu0 %2502 }
 0x321   : > { %2585 = vst.msk [vmem:[%s4896_s24 + $0x6c] sm:$0x1] %vm1931_vm13, %v2503_v49  ;;  %2772 = vrot.lane.b32.xlu1 %v5220_v14, %s4343_s30 }
 0x322   : > { %2138 = vrot.lane.b32.xlu0 %v5242_v20, %s4332_s21 }
 0x323   : > { %v2625_v3 = vpop.permute.xlu1 %2624 }
 0x324   : > { %2710 = vst.msk [vmem:[%s4896_s24 + $0x55] sm:$0x1] %vm1931_vm13, %v2625_v3  ;;  %v2627_v8 = vpop.permute.xlu0 %2626 }
 0x325   : > { %2711 = vst.msk [vmem:[%s4896_s24 + $0x5d] sm:$0x1] %vm1931_vm13, %v2627_v8  ;;  %2136 = vrot.lane.b32.xlu1 %v5257_v47, %s4332_s21 }
 0x326   : > { %2142 = vrot.lane.b32.xlu0 %v5235_v45, %s4332_s21 }
 0x327   : > { %v2629_v24 = vpop.permute.xlu1 %2628 }
 0x328   : > { %2712 = vst.msk [vmem:[%s4896_s24 + $0x65] sm:$0x1] %vm1931_vm13, %v2629_v24  ;;  %v2631_v14 = vpop.permute.xlu0 %2630 }
 0x329   : > { %2713 = vst.msk [vmem:[%s4896_s24 + $0x6d] sm:$0x1] %vm1931_vm13, %v2631_v14  ;;  %2140 = vrot.lane.b32.xlu1 %v5248_v21, %s4332_s21 }
 0x32a   : > { %2266 = vrot.lane.b32.xlu0 %v5242_v20, %s4335_s25 }
 0x32b   : > { %v2753_v46 = vpop.permute.xlu1 %2752 }
 0x32c   : > { %2838 = vst.msk [vmem:[%s4896_s24 + $0x56] sm:$0x1] %vm1931_vm13, %v2753_v46  ;;  %v2755_v53 = vpop.permute.xlu0 %2754 }
 0x32d   : > { %2839 = vst.msk [vmem:[%s4896_s24 + $0x5e] sm:$0x1] %vm1931_vm13, %v2755_v53  ;;  %2264 = vrot.lane.b32.xlu1 %v5257_v47, %s4335_s25 }
 0x32e   : > { %2270 = vrot.lane.b32.xlu0 %v5235_v45, %s4335_s25 }
 0x32f   : > { %v2757_v37 = vpop.permute.xlu1 %2756 }
 0x330   : > { %2840 = vst.msk [vmem:[%s4896_s24 + $0x66] sm:$0x1] %vm1931_vm13, %v2757_v37  ;;  %v2759_v57 = vpop.permute.xlu0 %2758 }
 0x331   : > { %2841 = vst.msk [vmem:[%s4896_s24 + $0x6e] sm:$0x1] %vm1931_vm13, %v2759_v57  ;;  %2268 = vrot.lane.b32.xlu1 %v5248_v21, %s4335_s25 }
 0x332   : > { %2394 = vrot.lane.b32.xlu0 %v5242_v20, %s4340_s26 }
 0x333   : > { %v3333_v41 = vpop.permute.xlu1 %3332 }
 0x334   : > { %v3452_v22 = vsel %vm3448_vm2, %v3333_v41, %v5903_v25  ;;  %v2123_v1 = vpop.permute.xlu0 %2122 }
 0x335   : > { %3516 = vst.msk [vmem:[%s4896_s24 + $0x1f] sm:$0x1] %vm1931_vm13, %v3452_v22  ;;  %2203 = vst.msk [vmem:[%s4896_s24 + $0x79] sm:$0x1] %vm1931_vm13, %v2123_v1  ;;  %2392 = vrot.lane.b32.xlu1 %v5257_v47, %s4340_s26 }
 0x336   : > { %2398 = vrot.lane.b32.xlu0 %v5235_v45, %s4340_s26 }
 0x337   : > { %v2121_v0 = vpop.permute.xlu1 %2120 }
 0x338   : > { %2202 = vst.msk [vmem:[%s4896_s24 + $0x71] sm:$0x1] %vm1931_vm13, %v2121_v0  ;;  %v2127_v39 = vpop.permute.xlu0 %2126 }
 0x339   : > { %2205 = vst.msk [vmem:[%s4896_s24 + $0x89] sm:$0x1] %vm1931_vm13, %v2127_v39  ;;  %2396 = vrot.lane.b32.xlu1 %v5248_v21, %s4340_s26 }
 0x33a   : > { %2522 = vrot.lane.b32.xlu0 %v5242_v20, %s4341_s28 }
 0x33b   : > { %v2125_v25 = vpop.permute.xlu1 %2124 }
 0x33c   : > { %2204 = vst.msk [vmem:[%s4896_s24 + $0x81] sm:$0x1] %vm1931_vm13, %v2125_v25  ;;  %v2251_v48 = vpop.permute.xlu0 %2250 }
 0x33d   : > { %2331 = vst.msk [vmem:[%s4896_s24 + $0x7a] sm:$0x1] %vm1931_vm13, %v2251_v48  ;;  %2520 = vrot.lane.b32.xlu1 %v5257_v47, %s4341_s28 }
 0x33e   : > { %2526 = vrot.lane.b32.xlu0 %v5235_v45, %s4341_s28 }
 0x33f   : > { %v2249_v11 = vpop.permute.xlu1 %2248 }
 0x340   : > { %2330 = vst.msk [vmem:[%s4896_s24 + $0x72] sm:$0x1] %vm1931_vm13, %v2249_v11  ;;  %v2255_v44 = vpop.permute.xlu0 %2254 }
 0x341   : > { %2333 = vst.msk [vmem:[%s4896_s24 + $0x8a] sm:$0x1] %vm1931_vm13, %v2255_v44  ;;  %2524 = vrot.lane.b32.xlu1 %v5248_v21, %s4341_s28 }
 0x342   : > { %2650 = vrot.lane.b32.xlu0 %v5242_v20, %s4342_s29 }
 0x343   : > { %v2253_v43 = vpop.permute.xlu1 %2252 }
 0x344   : > { %2332 = vst.msk [vmem:[%s4896_s24 + $0x82] sm:$0x1] %vm1931_vm13, %v2253_v43  ;;  %v2379_v36 = vpop.permute.xlu0 %2378 }
 0x345   : > { %2459 = vst.msk [vmem:[%s4896_s24 + $0x7b] sm:$0x1] %vm1931_vm13, %v2379_v36  ;;  %2648 = vrot.lane.b32.xlu1 %v5257_v47, %s4342_s29 }
 0x346   : > { %2654 = vrot.lane.b32.xlu0 %v5235_v45, %s4342_s29 }
 0x347   : > { %v2377_v31 = vpop.permute.xlu1 %2376 }
 0x348   : > { %2458 = vst.msk [vmem:[%s4896_s24 + $0x73] sm:$0x1] %vm1931_vm13, %v2377_v31  ;;  %v2383_v10 = vpop.permute.xlu0 %2382 }
 0x349   : > { %2461 = vst.msk [vmem:[%s4896_s24 + $0x8b] sm:$0x1] %vm1931_vm13, %v2383_v10  ;;  %2652 = vrot.lane.b32.xlu1 %v5248_v21, %s4342_s29 }
 0x34a   : > { %2778 = vrot.lane.b32.xlu0 %v5242_v20, %s4343_s30 }
 0x34b   : > { %v2381_v50 = vpop.permute.xlu1 %2380 }
 0x34c   : > { %2460 = vst.msk [vmem:[%s4896_s24 + $0x83] sm:$0x1] %vm1931_vm13, %v2381_v50  ;;  %v2507_v38 = vpop.permute.xlu0 %2506 }
 0x34d   : > { %2587 = vst.msk [vmem:[%s4896_s24 + $0x7c] sm:$0x1] %vm1931_vm13, %v2507_v38  ;;  %2776 = vrot.lane.b32.xlu1 %v5257_v47, %s4343_s30 }
 0x34e   : > { %2782 = vrot.lane.b32.xlu0 %v5235_v45, %s4343_s30 }
 0x34f   : > { %v2505_v51 = vpop.permute.xlu1 %2504 }
 0x350   : > { %2586 = vst.msk [vmem:[%s4896_s24 + $0x74] sm:$0x1] %vm1931_vm13, %v2505_v51  ;;  %v2511_v49 = vpop.permute.xlu0 %2510 }
 0x351   : > { %2589 = vst.msk [vmem:[%s4896_s24 + $0x8c] sm:$0x1] %vm1931_vm13, %v2511_v49  ;;  %2780 = vrot.lane.b32.xlu1 %v5248_v21, %s4343_s30 }
 0x352   : > { %2146 = vrot.lane.b32.xlu0 %v5266_v62, %s4332_s21 }
 0x353   : > { %v2509_v20 = vpop.permute.xlu1 %2508 }
 0x354   : > { %2588 = vst.msk [vmem:[%s4896_s24 + $0x84] sm:$0x1] %vm1931_vm13, %v2509_v20  ;;  %v2635_v47 = vpop.permute.xlu0 %2634 }
 0x355   : > { %2715 = vst.msk [vmem:[%s4896_s24 + $0x7d] sm:$0x1] %vm1931_vm13, %v2635_v47  ;;  %2144 = vrot.lane.b32.xlu1 %v5271_v55, %s4332_s21 }
 0x356   : > { %2150 = vrot.lane.b32.xlu0 %v5263_v16, %s4332_s21 }
 0x357   : > { %v2633_v45 = vpop.permute.xlu1 %2632 }
 0x358   : > { %2714 = vst.msk [vmem:[%s4896_s24 + $0x75] sm:$0x1] %vm1931_vm13, %v2633_v45  ;;  %v2639_v21 = vpop.permute.xlu0 %2638 }
 0x359   : > { %2717 = vst.msk [vmem:[%s4896_s24 + $0x8d] sm:$0x1] %vm1931_vm13, %v2639_v21  ;;  %2148 = vrot.lane.b32.xlu1 %v5277_v27, %s4332_s21  ;;  %v6744_v21 = vrot.slane %v5122_v40, %v4767_v29 }
 0x35a   : > { %2274 = vrot.lane.b32.xlu0 %v5266_v62, %s4335_s25 }
 0x35b   : > { %v2637_v3 = vpop.permute.xlu1 %2636 }
 0x35c   : > { %2716 = vst.msk [vmem:[%s4896_s24 + $0x85] sm:$0x1] %vm1931_vm13, %v2637_v3  ;;  %v2763_v8 = vpop.permute.xlu0 %2762 }
 0x35d   : > { %2843 = vst.msk [vmem:[%s4896_s24 + $0x7e] sm:$0x1] %vm1931_vm13, %v2763_v8  ;;  %2272 = vrot.lane.b32.xlu1 %v5271_v55, %s4335_s25  ;;  %v6745_v8 = vrot.slane %v5289_v15, %v4764_v19 }
 0x35e   : > { %2278 = vrot.lane.b32.xlu0 %v5263_v16, %s4335_s25 }
 0x35f   : > { %v2761_v24 = vpop.permute.xlu1 %2760 }
 0x360   : > { %2842 = vst.msk [vmem:[%s4896_s24 + $0x76] sm:$0x1] %vm1931_vm13, %v2761_v24  ;;  %v2767_v14 = vpop.permute.xlu0 %2766 }
 0x361   : > { %2845 = vst.msk [vmem:[%s4896_s24 + $0x8e] sm:$0x1] %vm1931_vm13, %v2767_v14  ;;  %2276 = vrot.lane.b32.xlu1 %v5277_v27, %s4335_s25  ;;  %v6747_v14 = vrot.slane %v5293_v23, %v4764_v19 }
 0x362   : > { %2402 = vrot.lane.b32.xlu0 %v5266_v62, %s4340_s26 }
 0x363   : > { %v2765_v46 = vpop.permute.xlu1 %2764 }
 0x364   : > { %2844 = vst.msk [vmem:[%s4896_s24 + $0x86] sm:$0x1] %vm1931_vm13, %v2765_v46  ;;  %v2131_v53 = vpop.permute.xlu0 %2130  ;;  %v6748_v46 = vrot.slane %v5293_v23, %v4767_v29 }
 0x365   : > { %2207 = vst.msk [vmem:[%s4896_s24 + $0x99] sm:$0x1] %vm1931_vm13, %v2131_v53  ;;  %2400 = vrot.lane.b32.xlu1 %v5271_v55, %s4340_s26 }
 0x366   : > { %2406 = vrot.lane.b32.xlu0 %v5263_v16, %s4340_s26 }
 0x367   : > { %v2129_v37 = vpop.permute.xlu1 %2128 }
 0x368   : > { %2206 = vst.msk [vmem:[%s4896_s24 + $0x91] sm:$0x1] %vm1931_vm13, %v2129_v37  ;;  %v2135_v57 = vpop.permute.xlu0 %2134  ;;  %v6749_v37 = vrot.slane %v5306_v9, %v4764_v19 }
 0x369   : > { %2209 = vst.msk [vmem:[%s4896_s24 + $0xa9] sm:$0x1] %vm1931_vm13, %v2135_v57  ;;  %2404 = vrot.lane.b32.xlu1 %v5277_v27, %s4340_s26  ;;  %v6750_v57 = vrot.slane %v5306_v9, %v4767_v29 }
 0x36a   : > { %2530 = vrot.lane.b32.xlu0 %v5266_v62, %s4341_s28 }
 0x36b   : > { %v2133_v41 = vpop.permute.xlu1 %2132 }
 0x36c   : > { %2208 = vst.msk [vmem:[%s4896_s24 + $0xa1] sm:$0x1] %vm1931_vm13, %v2133_v41  ;;  %v2259_v22 = vpop.permute.xlu0 %2258 }
 0x36d   : > { %2335 = vst.msk [vmem:[%s4896_s24 + $0x9a] sm:$0x1] %vm1931_vm13, %v2259_v22  ;;  %2528 = vrot.lane.b32.xlu1 %v5271_v55, %s4341_s28  ;;  %v6751_v22 = vrot.slane %v5312_v61, %v4764_v19 }
 0x36e   : > { %2534 = vrot.lane.b32.xlu0 %v5263_v16, %s4341_s28 }
 0x36f   : > { %v2257_v1 = vpop.permute.xlu1 %2256 }
 0x370   : > { %2334 = vst.msk [vmem:[%s4896_s24 + $0x92] sm:$0x1] %vm1931_vm13, %v2257_v1  ;;  %v2263_v0 = vpop.permute.xlu0 %2262  ;;  %v6752_v1 = vrot.slane %v5312_v61, %v4767_v29 }
 0x371   : > { %2337 = vst.msk [vmem:[%s4896_s24 + $0xaa] sm:$0x1] %vm1931_vm13, %v2263_v0  ;;  %2532 = vrot.lane.b32.xlu1 %v5277_v27, %s4341_s28 }
 0x372   : > { %2658 = vrot.lane.b32.xlu0 %v5266_v62, %s4342_s29 }
 0x373   : > { %v2261_v39 = vpop.permute.xlu1 %2260 }
 0x374   : > { %2336 = vst.msk [vmem:[%s4896_s24 + $0xa2] sm:$0x1] %vm1931_vm13, %v2261_v39  ;;  %v2387_v25 = vpop.permute.xlu0 %2386  ;;  %v6753_v39 = vrot.slane %v5343_v4, %v4764_v19 }
 0x375   : > { %2463 = vst.msk [vmem:[%s4896_s24 + $0x9b] sm:$0x1] %vm1931_vm13, %v2387_v25  ;;  %2656 = vrot.lane.b32.xlu1 %v5271_v55, %s4342_s29  ;;  %v6754_v25 = vrot.slane %v5343_v4, %v4767_v29 }
 0x376   : > { %2662 = vrot.lane.b32.xlu0 %v5263_v16, %s4342_s29 }
 0x377   : > { %v2385_v48 = vpop.permute.xlu1 %2384 }
 0x378   : > { %2462 = vst.msk [vmem:[%s4896_s24 + $0x93] sm:$0x1] %vm1931_vm13, %v2385_v48  ;;  %v2391_v11 = vpop.permute.xlu0 %2390 }
 0x379   : > { %2465 = vst.msk [vmem:[%s4896_s24 + $0xab] sm:$0x1] %vm1931_vm13, %v2391_v11  ;;  %2660 = vrot.lane.b32.xlu1 %v5277_v27, %s4342_s29  ;;  %v6755_v11 = vrot.slane %v5347_v13, %v4764_v19 }
 0x37a   : > { %2786 = vrot.lane.b32.xlu0 %v5266_v62, %s4343_s30 }
 0x37b   : > { %v2389_v44 = vpop.permute.xlu1 %2388 }
 0x37c   : > { %2464 = vst.msk [vmem:[%s4896_s24 + $0xa3] sm:$0x1] %vm1931_vm13, %v2389_v44  ;;  %v2515_v43 = vpop.permute.xlu0 %2514  ;;  %v6756_v44 = vrot.slane %v5347_v13, %v4767_v29 }
 0x37d   : > { %2591 = vst.msk [vmem:[%s4896_s24 + $0x9c] sm:$0x1] %vm1931_vm13, %v2515_v43  ;;  %2784 = vrot.lane.b32.xlu1 %v5271_v55, %s4343_s30 }
 0x37e   : > { %2790 = vrot.lane.b32.xlu0 %v5263_v16, %s4343_s30 }
 0x37f   : > { %v2513_v36 = vpop.permute.xlu1 %2512 }
 0x380   : > { %2590 = vst.msk [vmem:[%s4896_s24 + $0x94] sm:$0x1] %vm1931_vm13, %v2513_v36  ;;  %v2519_v31 = vpop.permute.xlu0 %2518  ;;  %v6757_v36 = vrot.slane %v5316_v52, %v4764_v19 }
 0x381   : > { %2593 = vst.msk [vmem:[%s4896_s24 + $0xac] sm:$0x1] %vm1931_vm13, %v2519_v31  ;;  %2788 = vrot.lane.b32.xlu1 %v5277_v27, %s4343_s30  ;;  %v6758_v31 = vrot.slane %v5316_v52, %v4767_v29 }
 0x382   : > { %2154 = vrot.lane.b32.xlu0 %v5300_v34, %s4332_s21 }
 0x383   : > { %v2517_v62 = vpop.permute.xlu1 %2516 }
 0x384   : > { %2592 = vst.msk [vmem:[%s4896_s24 + $0xa4] sm:$0x1] %vm1931_vm13, %v2517_v62  ;;  %v2643_v55 = vpop.permute.xlu0 %2642 }
 0x385   : > { %2719 = vst.msk [vmem:[%s4896_s24 + $0x9d] sm:$0x1] %vm1931_vm13, %v2643_v55  ;;  %2152 = vrot.lane.b32.xlu1 %v5319_v6, %s4332_s21  ;;  %v6759_v55 = vrot.slane %v5359_v56, %v4764_v19  ;;  %s3863_s21 = sshll.u32 (%p4411_p5), %s4315_s15, 6 }
 0x386   : > { %2282 = vrot.lane.b32.xlu0 %v5300_v34, %s4335_s25  ;;  %s3553_s23 = sadd.s32 (%p4411_p5), %s4311_s14, %s3863_s21 }
 0x387   : > { %v2641_v16 = vpop.permute.xlu1 %2640 }
 0x388   : > { %2718 = vst.msk [vmem:[%s4896_s24 + $0x95] sm:$0x1] %vm1931_vm13, %v2641_v16  ;;  %v2647_v27 = vpop.permute.xlu0 %2646  ;;  %v6760_v16 = vrot.slane %v5359_v56, %v4767_v29 }
 0x389   : > { %2721 = vst.msk [vmem:[%s4896_s24 + $0xad] sm:$0x1] %vm1931_vm13, %v2647_v27  ;;  %2280 = vrot.lane.b32.xlu1 %v5319_v6, %s4335_s25  ;;  %s3864_s25 = sshll.u32 (%p4411_p5), %s3553_s23, 3 }
 0x38a   : > { %2410 = vrot.lane.b32.xlu0 %v5300_v34, %s4340_s26  ;;  %s6637_s7 = scalar_lea.vmem (%p4411_p5), %s6718_s3, %s3864_s25 }
 0x38b   : > { %v2645_v10 = vpop.permute.xlu1 %2644 }
 0x38c   : > { %2720 = vst.msk [vmem:[%s4896_s24 + $0xa5] sm:$0x1] %vm1931_vm13, %v2645_v10  ;;  %v2771_v50 = vpop.permute.xlu0 %2770  ;;  %v6761_v10 = vrot.slane %v5363_v12, %v4764_v19 }
 0x38d   : > { %2847 = vst.msk [vmem:[%s4896_s24 + $0x9e] sm:$0x1] %vm1931_vm13, %v2771_v50  ;;  %2408 = vrot.lane.b32.xlu1 %v5319_v6, %s4340_s26  ;;  %v6762_v50 = vrot.slane %v5363_v12, %v4767_v29 }
 0x38e   : > { %2538 = vrot.lane.b32.xlu0 %v5300_v34, %s4341_s28 }
 0x38f   : > { %v2769_v38 = vpop.permute.xlu1 %2768 }
 0x390   : > { %2846 = vst.msk [vmem:[%s4896_s24 + $0x96] sm:$0x1] %vm1931_vm13, %v2769_v38  ;;  %v2775_v51 = vpop.permute.xlu0 %2774 }
 0x391   : > { %2849 = vst.msk [vmem:[%s4896_s24 + $0xae] sm:$0x1] %vm1931_vm13, %v2775_v51  ;;  %2536 = vrot.lane.b32.xlu1 %v5319_v6, %s4341_s28  ;;  %v6763_v51 = vrot.slane %v5389_v30, %v4764_v19 }
 0x392   : > { %2666 = vrot.lane.b32.xlu0 %v5300_v34, %s4342_s29 }
 0x393   : > { %v2773_v49 = vpop.permute.xlu1 %2772 }
 0x394   : > { %2848 = vst.msk [vmem:[%s4896_s24 + $0xa6] sm:$0x1] %vm1931_vm13, %v2773_v49  ;;  %v2139_v20 = vpop.permute.xlu0 %2138  ;;  %v6764_v49 = vrot.slane %v5389_v30, %v4767_v29 }
 0x395   : > { %2211 = vst.msk [vmem:[%s4896_s24 + $0xb9] sm:$0x1] %vm1931_vm13, %v2139_v20  ;;  %2664 = vrot.lane.b32.xlu1 %v5319_v6, %s4342_s29 }
 0x396   : > { %2794 = vrot.lane.b32.xlu0 %v5300_v34, %s4343_s30 }
 0x397   : > { %v2137_v47 = vpop.permute.xlu1 %2136 }
 0x398   : > { %2210 = vst.msk [vmem:[%s4896_s24 + $0xb1] sm:$0x1] %vm1931_vm13, %v2137_v47  ;;  %v2143_v45 = vpop.permute.xlu0 %2142  ;;  %v6765_v47 = vrot.slane %v5367_v32, %v4764_v19 }
 0x399   : > { %2213 = vst.msk [vmem:[%s4896_s24 + $0xc9] sm:$0x1] %vm1931_vm13, %v2143_v45  ;;  %2792 = vrot.lane.b32.xlu1 %v5319_v6, %s4343_s30  ;;  %v6746_v6 = vrot.slane %v5289_v15, %v4767_v29  ;;  %v6766_v45 = vrot.slane %v5367_v32, %v4767_v29 }
 0x39a   : > { %3342 = vrot.lane.b32.xlu0 %v6744_v21, %s4344_s4 }
 0x39b   : > { %v2141_v3 = vpop.permute.xlu1 %2140 }
 0x39c   : > { %2212 = vst.msk [vmem:[%s4896_s24 + $0xc1] sm:$0x1] %vm1931_vm13, %v2141_v3  ;;  %v2267_v34 = vpop.permute.xlu0 %2266  ;;  %v6767_v3 = vrot.slane %v5399_v17, %v4764_v19 }
 0x39d   : > { %2339 = vst.msk [vmem:[%s4896_s24 + $0xba] sm:$0x1] %vm1931_vm13, %v2267_v34  ;;  %3344 = vrot.lane.b32.xlu1 %v6745_v8, %s4344_s4  ;;  %v6768_v34 = vrot.slane %v5399_v17, %v4767_v29 }
 0x39e   : > { %3346 = vrot.lane.b32.xlu0 %v6746_v6, %s4344_s4  ;;  %v6769_v6 = vld [vmem:[#allocation3_spill] sm:$0xff] }
 0x39f   : > { %v2265_v40 = vpop.permute.xlu1 %2264 }
 0x3a0   : > { %2338 = vst.msk [vmem:[%s4896_s24 + $0xb2] sm:$0x1] %vm1931_vm13, %v2265_v40  ;;  %v2271_v24 = vpop.permute.xlu0 %2270  ;;  %v6770_v40 = vrot.slane %v6769_v6, %v4764_v19 }
 0x3a1   : > { %2341 = vst.msk [vmem:[%s4896_s24 + $0xca] sm:$0x1] %vm1931_vm13, %v2271_v24  ;;  %3348 = vrot.lane.b32.xlu1 %v6747_v14, %s4344_s4  ;;  %v6771_v24 = vrot.slane %v6769_v6, %v4767_v29 }
 0x3a2   : > { %3350 = vrot.lane.b32.xlu0 %v6748_v46, %s4344_s4  ;;  %v6772_v46 = vrot.slane %v5435_v26, %v4764_v19 }
 0x3a3   : > { %v2269_v15 = vpop.permute.xlu1 %2268 }
 0x3a4   : > { %2340 = vst.msk [vmem:[%s4896_s24 + $0xc2] sm:$0x1] %vm1931_vm13, %v2269_v15  ;;  %v2395_v53 = vpop.permute.xlu0 %2394  ;;  %v6773_v15 = vrot.slane %v5435_v26, %v4767_v29 }
 0x3a5   : > { %2467 = vst.msk [vmem:[%s4896_s24 + $0xbb] sm:$0x1] %vm1931_vm13, %v2395_v53  ;;  %3352 = vrot.lane.b32.xlu1 %v6749_v37, %s4344_s4 }
 0x3a6   : > { %3354 = vrot.lane.b32.xlu0 %v6750_v57, %s4344_s4  ;;  %v6774_v57 = vld [vmem:[#allocation4_spill] sm:$0xff] }
 0x3a7   : > { %v2393_v23 = vpop.permute.xlu1 %2392 }
 0x3a8   : > { %2466 = vst.msk [vmem:[%s4896_s24 + $0xb3] sm:$0x1] %vm1931_vm13, %v2393_v23  ;;  %v2399_v41 = vpop.permute.xlu0 %2398  ;;  %v6775_v23 = vrot.slane %v6774_v57, %v4764_v19 }
 0x3a9   : > { %2469 = vst.msk [vmem:[%s4896_s24 + $0xcb] sm:$0x1] %vm1931_vm13, %v2399_v41  ;;  %3356 = vrot.lane.b32.xlu1 %v6751_v22, %s4344_s4  ;;  %v6776_v41 = vrot.slane %v6774_v57, %v4767_v29 }
 0x3aa   : > { %3358 = vrot.lane.b32.xlu0 %v6752_v1, %s4344_s4  ;;  %v6777_v1 = vld [vmem:[#allocation5_spill] sm:$0xff] }
 0x3ab   : > { %v2397_v9 = vpop.permute.xlu1 %2396 }
 0x3ac   : > { %2468 = vst.msk [vmem:[%s4896_s24 + $0xc3] sm:$0x1] %vm1931_vm13, %v2397_v9  ;;  %v2523_v0 = vpop.permute.xlu0 %2522  ;;  %v6778_v9 = vrot.slane %v6777_v1, %v4764_v19 }
 0x3ad   : > { %2595 = vst.msk [vmem:[%s4896_s24 + $0xbc] sm:$0x1] %vm1931_vm13, %v2523_v0  ;;  %3360 = vrot.lane.b32.xlu1 %v6753_v39, %s4344_s4  ;;  %v6779_v0 = vrot.slane %v6777_v1, %v4767_v29 }
 0x3ae   : > { %3362 = vrot.lane.b32.xlu0 %v6754_v25, %s4344_s4 }
 0x3af   : > { %v2521_v61 = vpop.permute.xlu1 %2520 }
 0x3b0   : > { %2594 = vst.msk [vmem:[%s4896_s24 + $0xb4] sm:$0x1] %vm1931_vm13, %v2521_v61  ;;  %v2527_v48 = vpop.permute.xlu0 %2526  ;;  %v6780_v61 = vrot.slane %v5449_v35, %v4764_v19 }
 0x3b1   : > { %2597 = vst.msk [vmem:[%s4896_s24 + $0xcc] sm:$0x1] %vm1931_vm13, %v2527_v48  ;;  %3364 = vrot.lane.b32.xlu1 %v6755_v11, %s4344_s4  ;;  %v6781_v48 = vrot.slane %v5449_v35, %v4767_v29 }
 0x3b2   : > { %3366 = vrot.lane.b32.xlu0 %v6756_v44, %s4344_s4 }
 0x3b3   : > { %v2525_v4 = vpop.permute.xlu1 %2524 }
 0x3b4   : > { %2596 = vst.msk [vmem:[%s4896_s24 + $0xc4] sm:$0x1] %vm1931_vm13, %v2525_v4  ;;  %v2651_v43 = vpop.permute.xlu0 %2650  ;;  %v6782_v4 = vrot.slane %v5459_v63, %v4764_v19 }
 0x3b5   : > { %2723 = vst.msk [vmem:[%s4896_s24 + $0xbd] sm:$0x1] %vm1931_vm13, %v2651_v43  ;;  %3368 = vrot.lane.b32.xlu1 %v6757_v36, %s4344_s4  ;;  %v6783_v43 = vrot.slane %v5459_v63, %v4767_v29 }
 0x3b6   : > { %3370 = vrot.lane.b32.xlu0 %v6758_v31, %s4344_s4  ;;  %v6784_v31 = vld [vmem:[#allocation6_spill] sm:$0xff] }
 0x3b7   : > { %v2649_v13 = vpop.permute.xlu1 %2648 }
 0x3b8   : > { %2722 = vst.msk [vmem:[%s4896_s24 + $0xb5] sm:$0x1] %vm1931_vm13, %v2649_v13  ;;  %v2655_v62 = vpop.permute.xlu0 %2654  ;;  %v6785_v13 = vrot.slane %v6784_v31, %v4764_v19 }
 0x3b9   : > { %2725 = vst.msk [vmem:[%s4896_s24 + $0xcd] sm:$0x1] %vm1931_vm13, %v2655_v62  ;;  %3372 = vrot.lane.b32.xlu1 %v6759_v55, %s4344_s4  ;;  %v6786_v62 = vrot.slane %v6784_v31, %v4767_v29 }
 0x3ba   : > { %3374 = vrot.lane.b32.xlu0 %v6760_v16, %s4344_s4  ;;  %v6787_v16 = vld [vmem:[#allocation7_spill] sm:$0xff] }
 0x3bb   : > { %v2653_v52 = vpop.permute.xlu1 %2652 }
 0x3bc   : > { %2724 = vst.msk [vmem:[%s4896_s24 + $0xc5] sm:$0x1] %vm1931_vm13, %v2653_v52  ;;  %v2779_v27 = vpop.permute.xlu0 %2778  ;;  %v6788_v52 = vrot.slane %v6787_v16, %v4764_v19 }
 0x3bd   : > { %2851 = vst.msk [vmem:[%s4896_s24 + $0xbe] sm:$0x1] %vm1931_vm13, %v2779_v27  ;;  %3376 = vrot.lane.b32.xlu1 %v6761_v10, %s4344_s4  ;;  %v6789_v27 = vrot.slane %v6787_v16, %v4767_v29 }
 0x3be   : > { %3378 = vrot.lane.b32.xlu0 %v6762_v50, %s4344_s4 }
 0x3bf   : > { %v2777_v56 = vpop.permute.xlu1 %2776 }
 0x3c0   : > { %2850 = vst.msk [vmem:[%s4896_s24 + $0xb6] sm:$0x1] %vm1931_vm13, %v2777_v56  ;;  %v2783_v38 = vpop.permute.xlu0 %2782  ;;  %v6790_v56 = vrot.slane %v5481_v7, %v4764_v19 }
 0x3c1   : > { %2853 = vst.msk [vmem:[%s4896_s24 + $0xce] sm:$0x1] %vm1931_vm13, %v2783_v38  ;;  %3380 = vrot.lane.b32.xlu1 %v6763_v51, %s4344_s4  ;;  %v6791_v38 = vrot.slane %v5481_v7, %v4767_v29 }
 0x3c2   : > { %3382 = vrot.lane.b32.xlu0 %v6764_v49, %s4344_s4 }
 0x3c3   : > { %v2781_v12 = vpop.permute.xlu1 %2780 }
 0x3c4   : > { %2852 = vst.msk [vmem:[%s4896_s24 + $0xc6] sm:$0x1] %vm1931_vm13, %v2781_v12  ;;  %v2147_v20 = vpop.permute.xlu0 %2146  ;;  %v6792_v12 = vrot.slane %v5495_v58, %v4767_v29 }
 0x3c5   : > { %2215 = vst.msk [vmem:[%s4896_s24 + $0xd9] sm:$0x1] %vm1931_vm13, %v2147_v20  ;;  %3384 = vrot.lane.b32.xlu1 %v6765_v47, %s4344_s4  ;;  %v6793_v47 = vrot.slane %v5485_v28, %v4764_v19 }
 0x3c6   : > { %3386 = vrot.lane.b32.xlu0 %v6766_v45, %s4344_s4 }
 0x3c7   : > { %v2145_v30 = vpop.permute.xlu1 %2144 }
 0x3c8   : > { %2214 = vst.msk [vmem:[%s4896_s24 + $0xd1] sm:$0x1] %vm1931_vm13, %v2145_v30  ;;  %v2151_v21 = vpop.permute.xlu0 %2150  ;;  %v6795_v30 = vrot.slane %v5501_v33, %v4764_v19 }
 0x3c9   : > { %3388 = vrot.lane.b32.xlu1 %v6767_v3, %s4344_s4  ;;  %2217 = vst.msk [vmem:[%s4896_s24 + $0xe9] sm:$0x1] %vm1931_vm13, %v2151_v21  ;;  %v6796_v21 = vrot.slane %v5501_v33, %v4767_v29 }
 0x3ca   : > { %3390 = vrot.lane.b32.xlu0 %v6768_v34, %s4344_s4 }
 0x3cb   : > { %v2149_v32 = vpop.permute.xlu1 %2148 }
 0x3cc   : > { %2216 = vst.msk [vmem:[%s4896_s24 + $0xe1] sm:$0x1] %vm1931_vm13, %v2149_v32  ;;  %v2275_v8 = vpop.permute.xlu0 %2274 }
 0x3cd   : > { %3392 = vrot.lane.b32.xlu1 %v6770_v40, %s4344_s4  ;;  %2343 = vst.msk [vmem:[%s4896_s24 + $0xda] sm:$0x1] %vm1931_vm13, %v2275_v8 }
 0x3ce   : > { %3394 = vrot.lane.b32.xlu0 %v6771_v24, %s4344_s4 }
 0x3cf   : > { %v2273_v17 = vpop.permute.xlu1 %2272 }
 0x3d0   : > { %2342 = vst.msk [vmem:[%s4896_s24 + $0xd2] sm:$0x1] %vm1931_vm13, %v2273_v17  ;;  %v2279_v14 = vpop.permute.xlu0 %2278 }
 0x3d1   : > { %3396 = vrot.lane.b32.xlu1 %v6772_v46, %s4344_s4  ;;  %2345 = vst.msk [vmem:[%s4896_s24 + $0xea] sm:$0x1] %vm1931_vm13, %v2279_v14 }
 0x3d2   : > { %3398 = vrot.lane.b32.xlu0 %v6773_v15, %s4344_s4 }
 0x3d3   : > { %v2277_v53 = vpop.permute.xlu1 %2276 }
 0x3d4   : > { %2344 = vst.msk [vmem:[%s4896_s24 + $0xe2] sm:$0x1] %vm1931_vm13, %v2277_v53  ;;  %v2403_v37 = vpop.permute.xlu0 %2402 }
 0x3d5   : > { %3400 = vrot.lane.b32.xlu1 %v6775_v23, %s4344_s4  ;;  %2471 = vst.msk [vmem:[%s4896_s24 + $0xdb] sm:$0x1] %vm1931_vm13, %v2403_v37 }
 0x3d6   : > { %3402 = vrot.lane.b32.xlu0 %v6776_v41, %s4344_s4 }
 0x3d7   : > { %v2401_v26 = vpop.permute.xlu1 %2400 }
 0x3d8   : > { %2470 = vst.msk [vmem:[%s4896_s24 + $0xd3] sm:$0x1] %vm1931_vm13, %v2401_v26  ;;  %v2407_v22 = vpop.permute.xlu0 %2406 }
 0x3d9   : > { %3404 = vrot.lane.b32.xlu1 %v6778_v9, %s4344_s4  ;;  %2473 = vst.msk [vmem:[%s4896_s24 + $0xeb] sm:$0x1] %vm1931_vm13, %v2407_v22 }
 0x3da   : > { %3406 = vrot.lane.b32.xlu0 %v6779_v0, %s4344_s4 }
 0x3db   : > { %v2405_v39 = vpop.permute.xlu1 %2404 }
 0x3dc   : > { %2472 = vst.msk [vmem:[%s4896_s24 + $0xe3] sm:$0x1] %vm1931_vm13, %v2405_v39  ;;  %v2531_v25 = vpop.permute.xlu0 %2530 }
 0x3dd   : > { %3408 = vrot.lane.b32.xlu1 %v6780_v61, %s4344_s4  ;;  %2599 = vst.msk [vmem:[%s4896_s24 + $0xdc] sm:$0x1] %vm1931_vm13, %v2531_v25 }
 0x3de   : > { %3410 = vrot.lane.b32.xlu0 %v6781_v48, %s4344_s4 }
 0x3df   : > { %v2529_v11 = vpop.permute.xlu1 %2528 }
 0x3e0   : > { %2598 = vst.msk [vmem:[%s4896_s24 + $0xd4] sm:$0x1] %vm1931_vm13, %v2529_v11  ;;  %v2535_v44 = vpop.permute.xlu0 %2534 }
 0x3e1   : > { %3412 = vrot.lane.b32.xlu1 %v6782_v4, %s4344_s4  ;;  %2601 = vst.msk [vmem:[%s4896_s24 + $0xec] sm:$0x1] %vm1931_vm13, %v2535_v44 }
 0x3e2   : > { %3414 = vrot.lane.b32.xlu0 %v6783_v43, %s4344_s4 }
 0x3e3   : > { %v2533_v35 = vpop.permute.xlu1 %2532 }
 0x3e4   : > { %2600 = vst.msk [vmem:[%s4896_s24 + $0xe4] sm:$0x1] %vm1931_vm13, %v2533_v35  ;;  %v2659_v36 = vpop.permute.xlu0 %2658 }
 0x3e5   : > { %2727 = vst.msk [vmem:[%s4896_s24 + $0xdd] sm:$0x1] %vm1931_vm13, %v2659_v36  ;;  %3416 = vrot.lane.b32.xlu1 %v6785_v13, %s4344_s4 }
 0x3e6   : > { %3418 = vrot.lane.b32.xlu0 %v6786_v62, %s4344_s4 }
 0x3e7   : > { %v2657_v63 = vpop.permute.xlu1 %2656 }
 0x3e8   : > { %2726 = vst.msk [vmem:[%s4896_s24 + $0xd5] sm:$0x1] %vm1931_vm13, %v2657_v63  ;;  %v2663_v55 = vpop.permute.xlu0 %2662 }
 0x3e9   : > { %2729 = vst.msk [vmem:[%s4896_s24 + $0xed] sm:$0x1] %vm1931_vm13, %v2663_v55  ;;  %3420 = vrot.lane.b32.xlu1 %v6788_v52, %s4344_s4 }
 0x3ea   : > { %3422 = vrot.lane.b32.xlu0 %v6789_v27, %s4344_s4 }
 0x3eb   : > { %v2661_v10 = vpop.permute.xlu1 %2660 }
 0x3ec   : > { %2728 = vst.msk [vmem:[%s4896_s24 + $0xe5] sm:$0x1] %vm1931_vm13, %v2661_v10  ;;  %v2787_v50 = vpop.permute.xlu0 %2786 }
 0x3ed   : > { %2855 = vst.msk [vmem:[%s4896_s24 + $0xde] sm:$0x1] %vm1931_vm13, %v2787_v50  ;;  %3424 = vrot.lane.b32.xlu1 %v6790_v56, %s4344_s4 }
 0x3ee   : > { %3426 = vrot.lane.b32.xlu0 %v6791_v38, %s4344_s4 }
 0x3ef   : > { %v2785_v51 = vpop.permute.xlu1 %2784 }
 0x3f0   : > { %2854 = vst.msk [vmem:[%s4896_s24 + $0xd6] sm:$0x1] %vm1931_vm13, %v2785_v51  ;;  %v2791_v49 = vpop.permute.xlu0 %2790 }
 0x3f1   : > { %2857 = vst.msk [vmem:[%s4896_s24 + $0xee] sm:$0x1] %vm1931_vm13, %v2791_v49  ;;  %3428 = vrot.lane.b32.xlu1 %v3283_v2, %s4344_s4  ;;  %v6794_v2 = vrot.slane %v5485_v28, %v4767_v29 }
 0x3f2   : > { %3430 = vrot.lane.b32.xlu0 %v6792_v12, %s4344_s4 }
 0x3f3   : > { %v2789_v7 = vpop.permute.xlu1 %2788 }
 0x3f4   : > { %2856 = vst.msk [vmem:[%s4896_s24 + $0xe6] sm:$0x1] %vm1931_vm13, %v2789_v7  ;;  %v2155_v20 = vpop.permute.xlu0 %2154 }
 0x3f5   : > { %2219 = vst.msk [vmem:[%s4896_s24 + $0xf9] sm:$0x1] %vm1931_vm13, %v2155_v20  ;;  %3432 = vrot.lane.b32.xlu1 %v6793_v47, %s4344_s4 }
 0x3f6   : > { %3434 = vrot.lane.b32.xlu0 %v6794_v2, %s4344_s4 }
 0x3f7   : > { %v2153_v58 = vpop.permute.xlu1 %2152 }
 0x3f8   : > { %2218 = vst.msk [vmem:[%s4896_s24 + $0xf1] sm:$0x1] %vm1931_vm13, %v2153_v58  ;;  %v2283_v45 = vpop.permute.xlu0 %2282 }
 0x3f9   : > { %2347 = vst.msk [vmem:[%s4896_s24 + $0xfa] sm:$0x1] %vm1931_vm13, %v2283_v45  ;;  %3436 = vrot.lane.b32.xlu1 %v6795_v30, %s4344_s4 }
 0x3fa   : > { %3438 = vrot.lane.b32.xlu0 %v6796_v21, %s4344_s4 }
 0x3fb   : > { %v2281_v28 = vpop.permute.xlu1 %2280 }
 0x3fc   : > { %2346 = vst.msk [vmem:[%s4896_s24 + $0xf2] sm:$0x1] %vm1931_vm13, %v2281_v28  ;;  %v2411_v3 = vpop.permute.xlu0 %2410 }
 0x3fd   : > { %2475 = vst.msk [vmem:[%s4896_s24 + $0xfb] sm:$0x1] %vm1931_vm13, %v2411_v3  ;;  %3440 = vrot.lane.b32.xlu1 %v3307_v59, %s4344_s4  ;;  %v6797_v59 = vrot.slane %v5527_v5, %v4767_v29 }
 0x3fe   : > { %3442 = vrot.lane.b32.xlu0 %v3311_v42, %s4344_s4 }
 0x3ff   : > { %v2409_v33 = vpop.permute.xlu1 %2408 }
 0x400   : > { %2474 = vst.msk [vmem:[%s4896_s24 + $0xf3] sm:$0x1] %vm1931_vm13, %v2409_v33  ;;  %v2539_v34 = vpop.permute.xlu0 %2538 }
 0x401   : > { %2603 = vst.msk [vmem:[%s4896_s24 + $0xfc] sm:$0x1] %vm1931_vm13, %v2539_v34  ;;  %3444 = vrot.lane.b32.xlu1 %v3315_v18, %s4344_s4 }
 0x402   : > { %3446 = vrot.lane.b32.xlu0 %v6797_v59, %s4344_s4 }
 0x403   : > { %v2537_v54 = vpop.permute.xlu1 %2536 }
 0x404   : > { %2602 = vst.msk [vmem:[%s4896_s24 + $0xf4] sm:$0x1] %vm1931_vm13, %v2537_v54  ;;  %v2667_v42 = vpop.permute.xlu0 %2666 }
 0x405   : > { %2731 = vst.msk [vmem:[%s4896_s24 + $0xfd] sm:$0x1] %vm1931_vm13, %v2667_v42 }
 0x407   : > { %v2665_v32 = vpop.permute.xlu1 %2664 }
 0x408   : > { %2730 = vst.msk [vmem:[%s4896_s24 + $0xf5] sm:$0x1] %vm1931_vm13, %v2665_v32  ;;  %v2795_v8 = vpop.permute.xlu0 %2794 }
 0x409   : > { %2859 = vst.msk [vmem:[%s4896_s24 + $0xfe] sm:$0x1] %vm1931_vm13, %v2795_v8 }
 0x40b   : > { %v2793_v19 = vpop.permute.xlu1 %2792 }
 0x40c   : > { %2858 = vst.msk [vmem:[%s4896_s24 + $0xf6] sm:$0x1] %vm1931_vm13, %v2793_v19  ;;  %v3343_v29 = vpop.permute.xlu0 %3342 }
 0x40d   : > { %v3454_v18 = vsel %vm3448_vm2, %v5901_v60, %v3343_v29 }
 0x40e   : > { %3518 = vst.msk [vmem:[%s4896_s24 + $0x2f] sm:$0x1] %vm1931_vm13, %v3454_v18 }
 0x40f   : > { %v3345_v5 = vpop.permute.xlu1 %3344 }
 0x410   : > { %v3347_v6 = vpop.permute.xlu0 %3346 }
 0x411   : > { %v3455_v40 = vsel %vm3448_vm2, %v3345_v5, %v3347_v6 }
 0x412   : > { %3519 = vst.msk [vmem:[%s4896_s24 + $0x37] sm:$0x1] %vm1931_vm13, %v3455_v40 }
 0x413   : > { %v3349_v24 = vpop.permute.xlu1 %3348 }
 0x414   : > { %v3351_v17 = vpop.permute.xlu0 %3350 }
 0x415   : > { %v3456_v14 = vsel %vm3448_vm2, %v3349_v24, %v3351_v17 }
 0x416   : > { %3520 = vst.msk [vmem:[%s4896_s24 + $0x3f] sm:$0x1] %vm1931_vm13, %v3456_v14 }
 0x417   : > { %v3353_v46 = vpop.permute.xlu1 %3352 }
 0x418   : > { %v3355_v15 = vpop.permute.xlu0 %3354 }
 0x419   : > { %v3457_v60 = vsel %vm3448_vm2, %v3353_v46, %v3355_v15 }
 0x41a   : > { %3521 = vst.msk [vmem:[%s4896_s24 + $0x47] sm:$0x1] %vm1931_vm13, %v3457_v60 }
 0x41b   : > { %v3357_v53 = vpop.permute.xlu1 %3356 }
 0x41c   : > { %v3359_v37 = vpop.permute.xlu0 %3358 }
 0x41d   : > { %v3458_v57 = vsel %vm3448_vm2, %v3357_v53, %v3359_v37 }
 0x41e   : > { %3522 = vst.msk [vmem:[%s4896_s24 + $0x4f] sm:$0x1] %vm1931_vm13, %v3458_v57 }
 0x41f   : > { %v3361_v23 = vpop.permute.xlu1 %3360 }
 0x420   : > { %v3363_v41 = vpop.permute.xlu0 %3362 }
 0x421   : > { %v3459_v26 = vsel %vm3448_vm2, %v3361_v23, %v3363_v41 }
 0x422   : > { %3523 = vst.msk [vmem:[%s4896_s24 + $0x57] sm:$0x1] %vm1931_vm13, %v3459_v26  ;;  %v3645_v26 = vld [vmem:[%s4896_s24] sm:$0xff] (%p4411_p5) }
 0x423   : > { %v3365_v22 = vpop.permute.xlu1 %3364  ;;  %3646 = vst [vmem:[%s6637_s7] sm:$0xff] (%p4411_p5), %v3645_v26 }
 0x424   : > { %v3367_v1 = vpop.permute.xlu0 %3366 }
 0x425   : > { %v3460_v9 = vsel %vm3448_vm2, %v3365_v22, %v3367_v1  ;;  %v3647_v22 = vld [vmem:[%s4896_s24 + $0x8] sm:$0xff] (%p4411_p5)  ;;  %v3649_v1 = vld [vmem:[%s4896_s24 + $0x10] sm:$0xff] (%p4411_p5) }
 0x426   : > { %3524 = vst.msk [vmem:[%s4896_s24 + $0x5f] sm:$0x1] %vm1931_vm13, %v3460_v9  ;;  %v3651_v9 = vld [vmem:[%s4896_s24 + $0x18] sm:$0xff] (%p4411_p5)  ;;  %3648 = vst [vmem:[%s6637_s7 + $0x10] sm:$0xff] (%p4411_p5), %v3647_v22 }
 0x427   : > { %v3369_v0 = vpop.permute.xlu1 %3368  ;;  %3650 = vst [vmem:[%s6637_s7 + $0x20] sm:$0xff] (%p4411_p5), %v3649_v1  ;;  %3652 = vst [vmem:[%s6637_s7 + $0x30] sm:$0xff] (%p4411_p5), %v3651_v9 }
 0x428   : > { %v3371_v39 = vpop.permute.xlu0 %3370 }
 0x429   : > { %v3461_v25 = vsel %vm3448_vm2, %v3369_v0, %v3371_v39  ;;  %v3653_v0 = vld [vmem:[%s4896_s24 + $0x20] sm:$0xff] (%p4411_p5)  ;;  %v3655_v39 = vld [vmem:[%s4896_s24 + $0x28] sm:$0xff] (%p4411_p5) }
 0x42a   : > { %3525 = vst.msk [vmem:[%s4896_s24 + $0x67] sm:$0x1] %vm1931_vm13, %v3461_v25  ;;  %v3657_v25 = vld [vmem:[%s4896_s24 + $0x30] sm:$0xff] (%p4411_p5)  ;;  %3654 = vst [vmem:[%s6637_s7 + $0x40] sm:$0xff] (%p4411_p5), %v3653_v0 }
 0x42b   : > { %v3373_v61 = vpop.permute.xlu1 %3372  ;;  %3656 = vst [vmem:[%s6637_s7 + $0x50] sm:$0xff] (%p4411_p5), %v3655_v39  ;;  %3658 = vst [vmem:[%s6637_s7 + $0x60] sm:$0xff] (%p4411_p5), %v3657_v25 }
 0x42c   : > { %v3375_v48 = vpop.permute.xlu0 %3374 }
 0x42d   : > { %v3462_v11 = vsel %vm3448_vm2, %v3373_v61, %v3375_v48  ;;  %v3659_v61 = vld [vmem:[%s4896_s24 + $0x38] sm:$0xff] (%p4411_p5)  ;;  %v3661_v48 = vld [vmem:[%s4896_s24 + $0x40] sm:$0xff] (%p4411_p5) }
 0x42e   : > { %3526 = vst.msk [vmem:[%s4896_s24 + $0x6f] sm:$0x1] %vm1931_vm13, %v3462_v11  ;;  %v3663_v11 = vld [vmem:[%s4896_s24 + $0x48] sm:$0xff] (%p4411_p5)  ;;  %3660 = vst [vmem:[%s6637_s7 + $0x70] sm:$0xff] (%p4411_p5), %v3659_v61 }
 0x42f   : > { %v3377_v44 = vpop.permute.xlu1 %3376  ;;  %3662 = vst [vmem:[%s6637_s7 + $0x80] sm:$0xff] (%p4411_p5), %v3661_v48  ;;  %3664 = vst [vmem:[%s6637_s7 + $0x90] sm:$0xff] (%p4411_p5), %v3663_v11 }
 0x430   : > { %v3379_v4 = vpop.permute.xlu0 %3378 }
 0x431   : > { %v3463_v43 = vsel %vm3448_vm2, %v3377_v44, %v3379_v4  ;;  %v3665_v44 = vld [vmem:[%s4896_s24 + $0x50] sm:$0xff] (%p4411_p5)  ;;  %v3667_v4 = vld [vmem:[%s4896_s24 + $0x58] sm:$0xff] (%p4411_p5) }
 0x432   : > { %3527 = vst.msk [vmem:[%s4896_s24 + $0x77] sm:$0x1] %vm1931_vm13, %v3463_v43  ;;  %3666 = vst [vmem:[%s6637_s7 + $0xa0] sm:$0xff] (%p4411_p5), %v3665_v44  ;;  %v3669_v43 = vld [vmem:[%s4896_s24 + $0x60] sm:$0xff] (%p4411_p5) }
 0x433   : > { %v3381_v35 = vpop.permute.xlu1 %3380  ;;  %3668 = vst [vmem:[%s6637_s7 + $0xb0] sm:$0xff] (%p4411_p5), %v3667_v4  ;;  %3670 = vst [vmem:[%s6637_s7 + $0xc0] sm:$0xff] (%p4411_p5), %v3669_v43 }
 0x434   : > { %v3383_v36 = vpop.permute.xlu0 %3382 }
 0x435   : > { %v3464_v31 = vsel %vm3448_vm2, %v3381_v35, %v3383_v36  ;;  %v3671_v35 = vld [vmem:[%s4896_s24 + $0x68] sm:$0xff] (%p4411_p5) }
 0x436   : > { %3528 = vst.msk [vmem:[%s4896_s24 + $0x7f] sm:$0x1] %vm1931_vm13, %v3464_v31  ;;  %3672 = vst [vmem:[%s6637_s7 + $0xd0] sm:$0xff] (%p4411_p5), %v3671_v35 }
 0x437   : > { %v3385_v13 = vpop.permute.xlu1 %3384 }
 0x438   : > { %v3387_v62 = vpop.permute.xlu0 %3386 }
 0x439   : > { %v3465_v63 = vsel %vm3448_vm2, %v3385_v13, %v3387_v62  ;;  %v3673_v36 = vld [vmem:[%s4896_s24 + $0x70] sm:$0xff] (%p4411_p5) }
 0x43a   : > { %3529 = vst.msk [vmem:[%s4896_s24 + $0x87] sm:$0x1] %vm1931_vm13, %v3465_v63  ;;  %3674 = vst [vmem:[%s6637_s7 + $0xe0] sm:$0xff] (%p4411_p5), %v3673_v36 }
 0x43b   : > { %v3389_v55 = vpop.permute.xlu1 %3388 }
 0x43c   : > { %v3391_v16 = vpop.permute.xlu0 %3390 }
 0x43d   : > { %v3466_v52 = vsel %vm3448_vm2, %v3389_v55, %v3391_v16  ;;  %v3675_v31 = vld [vmem:[%s4896_s24 + $0x78] sm:$0xff] (%p4411_p5) }
 0x43e   : > { %3530 = vst.msk [vmem:[%s4896_s24 + $0x8f] sm:$0x1] %vm1931_vm13, %v3466_v52  ;;  %3676 = vst [vmem:[%s6637_s7 + $0xf0] sm:$0xff] (%p4411_p5), %v3675_v31 }
 0x43f   : > { %v3393_v27 = vpop.permute.xlu1 %3392 }
 0x440   : > { %v3395_v10 = vpop.permute.xlu0 %3394 }
 0x441   : > { %v3467_v50 = vsel %vm3448_vm2, %v3393_v27, %v3395_v10  ;;  %v3677_v13 = vld [vmem:[%s4896_s24 + $0x80] sm:$0xff] (%p4411_p5) }
 0x442   : > { %3531 = vst.msk [vmem:[%s4896_s24 + $0x97] sm:$0x1] %vm1931_vm13, %v3467_v50  ;;  %3678 = vst [vmem:[%s6637_s7 + $0x100] sm:$0xff] (%p4411_p5), %v3677_v13 }
 0x443   : > { %v3397_v56 = vpop.permute.xlu1 %3396 }
 0x444   : > { %v3399_v38 = vpop.permute.xlu0 %3398 }
 0x445   : > { %v3468_v51 = vsel %vm3448_vm2, %v3397_v56, %v3399_v38  ;;  %v3679_v62 = vld [vmem:[%s4896_s24 + $0x88] sm:$0xff] (%p4411_p5) }
 0x446   : > { %3532 = vst.msk [vmem:[%s4896_s24 + $0x9f] sm:$0x1] %vm1931_vm13, %v3468_v51  ;;  %3680 = vst [vmem:[%s6637_s7 + $0x110] sm:$0xff] (%p4411_p5), %v3679_v62 }
 0x447   : > { %v3401_v49 = vpop.permute.xlu1 %3400 }
 0x448   : > { %v3403_v12 = vpop.permute.xlu0 %3402 }
 0x449   : > { %v3469_v7 = vsel %vm3448_vm2, %v3401_v49, %v3403_v12  ;;  %v3681_v63 = vld [vmem:[%s4896_s24 + $0x90] sm:$0xff] (%p4411_p5) }
 0x44a   : > { %3533 = vst.msk [vmem:[%s4896_s24 + $0xa7] sm:$0x1] %vm1931_vm13, %v3469_v7  ;;  %3682 = vst [vmem:[%s6637_s7 + $0x120] sm:$0xff] (%p4411_p5), %v3681_v63 }
 0x44b   : > { %v3405_v20 = vpop.permute.xlu1 %3404 }
 0x44c   : > { %v3407_v47 = vpop.permute.xlu0 %3406 }
 0x44d   : > { %v3470_v2 = vsel %vm3448_vm2, %v3405_v20, %v3407_v47  ;;  %v3683_v55 = vld [vmem:[%s4896_s24 + $0x98] sm:$0xff] (%p4411_p5) }
 0x44e   : > { %3534 = vst.msk [vmem:[%s4896_s24 + $0xaf] sm:$0x1] %vm1931_vm13, %v3470_v2  ;;  %3684 = vst [vmem:[%s6637_s7 + $0x130] sm:$0xff] (%p4411_p5), %v3683_v55 }
 0x44f   : > { %v3409_v58 = vpop.permute.xlu1 %3408 }
 0x450   : > { %v3411_v45 = vpop.permute.xlu0 %3410 }
 0x451   : > { %v3471_v30 = vsel %vm3448_vm2, %v3409_v58, %v3411_v45  ;;  %v3685_v16 = vld [vmem:[%s4896_s24 + $0xa0] sm:$0xff] (%p4411_p5) }
 0x452   : > { %3535 = vst.msk [vmem:[%s4896_s24 + $0xb7] sm:$0x1] %vm1931_vm13, %v3471_v30  ;;  %3686 = vst [vmem:[%s6637_s7 + $0x140] sm:$0xff] (%p4411_p5), %v3685_v16 }
 0x453   : > { %v3413_v21 = vpop.permute.xlu1 %3412 }
 0x454   : > { %v3415_v28 = vpop.permute.xlu0 %3414 }
 0x455   : > { %v3472_v3 = vsel %vm3448_vm2, %v3413_v21, %v3415_v28  ;;  %v3687_v52 = vld [vmem:[%s4896_s24 + $0xa8] sm:$0xff] (%p4411_p5) }
 0x456   : > { %3536 = vst.msk [vmem:[%s4896_s24 + $0xbf] sm:$0x1] %vm1931_vm13, %v3472_v3  ;;  %3688 = vst [vmem:[%s6637_s7 + $0x150] sm:$0xff] (%p4411_p5), %v3687_v52 }
 0x457   : > { %v3417_v33 = vpop.permute.xlu1 %3416 }
 0x458   : > { %v3419_v34 = vpop.permute.xlu0 %3418 }
 0x459   : > { %v3473_v59 = vsel %vm3448_vm2, %v3417_v33, %v3419_v34  ;;  %v3689_v27 = vld [vmem:[%s4896_s24 + $0xb0] sm:$0xff] (%p4411_p5) }
 0x45a   : > { %3537 = vst.msk [vmem:[%s4896_s24 + $0xc7] sm:$0x1] %vm1931_vm13, %v3473_v59  ;;  %3690 = vst [vmem:[%s6637_s7 + $0x160] sm:$0xff] (%p4411_p5), %v3689_v27 }
 0x45b   : > { %v3421_v54 = vpop.permute.xlu1 %3420 }
 0x45c   : > { %v3423_v42 = vpop.permute.xlu0 %3422 }
 0x45d   : > { %v3474_v32 = vsel %vm3448_vm2, %v3421_v54, %v3423_v42  ;;  %v3691_v10 = vld [vmem:[%s4896_s24 + $0xb8] sm:$0xff] (%p4411_p5) }
 0x45e   : > { %3538 = vst.msk [vmem:[%s4896_s24 + $0xcf] sm:$0x1] %vm1931_vm13, %v3474_v32  ;;  %3692 = vst [vmem:[%s6637_s7 + $0x170] sm:$0xff] (%p4411_p5), %v3691_v10 }
 0x45f   : > { %v3425_v8 = vpop.permute.xlu1 %3424 }
 0x460   : > { %v3427_v19 = vpop.permute.xlu0 %3426 }
 0x461   : > { %v3475_v29 = vsel %vm3448_vm2, %v3425_v8, %v3427_v19  ;;  %v3693_v50 = vld [vmem:[%s4896_s24 + $0xc0] sm:$0xff] (%p4411_p5) }
 0x462   : > { %3539 = vst.msk [vmem:[%s4896_s24 + $0xd7] sm:$0x1] %vm1931_vm13, %v3475_v29  ;;  %3694 = vst [vmem:[%s6637_s7 + $0x180] sm:$0xff] (%p4411_p5), %v3693_v50 }
 0x463   : > { %v3429_v18 = vpop.permute.xlu1 %3428 }
 0x464   : > { %v3431_v5 = vpop.permute.xlu0 %3430 }
 0x465   : > { %v3476_v6 = vsel %vm3448_vm2, %v3429_v18, %v3431_v5  ;;  %v3695_v56 = vld [vmem:[%s4896_s24 + $0xc8] sm:$0xff] (%p4411_p5) }
 0x466   : > { %3540 = vst.msk [vmem:[%s4896_s24 + $0xdf] sm:$0x1] %vm1931_vm13, %v3476_v6  ;;  %3696 = vst [vmem:[%s6637_s7 + $0x190] sm:$0xff] (%p4411_p5), %v3695_v56 }
 0x467   : > { %v3433_v40 = vpop.permute.xlu1 %3432 }
 0x468   : > { %v3435_v24 = vpop.permute.xlu0 %3434 }
 0x469   : > { %v3477_v17 = vsel %vm3448_vm2, %v3433_v40, %v3435_v24  ;;  %v3697_v38 = vld [vmem:[%s4896_s24 + $0xd0] sm:$0xff] (%p4411_p5) }
 0x46a   : > { %3541 = vst.msk [vmem:[%s4896_s24 + $0xe7] sm:$0x1] %vm1931_vm13, %v3477_v17  ;;  %3698 = vst [vmem:[%s6637_s7 + $0x1a0] sm:$0xff] (%p4411_p5), %v3697_v38 }
 0x46b   : > { %v3437_v14 = vpop.permute.xlu1 %3436 }
 0x46c   : > { %v3439_v46 = vpop.permute.xlu0 %3438 }
 0x46d   : > { %v3478_v15 = vsel %vm3448_vm2, %v3437_v14, %v3439_v46  ;;  %v3699_v51 = vld [vmem:[%s4896_s24 + $0xd8] sm:$0xff] (%p4411_p5) }
 0x46e   : > { %3542 = vst.msk [vmem:[%s4896_s24 + $0xef] sm:$0x1] %vm1931_vm13, %v3478_v15  ;;  %3700 = vst [vmem:[%s6637_s7 + $0x1b0] sm:$0xff] (%p4411_p5), %v3699_v51 }
 0x46f   : > { %v3441_v60 = vpop.permute.xlu1 %3440 }
 0x470   : > { %v3443_v53 = vpop.permute.xlu0 %3442  ;;  %3551 = sbr.rel (!%p4411_p5) target bundleno = 1151 (0x47f), region = 36 }
 0x471   : > { %v3479_v37 = vsel %vm3448_vm2, %v3441_v60, %v3443_v53  ;;  %v3701_v49 = vld [vmem:[%s4896_s24 + $0xe0] sm:$0xff] (%p4411_p5) }
 0x472   : > { %3543 = vst.msk [vmem:[%s4896_s24 + $0xf7] sm:$0x1] %vm1931_vm13, %v3479_v37  ;;  %3702 = vst [vmem:[%s6637_s7 + $0x1c0] sm:$0xff] (%p4411_p5), %v3701_v49 }
 0x473   : > { %v3445_v57 = vpop.permute.xlu1 %3444 }
 0x474   : > { %v3447_v23 = vpop.permute.xlu0 %3446 }
 0x475   : > { %v3480_v41 = vsel %vm3448_vm2, %v3445_v57, %v3447_v23  ;;  %v3703_v12 = vld [vmem:[%s4896_s24 + $0xe8] sm:$0xff] (%p4411_p5) }
 0x476   : > { %3544 = vst.msk [vmem:[%s4896_s24 + $0xff] sm:$0x1] %vm1931_vm13, %v3480_v41  ;;  %3704 = vst [vmem:[%s6637_s7 + $0x1d0] sm:$0xff] (%p4411_p5), %v3703_v12 }
 0x479   : > { %v3705_v7 = vld [vmem:[%s4896_s24 + $0xf0] sm:$0xff] }
 0x47a   : > { %3706 = vst [vmem:[%s6637_s7 + $0x1e0] sm:$0xff] %v3705_v7 }
 0x47d   : > { %v3707_v20 = vld [vmem:[%s4896_s24 + $0xf8] sm:$0xff] }
 0x47e   : > { %3708 = vst [vmem:[%s6637_s7 + $0x1f0] sm:$0xff] %v3707_v20 }
 0x47f PF: > { %s13_s18 = sadd.s32 1, %s4327_s18   ;;  %s6798_s12 = smov %s4307_s13 }
 0x480   : > { %p10_p11 = scmp.ge.s32.totalorder %s13_s18, 6   ;;  %s6799_s13 = smov %s4422_s27 }
 0x481   : > { %s6800_s14 = smov %s4319_s16  ;;  %s6801_s15 = smov %s4323_s17 }
 0x482   : > { %s6802_s16 = smov %s6805_s19  ;;  %s6803_s17 = smov %s6809_s20 }
 0x483   :  { %12 = sbr.rel (!%p10_p11) target bundleno = 4 (0x4), region = 108 }

</bundles_post_ra>
